<compile_context>
chip_gen: v5e
topology: v5e:2x2
jax: 0.10.0
libtpu: 0.0.40
codegen_flags: <defaults>
</compile_context>

<pallas_src>
import jax
import jax.numpy as jnp
from jax import lax
from jax.experimental import pallas as pl
from jax.experimental.pallas import tpu as pltpu

# ---------------- fixed architecture constants (16*4*4 flatten => 28x28) -----
KSZ = 5
H = W = 28
OH1 = OW1 = H - KSZ + 1          # 24
PH1 = PW1 = OH1 // 2             # 12
OH2 = OW2 = PH1 - KSZ + 1        # 8
PH2 = PW2 = OH2 // 2             # 4
C1, C2 = 6, 16
NFLAT = C2 * PH2 * PW2           # 256

# conv outputs are stored flattened with the INPUT row stride (W / PW1), so
# every im2col patch is one contiguous slice.
NC1 = (OH1 - 1) * W + OW1        # 668 conv1 columns
NC2 = (OH2 - 1) * PW1 + OW2      # 92  conv2 columns
SW1 = 2 * PW1 - 1                # 23  pool1 slab width (odd tail never selected)
SW2 = 2 * PW2 - 1                # 7   pool2 slab width

# static sanity checks for the slicing/pooling invariants
assert (KSZ - 1) * W + (KSZ - 1) + NC1 == H * W              # conv1 slices in-bounds
assert (KSZ - 1) * PW1 + (KSZ - 1) + NC2 == PH1 * PW1        # conv2 slices in-bounds
assert 2 * (PH1 - 1) * W + (W + 1) + (SW1 - 1) == NC1 - 1    # pool1 slab reads in-bounds
assert 2 * (PH2 - 1) * PW1 + (PW1 + 1) + (SW2 - 1) == NC2 - 1  # pool2 slab reads in-bounds


# ------------------------------ fused kernel ---------------------------------
def _fused_cnn_kernel(x_ref, w1_ref, b1_ref, w2_ref, b2_ref,
                      fw1_ref, fb1_ref, fw2_ref, fb2_ref, fw3_ref, fb3_ref,
                      o_ref,
                      im1_ref, a1_ref, p1_ref, im2_ref, a2_ref, feat_ref):
    f32 = jnp.float32
    b_tile = x_ref.shape[0]
    c_in = x_ref.shape[1]

    # resident (tiny) weights, loaded once per grid step
    w1 = w1_ref[...]                     # (C1, c_in*25)
    b1 = b1_ref[...]                     # (C1, 1)
    w2 = w2_ref[...]                     # (C2, C1*25)
    b2 = b2_ref[...]                     # (C2, 1)

    # one-hot even-column selectors, built in-kernel from iota (no HBM traffic),
    # hoisted out of the per-image loop.  sel[l, j] = 1 iff l == 2*j.
    sel1 = (lax.broadcasted_iota(jnp.int32, (SW1, PW1), 0)
            == 2 * lax.broadcasted_iota(jnp.int32, (SW1, PW1), 1)).astype(f32)
    sel2 = (lax.broadcasted_iota(jnp.int32, (SW2, PW2), 0)
            == 2 * lax.broadcasted_iota(jnp.int32, (SW2, PW2), 1)).astype(f32)

    @pl.loop(0, b_tile)
    def _(b):
        x_img = x_ref[b]                                          # (c_in, H*W)

        # ---- conv1: im2col scratch + ONE deep-K matmul + bias + ReLU --------
        for s in range(KSZ * KSZ):
            di, dj = divmod(s, KSZ)
            off = di * W + dj
            im1_ref[pl.ds(s * c_in, c_in), :] = x_img[:, off:off + NC1]
        a1_ref[...] = jnp.maximum(
            jnp.dot(w1, im1_ref[...], preferred_element_type=f32) + b1, 0.0)

        # ---- pool1: per pooling row, 2x2 max of 4 slabs + even-column select
        for pi in range(PH1):
            base = 2 * pi * W
            r = jnp.maximum(
                jnp.maximum(a1_ref[:, pl.ds(base, SW1)],
                            a1_ref[:, pl.ds(base + 1, SW1)]),
                jnp.maximum(a1_ref[:, pl.ds(base + W, SW1)],
                            a1_ref[:, pl.ds(base + W + 1, SW1)]))
            p1_ref[:, pl.ds(pi * PW1, PW1)] = jnp.dot(
                r, sel1, preferred_element_type=f32)

        # ---- conv2: im2col scratch + ONE deep-K matmul + bias + ReLU --------
        for s in range(KSZ * KSZ):
            di, dj = divmod(s, KSZ)
            off = di * PW1 + dj
            im2_ref[pl.ds(s * C1, C1), :] = p1_ref[:, pl.ds(off, NC2)]
        a2_ref[...] = jnp.maximum(
            jnp.dot(w2, im2_ref[...], preferred_element_type=f32) + b2, 0.0)

        # ---- pool2 -> (C2, 16), stored into the per-tile feature scratch ----
        pieces = []
        for pi in range(PH2):
            base = 2 * pi * PW1
            r = jnp.maximum(
                jnp.maximum(a2_ref[:, pl.ds(base, SW2)],
                            a2_ref[:, pl.ds(base + 1, SW2)]),
                jnp.maximum(a2_ref[:, pl.ds(base + PW1, SW2)],
                            a2_ref[:, pl.ds(base + PW1 + 1, SW2)]))
            pieces.append(jnp.dot(r, sel2, preferred_element_type=f32))
        feat_ref[b] = jnp.concatenate(pieces, axis=1)             # (C2, PH2*PW2)

    # ---- batched MLP head over the whole tile (torch.flatten = (chan,h,w)) --
    h = feat_ref[...].reshape(b_tile, NFLAT)                      # (B_TILE, 256)
    h = jnp.maximum(jnp.dot(h, fw1_ref[...], preferred_element_type=f32)
                    + fb1_ref[...], 0.0)                          # (B_TILE, 120)
    h = jnp.maximum(jnp.dot(h, fw2_ref[...], preferred_element_type=f32)
                    + fb2_ref[...], 0.0)                          # (B_TILE, 84)
    o_ref[...] = (jnp.dot(h, fw3_ref[...], preferred_element_type=f32)
                  + fb3_ref[...])                                 # (B_TILE, nop)


# -------------------------------- wrapper ------------------------------------
def basic_cnn_forward(x, p, *, n_out, b_tile=None):
    """x: (B, C_in, 28, 28) f32; p: packed params (see pack_params) -> (B, n_out)."""
    B, c_in, hh, ww = x.shape
    assert (hh, ww) == (H, W), "BasicCNN's 16*4*4 flatten implies 28x28 inputs"
    if b_tile is None:
        # keep >= 2 grid steps (both v7x cores busy) while filling the MXU M dim
        b_tile = max(1, min(128, pl.cdiv(B, 2)))
    n_tiles = pl.cdiv(B, b_tile)
    b_pad = n_tiles * b_tile
    nop = p["fc3_w"].shape[1]                   # n_out padded to a lane-dense width

    x_flat = x.reshape(B, c_in, H * W)          # free: merges contiguous dims
    if b_pad != B:
        x_flat = jnp.pad(x_flat, ((0, b_pad - B), (0, 0), (0, 0)))

    out = pl.pallas_call(
        _fused_cnn_kernel,
        out_shape=jax.ShapeDtypeStruct((n_tiles, b_tile, nop), jnp.float32),
        grid_spec=pltpu.PrefetchScalarGridSpec(
            num_scalar_prefetch=0,
            grid=(n_tiles,),
            in_specs=[
                pl.BlockSpec((b_tile, c_in, H * W), lambda t: (t, 0, 0)),     # x
                pl.BlockSpec((C1, c_in * KSZ * KSZ), lambda t: (0, 0)),       # conv1 w
                pl.BlockSpec((C1, 1), lambda t: (0, 0)),                      # conv1 b
                pl.BlockSpec((C2, C1 * KSZ * KSZ), lambda t: (0, 0)),         # conv2 w
                pl.BlockSpec((C2, 1), lambda t: (0, 0)),                      # conv2 b
                pl.BlockSpec((NFLAT, 120), lambda t: (0, 0)),                 # fc1 w
                pl.BlockSpec((1, 120), lambda t: (0, 0)),                     # fc1 b
                pl.BlockSpec((120, 84), lambda t: (0, 0)),                    # fc2 w
                pl.BlockSpec((1, 84), lambda t: (0, 0)),                      # fc2 b
                pl.BlockSpec((84, nop), lambda t: (0, 0)),                    # fc3 w (padded)
                pl.BlockSpec((1, nop), lambda t: (0, 0)),                     # fc3 b (padded)
            ],
            out_specs=pl.BlockSpec((None, b_tile, nop), lambda t: (t, 0, 0)),
            scratch_shapes=[
                pltpu.VMEM((c_in * KSZ * KSZ, NC1), jnp.float32),   # conv1 im2col
                pltpu.VMEM((C1, NC1), jnp.float32),                 # conv1 activation
                pltpu.VMEM((C1, PH1 * PW1), jnp.float32),           # pool1 output
                pltpu.VMEM((C1 * KSZ * KSZ, NC2), jnp.float32),     # conv2 im2col
                pltpu.VMEM((C2, NC2), jnp.float32),                 # conv2 activation
                pltpu.VMEM((b_tile, C2, PH2 * PW2), jnp.float32),   # flat features
            ],
        ),
        compiler_params=pltpu.CompilerParams(
            dimension_semantics=("parallel",)),
    )(x_flat, p["conv1_w"], p["conv1_b"], p["conv2_w"], p["conv2_b"],
      p["fc1_w"], p["fc1_b"], p["fc2_w"], p["fc2_b"], p["fc3_w"], p["fc3_b"])
    return out.reshape(b_pad, nop)[:B, :n_out]


# ------------------------------ parameters -----------------------------------
def init_params_torch_layout(key, in_chn, n_out):
    """PyTorch-style uniform(-1/sqrt(fan_in), 1/sqrt(fan_in)) init, PyTorch layouts."""
    ks = jax.random.split(key, 10)

    def u(k, shape, fan_in):
        bound = 1.0 / (fan_in ** 0.5)
        return jax.random.uniform(k, shape, jnp.float32, -bound, bound)

    return {
        "conv1_w": u(ks[0], (C1, in_chn, KSZ, KSZ), in_chn * KSZ * KSZ),
        "conv1_b": u(ks[1], (C1,), in_chn * KSZ * KSZ),
        "conv2_w": u(ks[2], (C2, C1, KSZ, KSZ), C1 * KSZ * KSZ),
        "conv2_b": u(ks[3], (C2,), C1 * KSZ * KSZ),
        "fc1_w":   u(ks[4], (120, NFLAT), NFLAT),
        "fc1_b":   u(ks[5], (120,), NFLAT),
        "fc2_w":   u(ks[6], (84, 120), 120),
        "fc2_b":   u(ks[7], (84,), 120),
        "fc3_w":   u(ks[8], (n_out, 84), 84),
        "fc3_b":   u(ks[9], (n_out,), 84),
    }


def pack_params(pt):
    """One-time repack of PyTorch-layout params into the kernel's layouts."""
    def conv_stack(w):   # (O, Ci, k, k) -> (O, k*k*Ci); K order = (di, dj, ci)
        o, ci = w.shape[0], w.shape[1]
        return jnp.transpose(w, (0, 2, 3, 1)).reshape(o, KSZ * KSZ * ci)

    n_out = pt["fc3_w"].shape[0]
    nop = ((n_out + 127) // 128) * 128             # lane-dense output width
    fw3 = jnp.pad(jnp.transpose(pt["fc3_w"], (1, 0)), ((0, 0), (0, nop - n_out)))
    fb3 = jnp.pad(pt["fc3_b"].reshape(1, n_out), ((0, 0), (0, nop - n_out)))
    return {
        "conv1_w": conv_stack(pt["conv1_w"]),
        "conv1_b": pt["conv1_b"].reshape(C1, 1),
        "conv2_w": conv_stack(pt["conv2_w"]),
        "conv2_b": pt["conv2_b"].reshape(C2, 1),
        "fc1_w":   jnp.transpose(pt["fc1_w"], (1, 0)),     # (256, 120), torch flatten order
        "fc1_b":   pt["fc1_b"].reshape(1, 120),
        "fc2_w":   jnp.transpose(pt["fc2_w"], (1, 0)),     # (120, 84)
        "fc2_b":   pt["fc2_b"].reshape(1, 84),
        "fc3_w":   fw3,                                    # (84, nop) zero-padded
        "fc3_b":   fb3,                                    # (1, nop)  zero-padded
    }


# ----------------------- pure-JAX reference (checking) -----------------------
def reference_forward(x, pt):
    hi = lax.Precision.HIGHEST
    y = lax.conv_general_dilated(x, pt["conv1_w"], (1, 1), "VALID",
                                 dimension_numbers=("NCHW", "OIHW", "NCHW"),
                                 precision=hi)
    y = jax.nn.relu(y + pt["conv1_b"][None, :, None, None])
    b, c, h, w = y.shape
    y = y.reshape(b, c, h // 2, 2, w // 2, 2).max(axis=(3, 5))
    y = lax.conv_general_dilated(y, pt["conv2_w"], (1, 1), "VALID",
                                 dimension_numbers=("NCHW", "OIHW", "NCHW"),
                                 precision=hi)
    y = jax.nn.relu(y + pt["conv2_b"][None, :, None, None])
    b, c, h, w = y.shape
    y = y.reshape(b, c, h // 2, 2, w // 2, 2).max(axis=(3, 5))
    y = y.reshape(b, -1)
    y = jax.nn.relu(jnp.dot(y, pt["fc1_w"].T, precision=hi) + pt["fc1_b"])
    y = jax.nn.relu(jnp.dot(y, pt["fc2_w"].T, precision=hi) + pt["fc2_b"])
    return jnp.dot(y, pt["fc3_w"].T, precision=hi) + pt["fc3_b"]


if __name__ == "__main__":
    # 16*4*4 flatten in the module forces 28x28 spatial input (LeNet/MNIST-style).
    batch, in_chn, n_out = 2, 3, 10

    key = jax.random.PRNGKey(0)
    k_x, k_p = jax.random.split(key)
    x = jax.random.normal(k_x, (batch, in_chn, H, W), jnp.float32)

    pt_params = init_params_torch_layout(k_p, in_chn, n_out)
    params = pack_params(pt_params)            # one-time repack into kernel layout

    fwd = jax.jit(basic_cnn_forward, static_argnames=("n_out", "b_tile"))
    out = fwd(x, params, n_out=n_out)
    jax.block_until_ready(out)
    assert out.shape == (batch, n_out), out.shape

    # Correctness check against a pure-JAX reference of the PyTorch model.
    ref = jax.jit(reference_forward)(x, pt_params)
    max_err = float(jnp.max(jnp.abs(out - ref)))
    assert jnp.allclose(out, ref, rtol=1e-2, atol=1e-2), max_err

    print("KERNEL_OK")
</pallas_src>

<mosaic_0001>
module attributes {stable_mosaic.version = 11 : i64} {
  func.func @_fused_cnn_kernel(%arg0: i32, %arg1: memref<1x3x784xf32, #tpu.memory_space<vmem>>, %arg2: memref<6x75xf32, #tpu.memory_space<vmem>>, %arg3: memref<6x1xf32, #tpu.memory_space<vmem>>, %arg4: memref<16x150xf32, #tpu.memory_space<vmem>>, %arg5: memref<16x1xf32, #tpu.memory_space<vmem>>, %arg6: memref<256x120xf32, #tpu.memory_space<vmem>>, %arg7: memref<1x120xf32, #tpu.memory_space<vmem>>, %arg8: memref<120x84xf32, #tpu.memory_space<vmem>>, %arg9: memref<1x84xf32, #tpu.memory_space<vmem>>, %arg10: memref<84x128xf32, #tpu.memory_space<vmem>>, %arg11: memref<1x128xf32, #tpu.memory_space<vmem>>, %arg12: memref<1x1x128xf32, #tpu.memory_space<vmem>>, %arg13: memref<75x668xf32, #tpu.memory_space<vmem>>, %arg14: memref<6x668xf32, #tpu.memory_space<vmem>>, %arg15: memref<6x144xf32, #tpu.memory_space<vmem>>, %arg16: memref<150x92xf32, #tpu.memory_space<vmem>>, %arg17: memref<16x92xf32, #tpu.memory_space<vmem>>, %arg18: memref<1x16x16xf32, #tpu.memory_space<vmem>>) attributes {dimension_semantics = [#tpu.dimension_semantics<parallel>], iteration_bounds = array<i64: 2>, scalar_prefetch = 0 : i64, scratch_operands = 6 : i64, tpu.core_type = #tpu.core_type<tc>, window_params = [{transform_indices = @transform_0, window_bounds = array<i64: 1, 3, 784>}, {pipeline_mode = #tpu.pipeline_mode<synchronous>, transform_indices = @transform_1, window_bounds = array<i64: 6, 75>}, {pipeline_mode = #tpu.pipeline_mode<synchronous>, transform_indices = @transform_2, window_bounds = array<i64: 6, 1>}, {pipeline_mode = #tpu.pipeline_mode<synchronous>, transform_indices = @transform_3, window_bounds = array<i64: 16, 150>}, {pipeline_mode = #tpu.pipeline_mode<synchronous>, transform_indices = @transform_4, window_bounds = array<i64: 16, 1>}, {pipeline_mode = #tpu.pipeline_mode<synchronous>, transform_indices = @transform_5, window_bounds = array<i64: 256, 120>}, {pipeline_mode = #tpu.pipeline_mode<synchronous>, transform_indices = @transform_6, window_bounds = array<i64: 1, 120>}, {pipeline_mode = #tpu.pipeline_mode<synchronous>, transform_indices = @transform_7, window_bounds = array<i64: 120, 84>}, {pipeline_mode = #tpu.pipeline_mode<synchronous>, transform_indices = @transform_8, window_bounds = array<i64: 1, 84>}, {pipeline_mode = #tpu.pipeline_mode<synchronous>, transform_indices = @transform_9, window_bounds = array<i64: 84, 128>}, {pipeline_mode = #tpu.pipeline_mode<synchronous>, transform_indices = @transform_10, window_bounds = array<i64: 1, 128>}, {transform_indices = @transform_11, window_bounds = array<i64: 1, 1, 128>}]} {
    %c0 = arith.constant 0 : index
    %c0_0 = arith.constant 0 : index
    %0 = vector.load %arg2[%c0, %c0_0] : memref<6x75xf32, #tpu.memory_space<vmem>>, vector<6x75xf32>
    %c0_1 = arith.constant 0 : index
    %c0_2 = arith.constant 0 : index
    %1 = vector.load %arg3[%c0_1, %c0_2] : memref<6x1xf32, #tpu.memory_space<vmem>>, vector<6x1xf32>
    %c0_3 = arith.constant 0 : index
    %c0_4 = arith.constant 0 : index
    %2 = vector.load %arg4[%c0_3, %c0_4] : memref<16x150xf32, #tpu.memory_space<vmem>>, vector<16x150xf32>
    %c0_5 = arith.constant 0 : index
    %c0_6 = arith.constant 0 : index
    %3 = vector.load %arg5[%c0_5, %c0_6] : memref<16x1xf32, #tpu.memory_space<vmem>>, vector<16x1xf32>
    %4 = tpu.iota {dimensions = array<i32: 0>} : vector<23x12xi32>
    %5 = tpu.iota {dimensions = array<i32: 1>} : vector<23x12xi32>
    %c2_i32 = arith.constant 2 : i32
    %6 = vector.broadcast %c2_i32 : i32 to vector<23x12xi32>
    %7 = arith.muli %6, %5 : vector<23x12xi32>
    %8 = arith.cmpi eq, %4, %7 : vector<23x12xi32>
    %9 = arith.extui %8 : vector<23x12xi1> to vector<23x12xi32>
    %10 = arith.sitofp %9 : vector<23x12xi32> to vector<23x12xf32>
    %11 = tpu.iota {dimensions = array<i32: 0>} : vector<7x4xi32>
    %12 = tpu.iota {dimensions = array<i32: 1>} : vector<7x4xi32>
    %c2_i32_7 = arith.constant 2 : i32
    %13 = vector.broadcast %c2_i32_7 : i32 to vector<7x4xi32>
    %14 = arith.muli %13, %12 : vector<7x4xi32>
    %15 = arith.cmpi eq, %11, %14 : vector<7x4xi32>
    %16 = arith.extui %15 : vector<7x4xi1> to vector<7x4xi32>
    %17 = arith.sitofp %16 : vector<7x4xi32> to vector<7x4xf32>
    %c0_i32 = arith.constant 0 : i32
    %c1_i32 = arith.constant 1 : i32
    %18 = arith.muli %c0_i32, %c1_i32 : i32
    %c0_i32_8 = arith.constant 0 : i32
    %19 = arith.addi %c0_i32_8, %18 : i32
    %20 = arith.index_cast %19 : i32 to index
    %c0_9 = arith.constant 0 : index
    %c0_10 = arith.constant 0 : index
    %21 = vector.load %arg1[%20, %c0_9, %c0_10] : memref<1x3x784xf32, #tpu.memory_space<vmem>>, vector<1x3x784xf32>
    %22 = vector.shape_cast %21 : vector<1x3x784xf32> to vector<3x784xf32>
    %23 = vector.extract_strided_slice %22 {offsets = [0, 0], sizes = [3, 668], strides = [1, 1]} : vector<3x784xf32> to vector<3x668xf32>
    %c0_11 = arith.constant 0 : index
    %c0_12 = arith.constant 0 : index
    %24 = vector.load %arg13[%c0_11, %c0_12] : memref<75x668xf32, #tpu.memory_space<vmem>>, vector<3x668xf32>
    tpu.vector_store %arg13[%c0_11, %c0_12], %23 {strides = array<i32>} : memref<75x668xf32, #tpu.memory_space<vmem>>, vector<3x668xf32>,
    %25 = vector.extract_strided_slice %22 {offsets = [0, 1], sizes = [3, 668], strides = [1, 1]} : vector<3x784xf32> to vector<3x668xf32>
    %c3 = arith.constant 3 : index
    %c0_13 = arith.constant 0 : index
    %26 = vector.load %arg13[%c3, %c0_13] : memref<75x668xf32, #tpu.memory_space<vmem>>, vector<3x668xf32>
    tpu.vector_store %arg13[%c3, %c0_13], %25 {strides = array<i32>} : memref<75x668xf32, #tpu.memory_space<vmem>>, vector<3x668xf32>,
    %27 = vector.extract_strided_slice %22 {offsets = [0, 2], sizes = [3, 668], strides = [1, 1]} : vector<3x784xf32> to vector<3x668xf32>
    %c6 = arith.constant 6 : index
    %c0_14 = arith.constant 0 : index
    %28 = vector.load %arg13[%c6, %c0_14] : memref<75x668xf32, #tpu.memory_space<vmem>>, vector<3x668xf32>
    tpu.vector_store %arg13[%c6, %c0_14], %27 {strides = array<i32>} : memref<75x668xf32, #tpu.memory_space<vmem>>, vector<3x668xf32>,
    %29 = vector.extract_strided_slice %22 {offsets = [0, 3], sizes = [3, 668], strides = [1, 1]} : vector<3x784xf32> to vector<3x668xf32>
    %c9 = arith.constant 9 : index
    %c0_15 = arith.constant 0 : index
    %30 = vector.load %arg13[%c9, %c0_15] : memref<75x668xf32, #tpu.memory_space<vmem>>, vector<3x668xf32>
    tpu.vector_store %arg13[%c9, %c0_15], %29 {strides = array<i32>} : memref<75x668xf32, #tpu.memory_space<vmem>>, vector<3x668xf32>,
    %31 = vector.extract_strided_slice %22 {offsets = [0, 4], sizes = [3, 668], strides = [1, 1]} : vector<3x784xf32> to vector<3x668xf32>
    %c12 = arith.constant 12 : index
    %c0_16 = arith.constant 0 : index
    %32 = vector.load %arg13[%c12, %c0_16] : memref<75x668xf32, #tpu.memory_space<vmem>>, vector<3x668xf32>
    tpu.vector_store %arg13[%c12, %c0_16], %31 {strides = array<i32>} : memref<75x668xf32, #tpu.memory_space<vmem>>, vector<3x668xf32>,
    %33 = vector.extract_strided_slice %22 {offsets = [0, 28], sizes = [3, 668], strides = [1, 1]} : vector<3x784xf32> to vector<3x668xf32>
    %c15 = arith.constant 15 : index
    %c0_17 = arith.constant 0 : index
    %34 = vector.load %arg13[%c15, %c0_17] : memref<75x668xf32, #tpu.memory_space<vmem>>, vector<3x668xf32>
    tpu.vector_store %arg13[%c15, %c0_17], %33 {strides = array<i32>} : memref<75x668xf32, #tpu.memory_space<vmem>>, vector<3x668xf32>,
    %35 = vector.extract_strided_slice %22 {offsets = [0, 29], sizes = [3, 668], strides = [1, 1]} : vector<3x784xf32> to vector<3x668xf32>
    %c18 = arith.constant 18 : index
    %c0_18 = arith.constant 0 : index
    %36 = vector.load %arg13[%c18, %c0_18] : memref<75x668xf32, #tpu.memory_space<vmem>>, vector<3x668xf32>
    tpu.vector_store %arg13[%c18, %c0_18], %35 {strides = array<i32>} : memref<75x668xf32, #tpu.memory_space<vmem>>, vector<3x668xf32>,
    %37 = vector.extract_strided_slice %22 {offsets = [0, 30], sizes = [3, 668], strides = [1, 1]} : vector<3x784xf32> to vector<3x668xf32>
    %c21 = arith.constant 21 : index
    %c0_19 = arith.constant 0 : index
    %38 = vector.load %arg13[%c21, %c0_19] : memref<75x668xf32, #tpu.memory_space<vmem>>, vector<3x668xf32>
    tpu.vector_store %arg13[%c21, %c0_19], %37 {strides = array<i32>} : memref<75x668xf32, #tpu.memory_space<vmem>>, vector<3x668xf32>,
    %39 = vector.extract_strided_slice %22 {offsets = [0, 31], sizes = [3, 668], strides = [1, 1]} : vector<3x784xf32> to vector<3x668xf32>
    %c24 = arith.constant 24 : index
    %c0_20 = arith.constant 0 : index
    %40 = vector.load %arg13[%c24, %c0_20] : memref<75x668xf32, #tpu.memory_space<vmem>>, vector<3x668xf32>
    tpu.vector_store %arg13[%c24, %c0_20], %39 {strides = array<i32>} : memref<75x668xf32, #tpu.memory_space<vmem>>, vector<3x668xf32>,
    %41 = vector.extract_strided_slice %22 {offsets = [0, 32], sizes = [3, 668], strides = [1, 1]} : vector<3x784xf32> to vector<3x668xf32>
    %c27 = arith.constant 27 : index
    %c0_21 = arith.constant 0 : index
    %42 = vector.load %arg13[%c27, %c0_21] : memref<75x668xf32, #tpu.memory_space<vmem>>, vector<3x668xf32>
    tpu.vector_store %arg13[%c27, %c0_21], %41 {strides = array<i32>} : memref<75x668xf32, #tpu.memory_space<vmem>>, vector<3x668xf32>,
    %43 = vector.extract_strided_slice %22 {offsets = [0, 56], sizes = [3, 668], strides = [1, 1]} : vector<3x784xf32> to vector<3x668xf32>
    %c30 = arith.constant 30 : index
    %c0_22 = arith.constant 0 : index
    %44 = vector.load %arg13[%c30, %c0_22] : memref<75x668xf32, #tpu.memory_space<vmem>>, vector<3x668xf32>
    tpu.vector_store %arg13[%c30, %c0_22], %43 {strides = array<i32>} : memref<75x668xf32, #tpu.memory_space<vmem>>, vector<3x668xf32>,
    %45 = vector.extract_strided_slice %22 {offsets = [0, 57], sizes = [3, 668], strides = [1, 1]} : vector<3x784xf32> to vector<3x668xf32>
    %c33 = arith.constant 33 : index
    %c0_23 = arith.constant 0 : index
    %46 = vector.load %arg13[%c33, %c0_23] : memref<75x668xf32, #tpu.memory_space<vmem>>, vector<3x668xf32>
    tpu.vector_store %arg13[%c33, %c0_23], %45 {strides = array<i32>} : memref<75x668xf32, #tpu.memory_space<vmem>>, vector<3x668xf32>,
    %47 = vector.extract_strided_slice %22 {offsets = [0, 58], sizes = [3, 668], strides = [1, 1]} : vector<3x784xf32> to vector<3x668xf32>
    %c36 = arith.constant 36 : index
    %c0_24 = arith.constant 0 : index
    %48 = vector.load %arg13[%c36, %c0_24] : memref<75x668xf32, #tpu.memory_space<vmem>>, vector<3x668xf32>
    tpu.vector_store %arg13[%c36, %c0_24], %47 {strides = array<i32>} : memref<75x668xf32, #tpu.memory_space<vmem>>, vector<3x668xf32>,
    %49 = vector.extract_strided_slice %22 {offsets = [0, 59], sizes = [3, 668], strides = [1, 1]} : vector<3x784xf32> to vector<3x668xf32>
    %c39 = arith.constant 39 : index
    %c0_25 = arith.constant 0 : index
    %50 = vector.load %arg13[%c39, %c0_25] : memref<75x668xf32, #tpu.memory_space<vmem>>, vector<3x668xf32>
    tpu.vector_store %arg13[%c39, %c0_25], %49 {strides = array<i32>} : memref<75x668xf32, #tpu.memory_space<vmem>>, vector<3x668xf32>,
    %51 = vector.extract_strided_slice %22 {offsets = [0, 60], sizes = [3, 668], strides = [1, 1]} : vector<3x784xf32> to vector<3x668xf32>
    %c42 = arith.constant 42 : index
    %c0_26 = arith.constant 0 : index
    %52 = vector.load %arg13[%c42, %c0_26] : memref<75x668xf32, #tpu.memory_space<vmem>>, vector<3x668xf32>
    tpu.vector_store %arg13[%c42, %c0_26], %51 {strides = array<i32>} : memref<75x668xf32, #tpu.memory_space<vmem>>, vector<3x668xf32>,
    %53 = vector.extract_strided_slice %22 {offsets = [0, 84], sizes = [3, 668], strides = [1, 1]} : vector<3x784xf32> to vector<3x668xf32>
    %c45 = arith.constant 45 : index
    %c0_27 = arith.constant 0 : index
    %54 = vector.load %arg13[%c45, %c0_27] : memref<75x668xf32, #tpu.memory_space<vmem>>, vector<3x668xf32>
    tpu.vector_store %arg13[%c45, %c0_27], %53 {strides = array<i32>} : memref<75x668xf32, #tpu.memory_space<vmem>>, vector<3x668xf32>,
    %55 = vector.extract_strided_slice %22 {offsets = [0, 85], sizes = [3, 668], strides = [1, 1]} : vector<3x784xf32> to vector<3x668xf32>
    %c48 = arith.constant 48 : index
    %c0_28 = arith.constant 0 : index
    %56 = vector.load %arg13[%c48, %c0_28] : memref<75x668xf32, #tpu.memory_space<vmem>>, vector<3x668xf32>
    tpu.vector_store %arg13[%c48, %c0_28], %55 {strides = array<i32>} : memref<75x668xf32, #tpu.memory_space<vmem>>, vector<3x668xf32>,
    %57 = vector.extract_strided_slice %22 {offsets = [0, 86], sizes = [3, 668], strides = [1, 1]} : vector<3x784xf32> to vector<3x668xf32>
    %c51 = arith.constant 51 : index
    %c0_29 = arith.constant 0 : index
    %58 = vector.load %arg13[%c51, %c0_29] : memref<75x668xf32, #tpu.memory_space<vmem>>, vector<3x668xf32>
    tpu.vector_store %arg13[%c51, %c0_29], %57 {strides = array<i32>} : memref<75x668xf32, #tpu.memory_space<vmem>>, vector<3x668xf32>,
    %59 = vector.extract_strided_slice %22 {offsets = [0, 87], sizes = [3, 668], strides = [1, 1]} : vector<3x784xf32> to vector<3x668xf32>
    %c54 = arith.constant 54 : index
    %c0_30 = arith.constant 0 : index
    %60 = vector.load %arg13[%c54, %c0_30] : memref<75x668xf32, #tpu.memory_space<vmem>>, vector<3x668xf32>
    tpu.vector_store %arg13[%c54, %c0_30], %59 {strides = array<i32>} : memref<75x668xf32, #tpu.memory_space<vmem>>, vector<3x668xf32>,
    %61 = vector.extract_strided_slice %22 {offsets = [0, 88], sizes = [3, 668], strides = [1, 1]} : vector<3x784xf32> to vector<3x668xf32>
    %c57 = arith.constant 57 : index
    %c0_31 = arith.constant 0 : index
    %62 = vector.load %arg13[%c57, %c0_31] : memref<75x668xf32, #tpu.memory_space<vmem>>, vector<3x668xf32>
    tpu.vector_store %arg13[%c57, %c0_31], %61 {strides = array<i32>} : memref<75x668xf32, #tpu.memory_space<vmem>>, vector<3x668xf32>,
    %63 = vector.extract_strided_slice %22 {offsets = [0, 112], sizes = [3, 668], strides = [1, 1]} : vector<3x784xf32> to vector<3x668xf32>
    %c60 = arith.constant 60 : index
    %c0_32 = arith.constant 0 : index
    %64 = vector.load %arg13[%c60, %c0_32] : memref<75x668xf32, #tpu.memory_space<vmem>>, vector<3x668xf32>
    tpu.vector_store %arg13[%c60, %c0_32], %63 {strides = array<i32>} : memref<75x668xf32, #tpu.memory_space<vmem>>, vector<3x668xf32>,
    %65 = vector.extract_strided_slice %22 {offsets = [0, 113], sizes = [3, 668], strides = [1, 1]} : vector<3x784xf32> to vector<3x668xf32>
    %c63 = arith.constant 63 : index
    %c0_33 = arith.constant 0 : index
    %66 = vector.load %arg13[%c63, %c0_33] : memref<75x668xf32, #tpu.memory_space<vmem>>, vector<3x668xf32>
    tpu.vector_store %arg13[%c63, %c0_33], %65 {strides = array<i32>} : memref<75x668xf32, #tpu.memory_space<vmem>>, vector<3x668xf32>,
    %67 = vector.extract_strided_slice %22 {offsets = [0, 114], sizes = [3, 668], strides = [1, 1]} : vector<3x784xf32> to vector<3x668xf32>
    %c66 = arith.constant 66 : index
    %c0_34 = arith.constant 0 : index
    %68 = vector.load %arg13[%c66, %c0_34] : memref<75x668xf32, #tpu.memory_space<vmem>>, vector<3x668xf32>
    tpu.vector_store %arg13[%c66, %c0_34], %67 {strides = array<i32>} : memref<75x668xf32, #tpu.memory_space<vmem>>, vector<3x668xf32>,
    %69 = vector.extract_strided_slice %22 {offsets = [0, 115], sizes = [3, 668], strides = [1, 1]} : vector<3x784xf32> to vector<3x668xf32>
    %c69 = arith.constant 69 : index
    %c0_35 = arith.constant 0 : index
    %70 = vector.load %arg13[%c69, %c0_35] : memref<75x668xf32, #tpu.memory_space<vmem>>, vector<3x668xf32>
    tpu.vector_store %arg13[%c69, %c0_35], %69 {strides = array<i32>} : memref<75x668xf32, #tpu.memory_space<vmem>>, vector<3x668xf32>,
    %71 = vector.extract_strided_slice %22 {offsets = [0, 116], sizes = [3, 668], strides = [1, 1]} : vector<3x784xf32> to vector<3x668xf32>
    %c72 = arith.constant 72 : index
    %c0_36 = arith.constant 0 : index
    %72 = vector.load %arg13[%c72, %c0_36] : memref<75x668xf32, #tpu.memory_space<vmem>>, vector<3x668xf32>
    tpu.vector_store %arg13[%c72, %c0_36], %71 {strides = array<i32>} : memref<75x668xf32, #tpu.memory_space<vmem>>, vector<3x668xf32>,
    %c0_37 = arith.constant 0 : index
    %c0_38 = arith.constant 0 : index
    %73 = vector.load %arg13[%c0_37, %c0_38] : memref<75x668xf32, #tpu.memory_space<vmem>>, vector<75x668xf32>
    %cst = arith.constant dense<0.000000e+00> : vector<6x668xf32>
    %74 = tpu.matmul %0, %73, %cst {dimension_numbers = #tpu.dot_dimension_numbers<[1], [0], [0], [1], [0, 0, 1, 1], [], []>} : vector<6x75xf32>, vector<75x668xf32>, vector<6x668xf32> -> vector<6x668xf32>
    %75 = vector.broadcast %1 : vector<6x1xf32> to vector<6x668xf32>
    %76 = arith.addf %74, %75 : vector<6x668xf32>
    %cst_39 = arith.constant 0.000000e+00 : f32
    %77 = vector.broadcast %cst_39 : f32 to vector<6x668xf32>
    %78 = arith.maximumf %76, %77 : vector<6x668xf32>
    %c0_40 = arith.constant 0 : index
    %c0_41 = arith.constant 0 : index
    %79 = vector.load %arg14[%c0_40, %c0_41] : memref<6x668xf32, #tpu.memory_space<vmem>>, vector<6x668xf32>
    tpu.vector_store %arg14[%c0_40, %c0_41], %78 {strides = array<i32>} : memref<6x668xf32, #tpu.memory_space<vmem>>, vector<6x668xf32>,
    %c0_42 = arith.constant 0 : index
    %c0_43 = arith.constant 0 : index
    %80 = vector.load %arg14[%c0_42, %c0_43] : memref<6x668xf32, #tpu.memory_space<vmem>>, vector<6x23xf32>
    %c0_44 = arith.constant 0 : index
    %c1 = arith.constant 1 : index
    %81 = vector.load %arg14[%c0_44, %c1] : memref<6x668xf32, #tpu.memory_space<vmem>>, vector<6x23xf32>
    %82 = arith.maximumf %80, %81 : vector<6x23xf32>
    %c0_45 = arith.constant 0 : index
    %c28 = arith.constant 28 : index
    %83 = vector.load %arg14[%c0_45, %c28] : memref<6x668xf32, #tpu.memory_space<vmem>>, vector<6x23xf32>
    %c0_46 = arith.constant 0 : index
    %c29 = arith.constant 29 : index
    %84 = vector.load %arg14[%c0_46, %c29] : memref<6x668xf32, #tpu.memory_space<vmem>>, vector<6x23xf32>
    %85 = arith.maximumf %83, %84 : vector<6x23xf32>
    %86 = arith.maximumf %82, %85 : vector<6x23xf32>
    %cst_47 = arith.constant dense<0.000000e+00> : vector<6x12xf32>
    %87 = tpu.matmul %86, %10, %cst_47 {dimension_numbers = #tpu.dot_dimension_numbers<[1], [0], [0], [1], [0, 0, 1, 1], [], []>} : vector<6x23xf32>, vector<23x12xf32>, vector<6x12xf32> -> vector<6x12xf32>
    %c0_48 = arith.constant 0 : index
    %c0_49 = arith.constant 0 : index
    %88 = vector.load %arg15[%c0_48, %c0_49] : memref<6x144xf32, #tpu.memory_space<vmem>>, vector<6x12xf32>
    tpu.vector_store %arg15[%c0_48, %c0_49], %87 {strides = array<i32>} : memref<6x144xf32, #tpu.memory_space<vmem>>, vector<6x12xf32>,
    %c0_50 = arith.constant 0 : index
    %c56 = arith.constant 56 : index
    %89 = vector.load %arg14[%c0_50, %c56] : memref<6x668xf32, #tpu.memory_space<vmem>>, vector<6x23xf32>
    %c0_51 = arith.constant 0 : index
    %c57_52 = arith.constant 57 : index
    %90 = vector.load %arg14[%c0_51, %c57_52] : memref<6x668xf32, #tpu.memory_space<vmem>>, vector<6x23xf32>
    %91 = arith.maximumf %89, %90 : vector<6x23xf32>
    %c0_53 = arith.constant 0 : index
    %c84 = arith.constant 84 : index
    %92 = vector.load %arg14[%c0_53, %c84] : memref<6x668xf32, #tpu.memory_space<vmem>>, vector<6x23xf32>
    %c0_54 = arith.constant 0 : index
    %c85 = arith.constant 85 : index
    %93 = vector.load %arg14[%c0_54, %c85] : memref<6x668xf32, #tpu.memory_space<vmem>>, vector<6x23xf32>
    %94 = arith.maximumf %92, %93 : vector<6x23xf32>
    %95 = arith.maximumf %91, %94 : vector<6x23xf32>
    %cst_55 = arith.constant dense<0.000000e+00> : vector<6x12xf32>
    %96 = tpu.matmul %95, %10, %cst_55 {dimension_numbers = #tpu.dot_dimension_numbers<[1], [0], [0], [1], [0, 0, 1, 1], [], []>} : vector<6x23xf32>, vector<23x12xf32>, vector<6x12xf32> -> vector<6x12xf32>
    %c0_56 = arith.constant 0 : index
    %c12_57 = arith.constant 12 : index
    %97 = vector.load %arg15[%c0_56, %c12_57] : memref<6x144xf32, #tpu.memory_space<vmem>>, vector<6x12xf32>
    tpu.vector_store %arg15[%c0_56, %c12_57], %96 {strides = array<i32>} : memref<6x144xf32, #tpu.memory_space<vmem>>, vector<6x12xf32>,
    %c0_58 = arith.constant 0 : index
    %c112 = arith.constant 112 : index
    %98 = vector.load %arg14[%c0_58, %c112] : memref<6x668xf32, #tpu.memory_space<vmem>>, vector<6x23xf32>
    %c0_59 = arith.constant 0 : index
    %c113 = arith.constant 113 : index
    %99 = vector.load %arg14[%c0_59, %c113] : memref<6x668xf32, #tpu.memory_space<vmem>>, vector<6x23xf32>
    %100 = arith.maximumf %98, %99 : vector<6x23xf32>
    %c0_60 = arith.constant 0 : index
    %c140 = arith.constant 140 : index
    %101 = vector.load %arg14[%c0_60, %c140] : memref<6x668xf32, #tpu.memory_space<vmem>>, vector<6x23xf32>
    %c0_61 = arith.constant 0 : index
    %c141 = arith.constant 141 : index
    %102 = vector.load %arg14[%c0_61, %c141] : memref<6x668xf32, #tpu.memory_space<vmem>>, vector<6x23xf32>
    %103 = arith.maximumf %101, %102 : vector<6x23xf32>
    %104 = arith.maximumf %100, %103 : vector<6x23xf32>
    %cst_62 = arith.constant dense<0.000000e+00> : vector<6x12xf32>
    %105 = tpu.matmul %104, %10, %cst_62 {dimension_numbers = #tpu.dot_dimension_numbers<[1], [0], [0], [1], [0, 0, 1, 1], [], []>} : vector<6x23xf32>, vector<23x12xf32>, vector<6x12xf32> -> vector<6x12xf32>
    %c0_63 = arith.constant 0 : index
    %c24_64 = arith.constant 24 : index
    %106 = vector.load %arg15[%c0_63, %c24_64] : memref<6x144xf32, #tpu.memory_space<vmem>>, vector<6x12xf32>
    tpu.vector_store %arg15[%c0_63, %c24_64], %105 {strides = array<i32>} : memref<6x144xf32, #tpu.memory_space<vmem>>, vector<6x12xf32>,
    %c0_65 = arith.constant 0 : index
    %c168 = arith.constant 168 : index
    %107 = vector.load %arg14[%c0_65, %c168] : memref<6x668xf32, #tpu.memory_space<vmem>>, vector<6x23xf32>
    %c0_66 = arith.constant 0 : index
    %c169 = arith.constant 169 : index
    %108 = vector.load %arg14[%c0_66, %c169] : memref<6x668xf32, #tpu.memory_space<vmem>>, vector<6x23xf32>
    %109 = arith.maximumf %107, %108 : vector<6x23xf32>
    %c0_67 = arith.constant 0 : index
    %c196 = arith.constant 196 : index
    %110 = vector.load %arg14[%c0_67, %c196] : memref<6x668xf32, #tpu.memory_space<vmem>>, vector<6x23xf32>
    %c0_68 = arith.constant 0 : index
    %c197 = arith.constant 197 : index
    %111 = vector.load %arg14[%c0_68, %c197] : memref<6x668xf32, #tpu.memory_space<vmem>>, vector<6x23xf32>
    %112 = arith.maximumf %110, %111 : vector<6x23xf32>
    %113 = arith.maximumf %109, %112 : vector<6x23xf32>
    %cst_69 = arith.constant dense<0.000000e+00> : vector<6x12xf32>
    %114 = tpu.matmul %113, %10, %cst_69 {dimension_numbers = #tpu.dot_dimension_numbers<[1], [0], [0], [1], [0, 0, 1, 1], [], []>} : vector<6x23xf32>, vector<23x12xf32>, vector<6x12xf32> -> vector<6x12xf32>
    %c0_70 = arith.constant 0 : index
    %c36_71 = arith.constant 36 : index
    %115 = vector.load %arg15[%c0_70, %c36_71] : memref<6x144xf32, #tpu.memory_space<vmem>>, vector<6x12xf32>
    tpu.vector_store %arg15[%c0_70, %c36_71], %114 {strides = array<i32>} : memref<6x144xf32, #tpu.memory_space<vmem>>, vector<6x12xf32>,
    %c0_72 = arith.constant 0 : index
    %c224 = arith.constant 224 : index
    %116 = vector.load %arg14[%c0_72, %c224] : memref<6x668xf32, #tpu.memory_space<vmem>>, vector<6x23xf32>
    %c0_73 = arith.constant 0 : index
    %c225 = arith.constant 225 : index
    %117 = vector.load %arg14[%c0_73, %c225] : memref<6x668xf32, #tpu.memory_space<vmem>>, vector<6x23xf32>
    %118 = arith.maximumf %116, %117 : vector<6x23xf32>
    %c0_74 = arith.constant 0 : index
    %c252 = arith.constant 252 : index
    %119 = vector.load %arg14[%c0_74, %c252] : memref<6x668xf32, #tpu.memory_space<vmem>>, vector<6x23xf32>
    %c0_75 = arith.constant 0 : index
    %c253 = arith.constant 253 : index
    %120 = vector.load %arg14[%c0_75, %c253] : memref<6x668xf32, #tpu.memory_space<vmem>>, vector<6x23xf32>
    %121 = arith.maximumf %119, %120 : vector<6x23xf32>
    %122 = arith.maximumf %118, %121 : vector<6x23xf32>
    %cst_76 = arith.constant dense<0.000000e+00> : vector<6x12xf32>
    %123 = tpu.matmul %122, %10, %cst_76 {dimension_numbers = #tpu.dot_dimension_numbers<[1], [0], [0], [1], [0, 0, 1, 1], [], []>} : vector<6x23xf32>, vector<23x12xf32>, vector<6x12xf32> -> vector<6x12xf32>
    %c0_77 = arith.constant 0 : index
    %c48_78 = arith.constant 48 : index
    %124 = vector.load %arg15[%c0_77, %c48_78] : memref<6x144xf32, #tpu.memory_space<vmem>>, vector<6x12xf32>
    tpu.vector_store %arg15[%c0_77, %c48_78], %123 {strides = array<i32>} : memref<6x144xf32, #tpu.memory_space<vmem>>, vector<6x12xf32>,
    %c0_79 = arith.constant 0 : index
    %c280 = arith.constant 280 : index
    %125 = vector.load %arg14[%c0_79, %c280] : memref<6x668xf32, #tpu.memory_space<vmem>>, vector<6x23xf32>
    %c0_80 = arith.constant 0 : index
    %c281 = arith.constant 281 : index
    %126 = vector.load %arg14[%c0_80, %c281] : memref<6x668xf32, #tpu.memory_space<vmem>>, vector<6x23xf32>
    %127 = arith.maximumf %125, %126 : vector<6x23xf32>
    %c0_81 = arith.constant 0 : index
    %c308 = arith.constant 308 : index
    %128 = vector.load %arg14[%c0_81, %c308] : memref<6x668xf32, #tpu.memory_space<vmem>>, vector<6x23xf32>
    %c0_82 = arith.constant 0 : index
    %c309 = arith.constant 309 : index
    %129 = vector.load %arg14[%c0_82, %c309] : memref<6x668xf32, #tpu.memory_space<vmem>>, vector<6x23xf32>
    %130 = arith.maximumf %128, %129 : vector<6x23xf32>
    %131 = arith.maximumf %127, %130 : vector<6x23xf32>
    %cst_83 = arith.constant dense<0.000000e+00> : vector<6x12xf32>
    %132 = tpu.matmul %131, %10, %cst_83 {dimension_numbers = #tpu.dot_dimension_numbers<[1], [0], [0], [1], [0, 0, 1, 1], [], []>} : vector<6x23xf32>, vector<23x12xf32>, vector<6x12xf32> -> vector<6x12xf32>
    %c0_84 = arith.constant 0 : index
    %c60_85 = arith.constant 60 : index
    %133 = vector.load %arg15[%c0_84, %c60_85] : memref<6x144xf32, #tpu.memory_space<vmem>>, vector<6x12xf32>
    tpu.vector_store %arg15[%c0_84, %c60_85], %132 {strides = array<i32>} : memref<6x144xf32, #tpu.memory_space<vmem>>, vector<6x12xf32>,
    %c0_86 = arith.constant 0 : index
    %c336 = arith.constant 336 : index
    %134 = vector.load %arg14[%c0_86, %c336] : memref<6x668xf32, #tpu.memory_space<vmem>>, vector<6x23xf32>
    %c0_87 = arith.constant 0 : index
    %c337 = arith.constant 337 : index
    %135 = vector.load %arg14[%c0_87, %c337] : memref<6x668xf32, #tpu.memory_space<vmem>>, vector<6x23xf32>
    %136 = arith.maximumf %134, %135 : vector<6x23xf32>
    %c0_88 = arith.constant 0 : index
    %c364 = arith.constant 364 : index
    %137 = vector.load %arg14[%c0_88, %c364] : memref<6x668xf32, #tpu.memory_space<vmem>>, vector<6x23xf32>
    %c0_89 = arith.constant 0 : index
    %c365 = arith.constant 365 : index
    %138 = vector.load %arg14[%c0_89, %c365] : memref<6x668xf32, #tpu.memory_space<vmem>>, vector<6x23xf32>
    %139 = arith.maximumf %137, %138 : vector<6x23xf32>
    %140 = arith.maximumf %136, %139 : vector<6x23xf32>
    %cst_90 = arith.constant dense<0.000000e+00> : vector<6x12xf32>
    %141 = tpu.matmul %140, %10, %cst_90 {dimension_numbers = #tpu.dot_dimension_numbers<[1], [0], [0], [1], [0, 0, 1, 1], [], []>} : vector<6x23xf32>, vector<23x12xf32>, vector<6x12xf32> -> vector<6x12xf32>
    %c0_91 = arith.constant 0 : index
    %c72_92 = arith.constant 72 : index
    %142 = vector.load %arg15[%c0_91, %c72_92] : memref<6x144xf32, #tpu.memory_space<vmem>>, vector<6x12xf32>
    tpu.vector_store %arg15[%c0_91, %c72_92], %141 {strides = array<i32>} : memref<6x144xf32, #tpu.memory_space<vmem>>, vector<6x12xf32>,
    %c0_93 = arith.constant 0 : index
    %c392 = arith.constant 392 : index
    %143 = vector.load %arg14[%c0_93, %c392] : memref<6x668xf32, #tpu.memory_space<vmem>>, vector<6x23xf32>
    %c0_94 = arith.constant 0 : index
    %c393 = arith.constant 393 : index
    %144 = vector.load %arg14[%c0_94, %c393] : memref<6x668xf32, #tpu.memory_space<vmem>>, vector<6x23xf32>
    %145 = arith.maximumf %143, %144 : vector<6x23xf32>
    %c0_95 = arith.constant 0 : index
    %c420 = arith.constant 420 : index
    %146 = vector.load %arg14[%c0_95, %c420] : memref<6x668xf32, #tpu.memory_space<vmem>>, vector<6x23xf32>
    %c0_96 = arith.constant 0 : index
    %c421 = arith.constant 421 : index
    %147 = vector.load %arg14[%c0_96, %c421] : memref<6x668xf32, #tpu.memory_space<vmem>>, vector<6x23xf32>
    %148 = arith.maximumf %146, %147 : vector<6x23xf32>
    %149 = arith.maximumf %145, %148 : vector<6x23xf32>
    %cst_97 = arith.constant dense<0.000000e+00> : vector<6x12xf32>
    %150 = tpu.matmul %149, %10, %cst_97 {dimension_numbers = #tpu.dot_dimension_numbers<[1], [0], [0], [1], [0, 0, 1, 1], [], []>} : vector<6x23xf32>, vector<23x12xf32>, vector<6x12xf32> -> vector<6x12xf32>
    %c0_98 = arith.constant 0 : index
    %c84_99 = arith.constant 84 : index
    %151 = vector.load %arg15[%c0_98, %c84_99] : memref<6x144xf32, #tpu.memory_space<vmem>>, vector<6x12xf32>
    tpu.vector_store %arg15[%c0_98, %c84_99], %150 {strides = array<i32>} : memref<6x144xf32, #tpu.memory_space<vmem>>, vector<6x12xf32>,
    %c0_100 = arith.constant 0 : index
    %c448 = arith.constant 448 : index
    %152 = vector.load %arg14[%c0_100, %c448] : memref<6x668xf32, #tpu.memory_space<vmem>>, vector<6x23xf32>
    %c0_101 = arith.constant 0 : index
    %c449 = arith.constant 449 : index
    %153 = vector.load %arg14[%c0_101, %c449] : memref<6x668xf32, #tpu.memory_space<vmem>>, vector<6x23xf32>
    %154 = arith.maximumf %152, %153 : vector<6x23xf32>
    %c0_102 = arith.constant 0 : index
    %c476 = arith.constant 476 : index
    %155 = vector.load %arg14[%c0_102, %c476] : memref<6x668xf32, #tpu.memory_space<vmem>>, vector<6x23xf32>
    %c0_103 = arith.constant 0 : index
    %c477 = arith.constant 477 : index
    %156 = vector.load %arg14[%c0_103, %c477] : memref<6x668xf32, #tpu.memory_space<vmem>>, vector<6x23xf32>
    %157 = arith.maximumf %155, %156 : vector<6x23xf32>
    %158 = arith.maximumf %154, %157 : vector<6x23xf32>
    %cst_104 = arith.constant dense<0.000000e+00> : vector<6x12xf32>
    %159 = tpu.matmul %158, %10, %cst_104 {dimension_numbers = #tpu.dot_dimension_numbers<[1], [0], [0], [1], [0, 0, 1, 1], [], []>} : vector<6x23xf32>, vector<23x12xf32>, vector<6x12xf32> -> vector<6x12xf32>
    %c0_105 = arith.constant 0 : index
    %c96 = arith.constant 96 : index
    %160 = vector.load %arg15[%c0_105, %c96] : memref<6x144xf32, #tpu.memory_space<vmem>>, vector<6x12xf32>
    tpu.vector_store %arg15[%c0_105, %c96], %159 {strides = array<i32>} : memref<6x144xf32, #tpu.memory_space<vmem>>, vector<6x12xf32>,
    %c0_106 = arith.constant 0 : index
    %c504 = arith.constant 504 : index
    %161 = vector.load %arg14[%c0_106, %c504] : memref<6x668xf32, #tpu.memory_space<vmem>>, vector<6x23xf32>
    %c0_107 = arith.constant 0 : index
    %c505 = arith.constant 505 : index
    %162 = vector.load %arg14[%c0_107, %c505] : memref<6x668xf32, #tpu.memory_space<vmem>>, vector<6x23xf32>
    %163 = arith.maximumf %161, %162 : vector<6x23xf32>
    %c0_108 = arith.constant 0 : index
    %c532 = arith.constant 532 : index
    %164 = vector.load %arg14[%c0_108, %c532] : memref<6x668xf32, #tpu.memory_space<vmem>>, vector<6x23xf32>
    %c0_109 = arith.constant 0 : index
    %c533 = arith.constant 533 : index
    %165 = vector.load %arg14[%c0_109, %c533] : memref<6x668xf32, #tpu.memory_space<vmem>>, vector<6x23xf32>
    %166 = arith.maximumf %164, %165 : vector<6x23xf32>
    %167 = arith.maximumf %163, %166 : vector<6x23xf32>
    %cst_110 = arith.constant dense<0.000000e+00> : vector<6x12xf32>
    %168 = tpu.matmul %167, %10, %cst_110 {dimension_numbers = #tpu.dot_dimension_numbers<[1], [0], [0], [1], [0, 0, 1, 1], [], []>} : vector<6x23xf32>, vector<23x12xf32>, vector<6x12xf32> -> vector<6x12xf32>
    %c0_111 = arith.constant 0 : index
    %c108 = arith.constant 108 : index
    %169 = vector.load %arg15[%c0_111, %c108] : memref<6x144xf32, #tpu.memory_space<vmem>>, vector<6x12xf32>
    tpu.vector_store %arg15[%c0_111, %c108], %168 {strides = array<i32>} : memref<6x144xf32, #tpu.memory_space<vmem>>, vector<6x12xf32>,
    %c0_112 = arith.constant 0 : index
    %c560 = arith.constant 560 : index
    %170 = vector.load %arg14[%c0_112, %c560] : memref<6x668xf32, #tpu.memory_space<vmem>>, vector<6x23xf32>
    %c0_113 = arith.constant 0 : index
    %c561 = arith.constant 561 : index
    %171 = vector.load %arg14[%c0_113, %c561] : memref<6x668xf32, #tpu.memory_space<vmem>>, vector<6x23xf32>
    %172 = arith.maximumf %170, %171 : vector<6x23xf32>
    %c0_114 = arith.constant 0 : index
    %c588 = arith.constant 588 : index
    %173 = vector.load %arg14[%c0_114, %c588] : memref<6x668xf32, #tpu.memory_space<vmem>>, vector<6x23xf32>
    %c0_115 = arith.constant 0 : index
    %c589 = arith.constant 589 : index
    %174 = vector.load %arg14[%c0_115, %c589] : memref<6x668xf32, #tpu.memory_space<vmem>>, vector<6x23xf32>
    %175 = arith.maximumf %173, %174 : vector<6x23xf32>
    %176 = arith.maximumf %172, %175 : vector<6x23xf32>
    %cst_116 = arith.constant dense<0.000000e+00> : vector<6x12xf32>
    %177 = tpu.matmul %176, %10, %cst_116 {dimension_numbers = #tpu.dot_dimension_numbers<[1], [0], [0], [1], [0, 0, 1, 1], [], []>} : vector<6x23xf32>, vector<23x12xf32>, vector<6x12xf32> -> vector<6x12xf32>
    %c0_117 = arith.constant 0 : index
    %c120 = arith.constant 120 : index
    %178 = vector.load %arg15[%c0_117, %c120] : memref<6x144xf32, #tpu.memory_space<vmem>>, vector<6x12xf32>
    tpu.vector_store %arg15[%c0_117, %c120], %177 {strides = array<i32>} : memref<6x144xf32, #tpu.memory_space<vmem>>, vector<6x12xf32>,
    %c0_118 = arith.constant 0 : index
    %c616 = arith.constant 616 : index
    %179 = vector.load %arg14[%c0_118, %c616] : memref<6x668xf32, #tpu.memory_space<vmem>>, vector<6x23xf32>
    %c0_119 = arith.constant 0 : index
    %c617 = arith.constant 617 : index
    %180 = vector.load %arg14[%c0_119, %c617] : memref<6x668xf32, #tpu.memory_space<vmem>>, vector<6x23xf32>
    %181 = arith.maximumf %179, %180 : vector<6x23xf32>
    %c0_120 = arith.constant 0 : index
    %c644 = arith.constant 644 : index
    %182 = vector.load %arg14[%c0_120, %c644] : memref<6x668xf32, #tpu.memory_space<vmem>>, vector<6x23xf32>
    %c0_121 = arith.constant 0 : index
    %c645 = arith.constant 645 : index
    %183 = vector.load %arg14[%c0_121, %c645] : memref<6x668xf32, #tpu.memory_space<vmem>>, vector<6x23xf32>
    %184 = arith.maximumf %182, %183 : vector<6x23xf32>
    %185 = arith.maximumf %181, %184 : vector<6x23xf32>
    %cst_122 = arith.constant dense<0.000000e+00> : vector<6x12xf32>
    %186 = tpu.matmul %185, %10, %cst_122 {dimension_numbers = #tpu.dot_dimension_numbers<[1], [0], [0], [1], [0, 0, 1, 1], [], []>} : vector<6x23xf32>, vector<23x12xf32>, vector<6x12xf32> -> vector<6x12xf32>
    %c0_123 = arith.constant 0 : index
    %c132 = arith.constant 132 : index
    %187 = vector.load %arg15[%c0_123, %c132] : memref<6x144xf32, #tpu.memory_space<vmem>>, vector<6x12xf32>
    tpu.vector_store %arg15[%c0_123, %c132], %186 {strides = array<i32>} : memref<6x144xf32, #tpu.memory_space<vmem>>, vector<6x12xf32>,
    %c0_124 = arith.constant 0 : index
    %c0_125 = arith.constant 0 : index
    %188 = vector.load %arg15[%c0_124, %c0_125] : memref<6x144xf32, #tpu.memory_space<vmem>>, vector<6x92xf32>
    %c0_126 = arith.constant 0 : index
    %c0_127 = arith.constant 0 : index
    %189 = vector.load %arg16[%c0_126, %c0_127] : memref<150x92xf32, #tpu.memory_space<vmem>>, vector<6x92xf32>
    tpu.vector_store %arg16[%c0_126, %c0_127], %188 {strides = array<i32>} : memref<150x92xf32, #tpu.memory_space<vmem>>, vector<6x92xf32>,
    %c0_128 = arith.constant 0 : index
    %c1_129 = arith.constant 1 : index
    %190 = vector.load %arg15[%c0_128, %c1_129] : memref<6x144xf32, #tpu.memory_space<vmem>>, vector<6x92xf32>
    %c6_130 = arith.constant 6 : index
    %c0_131 = arith.constant 0 : index
    %191 = vector.load %arg16[%c6_130, %c0_131] : memref<150x92xf32, #tpu.memory_space<vmem>>, vector<6x92xf32>
    tpu.vector_store %arg16[%c6_130, %c0_131], %190 {strides = array<i32>} : memref<150x92xf32, #tpu.memory_space<vmem>>, vector<6x92xf32>,
    %c0_132 = arith.constant 0 : index
    %c2 = arith.constant 2 : index
    %192 = vector.load %arg15[%c0_132, %c2] : memref<6x144xf32, #tpu.memory_space<vmem>>, vector<6x92xf32>
    %c12_133 = arith.constant 12 : index
    %c0_134 = arith.constant 0 : index
    %193 = vector.load %arg16[%c12_133, %c0_134] : memref<150x92xf32, #tpu.memory_space<vmem>>, vector<6x92xf32>
    tpu.vector_store %arg16[%c12_133, %c0_134], %192 {strides = array<i32>} : memref<150x92xf32, #tpu.memory_space<vmem>>, vector<6x92xf32>,
    %c0_135 = arith.constant 0 : index
    %c3_136 = arith.constant 3 : index
    %194 = vector.load %arg15[%c0_135, %c3_136] : memref<6x144xf32, #tpu.memory_space<vmem>>, vector<6x92xf32>
    %c18_137 = arith.constant 18 : index
    %c0_138 = arith.constant 0 : index
    %195 = vector.load %arg16[%c18_137, %c0_138] : memref<150x92xf32, #tpu.memory_space<vmem>>, vector<6x92xf32>
    tpu.vector_store %arg16[%c18_137, %c0_138], %194 {strides = array<i32>} : memref<150x92xf32, #tpu.memory_space<vmem>>, vector<6x92xf32>,
    %c0_139 = arith.constant 0 : index
    %c4 = arith.constant 4 : index
    %196 = vector.load %arg15[%c0_139, %c4] : memref<6x144xf32, #tpu.memory_space<vmem>>, vector<6x92xf32>
    %c24_140 = arith.constant 24 : index
    %c0_141 = arith.constant 0 : index
    %197 = vector.load %arg16[%c24_140, %c0_141] : memref<150x92xf32, #tpu.memory_space<vmem>>, vector<6x92xf32>
    tpu.vector_store %arg16[%c24_140, %c0_141], %196 {strides = array<i32>} : memref<150x92xf32, #tpu.memory_space<vmem>>, vector<6x92xf32>,
    %c0_142 = arith.constant 0 : index
    %c12_143 = arith.constant 12 : index
    %198 = vector.load %arg15[%c0_142, %c12_143] : memref<6x144xf32, #tpu.memory_space<vmem>>, vector<6x92xf32>
    %c30_144 = arith.constant 30 : index
    %c0_145 = arith.constant 0 : index
    %199 = vector.load %arg16[%c30_144, %c0_145] : memref<150x92xf32, #tpu.memory_space<vmem>>, vector<6x92xf32>
    tpu.vector_store %arg16[%c30_144, %c0_145], %198 {strides = array<i32>} : memref<150x92xf32, #tpu.memory_space<vmem>>, vector<6x92xf32>,
    %c0_146 = arith.constant 0 : index
    %c13 = arith.constant 13 : index
    %200 = vector.load %arg15[%c0_146, %c13] : memref<6x144xf32, #tpu.memory_space<vmem>>, vector<6x92xf32>
    %c36_147 = arith.constant 36 : index
    %c0_148 = arith.constant 0 : index
    %201 = vector.load %arg16[%c36_147, %c0_148] : memref<150x92xf32, #tpu.memory_space<vmem>>, vector<6x92xf32>
    tpu.vector_store %arg16[%c36_147, %c0_148], %200 {strides = array<i32>} : memref<150x92xf32, #tpu.memory_space<vmem>>, vector<6x92xf32>,
    %c0_149 = arith.constant 0 : index
    %c14 = arith.constant 14 : index
    %202 = vector.load %arg15[%c0_149, %c14] : memref<6x144xf32, #tpu.memory_space<vmem>>, vector<6x92xf32>
    %c42_150 = arith.constant 42 : index
    %c0_151 = arith.constant 0 : index
    %203 = vector.load %arg16[%c42_150, %c0_151] : memref<150x92xf32, #tpu.memory_space<vmem>>, vector<6x92xf32>
    tpu.vector_store %arg16[%c42_150, %c0_151], %202 {strides = array<i32>} : memref<150x92xf32, #tpu.memory_space<vmem>>, vector<6x92xf32>,
    %c0_152 = arith.constant 0 : index
    %c15_153 = arith.constant 15 : index
    %204 = vector.load %arg15[%c0_152, %c15_153] : memref<6x144xf32, #tpu.memory_space<vmem>>, vector<6x92xf32>
    %c48_154 = arith.constant 48 : index
    %c0_155 = arith.constant 0 : index
    %205 = vector.load %arg16[%c48_154, %c0_155] : memref<150x92xf32, #tpu.memory_space<vmem>>, vector<6x92xf32>
    tpu.vector_store %arg16[%c48_154, %c0_155], %204 {strides = array<i32>} : memref<150x92xf32, #tpu.memory_space<vmem>>, vector<6x92xf32>,
    %c0_156 = arith.constant 0 : index
    %c16 = arith.constant 16 : index
    %206 = vector.load %arg15[%c0_156, %c16] : memref<6x144xf32, #tpu.memory_space<vmem>>, vector<6x92xf32>
    %c54_157 = arith.constant 54 : index
    %c0_158 = arith.constant 0 : index
    %207 = vector.load %arg16[%c54_157, %c0_158] : memref<150x92xf32, #tpu.memory_space<vmem>>, vector<6x92xf32>
    tpu.vector_store %arg16[%c54_157, %c0_158], %206 {strides = array<i32>} : memref<150x92xf32, #tpu.memory_space<vmem>>, vector<6x92xf32>,
    %c0_159 = arith.constant 0 : index
    %c24_160 = arith.constant 24 : index
    %208 = vector.load %arg15[%c0_159, %c24_160] : memref<6x144xf32, #tpu.memory_space<vmem>>, vector<6x92xf32>
    %c60_161 = arith.constant 60 : index
    %c0_162 = arith.constant 0 : index
    %209 = vector.load %arg16[%c60_161, %c0_162] : memref<150x92xf32, #tpu.memory_space<vmem>>, vector<6x92xf32>
    tpu.vector_store %arg16[%c60_161, %c0_162], %208 {strides = array<i32>} : memref<150x92xf32, #tpu.memory_space<vmem>>, vector<6x92xf32>,
    %c0_163 = arith.constant 0 : index
    %c25 = arith.constant 25 : index
    %210 = vector.load %arg15[%c0_163, %c25] : memref<6x144xf32, #tpu.memory_space<vmem>>, vector<6x92xf32>
    %c66_164 = arith.constant 66 : index
    %c0_165 = arith.constant 0 : index
    %211 = vector.load %arg16[%c66_164, %c0_165] : memref<150x92xf32, #tpu.memory_space<vmem>>, vector<6x92xf32>
    tpu.vector_store %arg16[%c66_164, %c0_165], %210 {strides = array<i32>} : memref<150x92xf32, #tpu.memory_space<vmem>>, vector<6x92xf32>,
    %c0_166 = arith.constant 0 : index
    %c26 = arith.constant 26 : index
    %212 = vector.load %arg15[%c0_166, %c26] : memref<6x144xf32, #tpu.memory_space<vmem>>, vector<6x92xf32>
    %c72_167 = arith.constant 72 : index
    %c0_168 = arith.constant 0 : index
    %213 = vector.load %arg16[%c72_167, %c0_168] : memref<150x92xf32, #tpu.memory_space<vmem>>, vector<6x92xf32>
    tpu.vector_store %arg16[%c72_167, %c0_168], %212 {strides = array<i32>} : memref<150x92xf32, #tpu.memory_space<vmem>>, vector<6x92xf32>,
    %c0_169 = arith.constant 0 : index
    %c27_170 = arith.constant 27 : index
    %214 = vector.load %arg15[%c0_169, %c27_170] : memref<6x144xf32, #tpu.memory_space<vmem>>, vector<6x92xf32>
    %c78 = arith.constant 78 : index
    %c0_171 = arith.constant 0 : index
    %215 = vector.load %arg16[%c78, %c0_171] : memref<150x92xf32, #tpu.memory_space<vmem>>, vector<6x92xf32>
    tpu.vector_store %arg16[%c78, %c0_171], %214 {strides = array<i32>} : memref<150x92xf32, #tpu.memory_space<vmem>>, vector<6x92xf32>,
    %c0_172 = arith.constant 0 : index
    %c28_173 = arith.constant 28 : index
    %216 = vector.load %arg15[%c0_172, %c28_173] : memref<6x144xf32, #tpu.memory_space<vmem>>, vector<6x92xf32>
    %c84_174 = arith.constant 84 : index
    %c0_175 = arith.constant 0 : index
    %217 = vector.load %arg16[%c84_174, %c0_175] : memref<150x92xf32, #tpu.memory_space<vmem>>, vector<6x92xf32>
    tpu.vector_store %arg16[%c84_174, %c0_175], %216 {strides = array<i32>} : memref<150x92xf32, #tpu.memory_space<vmem>>, vector<6x92xf32>,
    %c0_176 = arith.constant 0 : index
    %c36_177 = arith.constant 36 : index
    %218 = vector.load %arg15[%c0_176, %c36_177] : memref<6x144xf32, #tpu.memory_space<vmem>>, vector<6x92xf32>
    %c90 = arith.constant 90 : index
    %c0_178 = arith.constant 0 : index
    %219 = vector.load %arg16[%c90, %c0_178] : memref<150x92xf32, #tpu.memory_space<vmem>>, vector<6x92xf32>
    tpu.vector_store %arg16[%c90, %c0_178], %218 {strides = array<i32>} : memref<150x92xf32, #tpu.memory_space<vmem>>, vector<6x92xf32>,
    %c0_179 = arith.constant 0 : index
    %c37 = arith.constant 37 : index
    %220 = vector.load %arg15[%c0_179, %c37] : memref<6x144xf32, #tpu.memory_space<vmem>>, vector<6x92xf32>
    %c96_180 = arith.constant 96 : index
    %c0_181 = arith.constant 0 : index
    %221 = vector.load %arg16[%c96_180, %c0_181] : memref<150x92xf32, #tpu.memory_space<vmem>>, vector<6x92xf32>
    tpu.vector_store %arg16[%c96_180, %c0_181], %220 {strides = array<i32>} : memref<150x92xf32, #tpu.memory_space<vmem>>, vector<6x92xf32>,
    %c0_182 = arith.constant 0 : index
    %c38 = arith.constant 38 : index
    %222 = vector.load %arg15[%c0_182, %c38] : memref<6x144xf32, #tpu.memory_space<vmem>>, vector<6x92xf32>
    %c102 = arith.constant 102 : index
    %c0_183 = arith.constant 0 : index
    %223 = vector.load %arg16[%c102, %c0_183] : memref<150x92xf32, #tpu.memory_space<vmem>>, vector<6x92xf32>
    tpu.vector_store %arg16[%c102, %c0_183], %222 {strides = array<i32>} : memref<150x92xf32, #tpu.memory_space<vmem>>, vector<6x92xf32>,
    %c0_184 = arith.constant 0 : index
    %c39_185 = arith.constant 39 : index
    %224 = vector.load %arg15[%c0_184, %c39_185] : memref<6x144xf32, #tpu.memory_space<vmem>>, vector<6x92xf32>
    %c108_186 = arith.constant 108 : index
    %c0_187 = arith.constant 0 : index
    %225 = vector.load %arg16[%c108_186, %c0_187] : memref<150x92xf32, #tpu.memory_space<vmem>>, vector<6x92xf32>
    tpu.vector_store %arg16[%c108_186, %c0_187], %224 {strides = array<i32>} : memref<150x92xf32, #tpu.memory_space<vmem>>, vector<6x92xf32>,
    %c0_188 = arith.constant 0 : index
    %c40 = arith.constant 40 : index
    %226 = vector.load %arg15[%c0_188, %c40] : memref<6x144xf32, #tpu.memory_space<vmem>>, vector<6x92xf32>
    %c114 = arith.constant 114 : index
    %c0_189 = arith.constant 0 : index
    %227 = vector.load %arg16[%c114, %c0_189] : memref<150x92xf32, #tpu.memory_space<vmem>>, vector<6x92xf32>
    tpu.vector_store %arg16[%c114, %c0_189], %226 {strides = array<i32>} : memref<150x92xf32, #tpu.memory_space<vmem>>, vector<6x92xf32>,
    %c0_190 = arith.constant 0 : index
    %c48_191 = arith.constant 48 : index
    %228 = vector.load %arg15[%c0_190, %c48_191] : memref<6x144xf32, #tpu.memory_space<vmem>>, vector<6x92xf32>
    %c120_192 = arith.constant 120 : index
    %c0_193 = arith.constant 0 : index
    %229 = vector.load %arg16[%c120_192, %c0_193] : memref<150x92xf32, #tpu.memory_space<vmem>>, vector<6x92xf32>
    tpu.vector_store %arg16[%c120_192, %c0_193], %228 {strides = array<i32>} : memref<150x92xf32, #tpu.memory_space<vmem>>, vector<6x92xf32>,
    %c0_194 = arith.constant 0 : index
    %c49 = arith.constant 49 : index
    %230 = vector.load %arg15[%c0_194, %c49] : memref<6x144xf32, #tpu.memory_space<vmem>>, vector<6x92xf32>
    %c126 = arith.constant 126 : index
    %c0_195 = arith.constant 0 : index
    %231 = vector.load %arg16[%c126, %c0_195] : memref<150x92xf32, #tpu.memory_space<vmem>>, vector<6x92xf32>
    tpu.vector_store %arg16[%c126, %c0_195], %230 {strides = array<i32>} : memref<150x92xf32, #tpu.memory_space<vmem>>, vector<6x92xf32>,
    %c0_196 = arith.constant 0 : index
    %c50 = arith.constant 50 : index
    %232 = vector.load %arg15[%c0_196, %c50] : memref<6x144xf32, #tpu.memory_space<vmem>>, vector<6x92xf32>
    %c132_197 = arith.constant 132 : index
    %c0_198 = arith.constant 0 : index
    %233 = vector.load %arg16[%c132_197, %c0_198] : memref<150x92xf32, #tpu.memory_space<vmem>>, vector<6x92xf32>
    tpu.vector_store %arg16[%c132_197, %c0_198], %232 {strides = array<i32>} : memref<150x92xf32, #tpu.memory_space<vmem>>, vector<6x92xf32>,
    %c0_199 = arith.constant 0 : index
    %c51_200 = arith.constant 51 : index
    %234 = vector.load %arg15[%c0_199, %c51_200] : memref<6x144xf32, #tpu.memory_space<vmem>>, vector<6x92xf32>
    %c138 = arith.constant 138 : index
    %c0_201 = arith.constant 0 : index
    %235 = vector.load %arg16[%c138, %c0_201] : memref<150x92xf32, #tpu.memory_space<vmem>>, vector<6x92xf32>
    tpu.vector_store %arg16[%c138, %c0_201], %234 {strides = array<i32>} : memref<150x92xf32, #tpu.memory_space<vmem>>, vector<6x92xf32>,
    %c0_202 = arith.constant 0 : index
    %c52 = arith.constant 52 : index
    %236 = vector.load %arg15[%c0_202, %c52] : memref<6x144xf32, #tpu.memory_space<vmem>>, vector<6x92xf32>
    %c144 = arith.constant 144 : index
    %c0_203 = arith.constant 0 : index
    %237 = vector.load %arg16[%c144, %c0_203] : memref<150x92xf32, #tpu.memory_space<vmem>>, vector<6x92xf32>
    tpu.vector_store %arg16[%c144, %c0_203], %236 {strides = array<i32>} : memref<150x92xf32, #tpu.memory_space<vmem>>, vector<6x92xf32>,
    %c0_204 = arith.constant 0 : index
    %c0_205 = arith.constant 0 : index
    %238 = vector.load %arg16[%c0_204, %c0_205] : memref<150x92xf32, #tpu.memory_space<vmem>>, vector<150x92xf32>
    %cst_206 = arith.constant dense<0.000000e+00> : vector<16x92xf32>
    %239 = tpu.matmul %2, %238, %cst_206 {dimension_numbers = #tpu.dot_dimension_numbers<[1], [0], [0], [1], [0, 0, 1, 1], [], []>} : vector<16x150xf32>, vector<150x92xf32>, vector<16x92xf32> -> vector<16x92xf32>
    %240 = vector.broadcast %3 : vector<16x1xf32> to vector<16x92xf32>
    %241 = arith.addf %239, %240 : vector<16x92xf32>
    %cst_207 = arith.constant 0.000000e+00 : f32
    %242 = vector.broadcast %cst_207 : f32 to vector<16x92xf32>
    %243 = arith.maximumf %241, %242 : vector<16x92xf32>
    %c0_208 = arith.constant 0 : index
    %c0_209 = arith.constant 0 : index
    %244 = vector.load %arg17[%c0_208, %c0_209] : memref<16x92xf32, #tpu.memory_space<vmem>>, vector<16x92xf32>
    tpu.vector_store %arg17[%c0_208, %c0_209], %243 {strides = array<i32>} : memref<16x92xf32, #tpu.memory_space<vmem>>, vector<16x92xf32>,
    %c0_210 = arith.constant 0 : index
    %c0_211 = arith.constant 0 : index
    %245 = vector.load %arg17[%c0_210, %c0_211] : memref<16x92xf32, #tpu.memory_space<vmem>>, vector<16x7xf32>
    %c0_212 = arith.constant 0 : index
    %c1_213 = arith.constant 1 : index
    %246 = vector.load %arg17[%c0_212, %c1_213] : memref<16x92xf32, #tpu.memory_space<vmem>>, vector<16x7xf32>
    %247 = arith.maximumf %245, %246 : vector<16x7xf32>
    %c0_214 = arith.constant 0 : index
    %c12_215 = arith.constant 12 : index
    %248 = vector.load %arg17[%c0_214, %c12_215] : memref<16x92xf32, #tpu.memory_space<vmem>>, vector<16x7xf32>
    %c0_216 = arith.constant 0 : index
    %c13_217 = arith.constant 13 : index
    %249 = vector.load %arg17[%c0_216, %c13_217] : memref<16x92xf32, #tpu.memory_space<vmem>>, vector<16x7xf32>
    %250 = arith.maximumf %248, %249 : vector<16x7xf32>
    %251 = arith.maximumf %247, %250 : vector<16x7xf32>
    %cst_218 = arith.constant dense<0.000000e+00> : vector<16x4xf32>
    %252 = tpu.matmul %251, %17, %cst_218 {dimension_numbers = #tpu.dot_dimension_numbers<[1], [0], [0], [1], [0, 0, 1, 1], [], []>} : vector<16x7xf32>, vector<7x4xf32>, vector<16x4xf32> -> vector<16x4xf32>
    %c0_219 = arith.constant 0 : index
    %c24_220 = arith.constant 24 : index
    %253 = vector.load %arg17[%c0_219, %c24_220] : memref<16x92xf32, #tpu.memory_space<vmem>>, vector<16x7xf32>
    %c0_221 = arith.constant 0 : index
    %c25_222 = arith.constant 25 : index
    %254 = vector.load %arg17[%c0_221, %c25_222] : memref<16x92xf32, #tpu.memory_space<vmem>>, vector<16x7xf32>
    %255 = arith.maximumf %253, %254 : vector<16x7xf32>
    %c0_223 = arith.constant 0 : index
    %c36_224 = arith.constant 36 : index
    %256 = vector.load %arg17[%c0_223, %c36_224] : memref<16x92xf32, #tpu.memory_space<vmem>>, vector<16x7xf32>
    %c0_225 = arith.constant 0 : index
    %c37_226 = arith.constant 37 : index
    %257 = vector.load %arg17[%c0_225, %c37_226] : memref<16x92xf32, #tpu.memory_space<vmem>>, vector<16x7xf32>
    %258 = arith.maximumf %256, %257 : vector<16x7xf32>
    %259 = arith.maximumf %255, %258 : vector<16x7xf32>
    %cst_227 = arith.constant dense<0.000000e+00> : vector<16x4xf32>
    %260 = tpu.matmul %259, %17, %cst_227 {dimension_numbers = #tpu.dot_dimension_numbers<[1], [0], [0], [1], [0, 0, 1, 1], [], []>} : vector<16x7xf32>, vector<7x4xf32>, vector<16x4xf32> -> vector<16x4xf32>
    %c0_228 = arith.constant 0 : index
    %c48_229 = arith.constant 48 : index
    %261 = vector.load %arg17[%c0_228, %c48_229] : memref<16x92xf32, #tpu.memory_space<vmem>>, vector<16x7xf32>
    %c0_230 = arith.constant 0 : index
    %c49_231 = arith.constant 49 : index
    %262 = vector.load %arg17[%c0_230, %c49_231] : memref<16x92xf32, #tpu.memory_space<vmem>>, vector<16x7xf32>
    %263 = arith.maximumf %261, %262 : vector<16x7xf32>
    %c0_232 = arith.constant 0 : index
    %c60_233 = arith.constant 60 : index
    %264 = vector.load %arg17[%c0_232, %c60_233] : memref<16x92xf32, #tpu.memory_space<vmem>>, vector<16x7xf32>
    %c0_234 = arith.constant 0 : index
    %c61 = arith.constant 61 : index
    %265 = vector.load %arg17[%c0_234, %c61] : memref<16x92xf32, #tpu.memory_space<vmem>>, vector<16x7xf32>
    %266 = arith.maximumf %264, %265 : vector<16x7xf32>
    %267 = arith.maximumf %263, %266 : vector<16x7xf32>
    %cst_235 = arith.constant dense<0.000000e+00> : vector<16x4xf32>
    %268 = tpu.matmul %267, %17, %cst_235 {dimension_numbers = #tpu.dot_dimension_numbers<[1], [0], [0], [1], [0, 0, 1, 1], [], []>} : vector<16x7xf32>, vector<7x4xf32>, vector<16x4xf32> -> vector<16x4xf32>
    %c0_236 = arith.constant 0 : index
    %c72_237 = arith.constant 72 : index
    %269 = vector.load %arg17[%c0_236, %c72_237] : memref<16x92xf32, #tpu.memory_space<vmem>>, vector<16x7xf32>
    %c0_238 = arith.constant 0 : index
    %c73 = arith.constant 73 : index
    %270 = vector.load %arg17[%c0_238, %c73] : memref<16x92xf32, #tpu.memory_space<vmem>>, vector<16x7xf32>
    %271 = arith.maximumf %269, %270 : vector<16x7xf32>
    %c0_239 = arith.constant 0 : index
    %c84_240 = arith.constant 84 : index
    %272 = vector.load %arg17[%c0_239, %c84_240] : memref<16x92xf32, #tpu.memory_space<vmem>>, vector<16x7xf32>
    %c0_241 = arith.constant 0 : index
    %c85_242 = arith.constant 85 : index
    %273 = vector.load %arg17[%c0_241, %c85_242] : memref<16x92xf32, #tpu.memory_space<vmem>>, vector<16x7xf32>
    %274 = arith.maximumf %272, %273 : vector<16x7xf32>
    %275 = arith.maximumf %271, %274 : vector<16x7xf32>
    %cst_243 = arith.constant dense<0.000000e+00> : vector<16x4xf32>
    %276 = tpu.matmul %275, %17, %cst_243 {dimension_numbers = #tpu.dot_dimension_numbers<[1], [0], [0], [1], [0, 0, 1, 1], [], []>} : vector<16x7xf32>, vector<7x4xf32>, vector<16x4xf32> -> vector<16x4xf32>
    %277 = tpu.concatenate %252, %260, %268, %276 in 1 : vector<16x4xf32>, vector<16x4xf32>, vector<16x4xf32>, vector<16x4xf32> -> vector<16x16xf32>
    %278 = arith.index_cast %19 : i32 to index
    %c0_244 = arith.constant 0 : index
    %c0_245 = arith.constant 0 : index
    %279 = vector.load %arg18[%278, %c0_244, %c0_245] : memref<1x16x16xf32, #tpu.memory_space<vmem>>, vector<1x16x16xf32>
    %280 = vector.shape_cast %279 : vector<1x16x16xf32> to vector<16x16xf32>
    %281 = vector.shape_cast %277 : vector<16x16xf32> to vector<1x16x16xf32>
    tpu.vector_store %arg18[%278, %c0_244, %c0_245], %281 {strides = array<i32>} : memref<1x16x16xf32, #tpu.memory_space<vmem>>, vector<1x16x16xf32>,
    %c1_i32_246 = arith.constant 1 : i32
    %c0_247 = arith.constant 0 : index
    %c0_248 = arith.constant 0 : index
    %c0_249 = arith.constant 0 : index
    %282 = vector.load %arg18[%c0_247, %c0_248, %c0_249] : memref<1x16x16xf32, #tpu.memory_space<vmem>>, vector<1x16x16xf32>
    %283 = vector.shape_cast %282 : vector<1x16x16xf32> to vector<1x256xf32>
    %c0_250 = arith.constant 0 : index
    %c0_251 = arith.constant 0 : index
    %284 = vector.load %arg6[%c0_250, %c0_251] : memref<256x120xf32, #tpu.memory_space<vmem>>, vector<256x120xf32>
    %cst_252 = arith.constant dense<0.000000e+00> : vector<1x120xf32>
    %285 = tpu.matmul %283, %284, %cst_252 {dimension_numbers = #tpu.dot_dimension_numbers<[1], [0], [0], [1], [0, 0, 1, 1], [], []>} : vector<1x256xf32>, vector<256x120xf32>, vector<1x120xf32> -> vector<1x120xf32>
    %c0_253 = arith.constant 0 : index
    %c0_254 = arith.constant 0 : index
    %286 = vector.load %arg7[%c0_253, %c0_254] : memref<1x120xf32, #tpu.memory_space<vmem>>, vector<1x120xf32>
    %287 = arith.addf %285, %286 : vector<1x120xf32>
    %cst_255 = arith.constant 0.000000e+00 : f32
    %288 = vector.broadcast %cst_255 : f32 to vector<1x120xf32>
    %289 = arith.maximumf %287, %288 : vector<1x120xf32>
    %c0_256 = arith.constant 0 : index
    %c0_257 = arith.constant 0 : index
    %290 = vector.load %arg8[%c0_256, %c0_257] : memref<120x84xf32, #tpu.memory_space<vmem>>, vector<120x84xf32>
    %cst_258 = arith.constant dense<0.000000e+00> : vector<1x84xf32>
    %291 = tpu.matmul %289, %290, %cst_258 {dimension_numbers = #tpu.dot_dimension_numbers<[1], [0], [0], [1], [0, 0, 1, 1], [], []>} : vector<1x120xf32>, vector<120x84xf32>, vector<1x84xf32> -> vector<1x84xf32>
    %c0_259 = arith.constant 0 : index
    %c0_260 = arith.constant 0 : index
    %292 = vector.load %arg9[%c0_259, %c0_260] : memref<1x84xf32, #tpu.memory_space<vmem>>, vector<1x84xf32>
    %293 = arith.addf %291, %292 : vector<1x84xf32>
    %cst_261 = arith.constant 0.000000e+00 : f32
    %294 = vector.broadcast %cst_261 : f32 to vector<1x84xf32>
    %295 = arith.maximumf %293, %294 : vector<1x84xf32>
    %c0_262 = arith.constant 0 : index
    %c0_263 = arith.constant 0 : index
    %296 = vector.load %arg10[%c0_262, %c0_263] : memref<84x128xf32, #tpu.memory_space<vmem>>, vector<84x128xf32>
    %cst_264 = arith.constant dense<0.000000e+00> : vector<1x128xf32>
    %297 = tpu.matmul %295, %296, %cst_264 {dimension_numbers = #tpu.dot_dimension_numbers<[1], [0], [0], [1], [0, 0, 1, 1], [], []>} : vector<1x84xf32>, vector<84x128xf32>, vector<1x128xf32> -> vector<1x128xf32>
    %c0_265 = arith.constant 0 : index
    %c0_266 = arith.constant 0 : index
    %298 = vector.load %arg11[%c0_265, %c0_266] : memref<1x128xf32, #tpu.memory_space<vmem>>, vector<1x128xf32>
    %299 = arith.addf %297, %298 : vector<1x128xf32>
    %c0_267 = arith.constant 0 : index
    %c0_268 = arith.constant 0 : index
    %c0_269 = arith.constant 0 : index
    %300 = vector.load %arg12[%c0_267, %c0_268, %c0_269] : memref<1x1x128xf32, #tpu.memory_space<vmem>>, vector<1x1x128xf32>
    %301 = vector.shape_cast %300 : vector<1x1x128xf32> to vector<1x128xf32>
    %302 = vector.shape_cast %299 : vector<1x128xf32> to vector<1x1x128xf32>
    tpu.vector_store %arg12[%c0_267, %c0_268, %c0_269], %302 {strides = array<i32>} : memref<1x1x128xf32, #tpu.memory_space<vmem>>, vector<1x1x128xf32>,
    return
  }
  func.func @transform_0(%arg0: i32) -> (i32, i32, i32) {
    %c0_i32 = arith.constant 0 : i32
    %c0_i32_0 = arith.constant 0 : i32
    %c0_i32_1 = arith.constant 0 : i32
    return %arg0, %c0_i32, %c0_i32_0 : i32, i32, i32
  }
  func.func @transform_1(%arg0: i32) -> (i32, i32) {
    %c0_i32 = arith.constant 0 : i32
    %c0_i32_0 = arith.constant 0 : i32
    %c0_i32_1 = arith.constant 0 : i32
    return %c0_i32, %c0_i32_0 : i32, i32
  }
  func.func @transform_2(%arg0: i32) -> (i32, i32) {
    %c0_i32 = arith.constant 0 : i32
    %c0_i32_0 = arith.constant 0 : i32
    %c0_i32_1 = arith.constant 0 : i32
    return %c0_i32, %c0_i32_0 : i32, i32
  }
  func.func @transform_3(%arg0: i32) -> (i32, i32) {
    %c0_i32 = arith.constant 0 : i32
    %c0_i32_0 = arith.constant 0 : i32
    %c0_i32_1 = arith.constant 0 : i32
    return %c0_i32, %c0_i32_0 : i32, i32
  }
  func.func @transform_4(%arg0: i32) -> (i32, i32) {
    %c0_i32 = arith.constant 0 : i32
    %c0_i32_0 = arith.constant 0 : i32
    %c0_i32_1 = arith.constant 0 : i32
    return %c0_i32, %c0_i32_0 : i32, i32
  }
  func.func @transform_5(%arg0: i32) -> (i32, i32) {
    %c0_i32 = arith.constant 0 : i32
    %c0_i32_0 = arith.constant 0 : i32
    %c0_i32_1 = arith.constant 0 : i32
    return %c0_i32, %c0_i32_0 : i32, i32
  }
  func.func @transform_6(%arg0: i32) -> (i32, i32) {
    %c0_i32 = arith.constant 0 : i32
    %c0_i32_0 = arith.constant 0 : i32
    %c0_i32_1 = arith.constant 0 : i32
    return %c0_i32, %c0_i32_0 : i32, i32
  }
  func.func @transform_7(%arg0: i32) -> (i32, i32) {
    %c0_i32 = arith.constant 0 : i32
    %c0_i32_0 = arith.constant 0 : i32
    %c0_i32_1 = arith.constant 0 : i32
    return %c0_i32, %c0_i32_0 : i32, i32
  }
  func.func @transform_8(%arg0: i32) -> (i32, i32) {
    %c0_i32 = arith.constant 0 : i32
    %c0_i32_0 = arith.constant 0 : i32
    %c0_i32_1 = arith.constant 0 : i32
    return %c0_i32, %c0_i32_0 : i32, i32
  }
  func.func @transform_9(%arg0: i32) -> (i32, i32) {
    %c0_i32 = arith.constant 0 : i32
    %c0_i32_0 = arith.constant 0 : i32
    %c0_i32_1 = arith.constant 0 : i32
    return %c0_i32, %c0_i32_0 : i32, i32
  }
  func.func @transform_10(%arg0: i32) -> (i32, i32) {
    %c0_i32 = arith.constant 0 : i32
    %c0_i32_0 = arith.constant 0 : i32
    %c0_i32_1 = arith.constant 0 : i32
    return %c0_i32, %c0_i32_0 : i32, i32
  }
  func.func @transform_11(%arg0: i32) -> (i32, i32, i32) {
    %c0_i32 = arith.constant 0 : i32
    %c0_i32_0 = arith.constant 0 : i32
    %c0_i32_1 = arith.constant 0 : i32
    return %arg0, %c0_i32, %c0_i32_0 : i32, i32, i32
  }
}

</mosaic_0001>

<bundles_post_ra>
// kernel: basic_cnn_forward.1
= control target key start
LH: loop header
LB: loop body
LE: loop exit
PB: predicated region body
PF: predicated region fallthrough
CT: control target
= control target key end

     0   :  { %s5159_s0 = inlined_call_operand.vmem [shape: f32[2,3,784], index: 0, kind: input, shape index: {}]   ;;  %s5160_s1 = inlined_call_operand.vmem [shape: f32[6,75], index: 1, kind: input, shape index: {}]   ;;  %s5161_s2 = inlined_call_operand.vmem [shape: f32[6,1], index: 2, kind: input, shape index: {}]   ;;  %s5162_s3 = inlined_call_operand.vmem [shape: f32[16,150], index: 3, kind: input, shape index: {}]   ;;  %s5163_s4 = inlined_call_operand.vmem [shape: f32[16,1], index: 4, kind: input, shape index: {}]   ;;  %s5164_s5 = inlined_call_operand.vmem [shape: f32[256,120], index: 5, kind: input, shape index: {}]   ;;  %s5165_s6 = inlined_call_operand.vmem [shape: f32[1,120], index: 6, kind: input, shape index: {}]   ;;  %s5166_s7 = inlined_call_operand.vmem [shape: f32[120,84], index: 7, kind: input, shape index: {}]   ;;  %s5167_s8 = inlined_call_operand.vmem [shape: f32[1,84], index: 8, kind: input, shape index: {}]   ;;  %s5168_s9 = inlined_call_operand.vmem [shape: f32[84,128], index: 9, kind: input, shape index: {}]   ;;  %s5169_s10 = inlined_call_operand.vmem [shape: f32[1,128], index: 10, kind: input, shape index: {}]   ;;  %s5170_s11 = inlined_call_operand.hbm [shape: f32[2,1,128], index: 11, kind: output, shape index: {}]  }
   0x1   :  { %5251 = sst [smem:[#allocation49_spill]] %s5159_s0 }
   0x2   :  { %5252 = sst [smem:[#allocation50_spill]] %s5160_s1 }
   0x3   :  { %5253 = sst [smem:[#allocation51_spill]] %s5161_s2 }
   0x4   :  { %16 = vsyncpa [#allocation9], 0 }
   0x5   :  { %18 = vsyncpa [#allocation9 + $0x1], 0  ;;  %s3651_s17 = smov 0   ;;  %s3653_s18 = smov 0  }
   0x6   :  { %s3655_s19 = smov 0   ;;  %s3657_s20 = smov 0  }
   0x7 LB: > { %5254 = sst [smem:[#allocation11_spill]] %s3525_s19  ;;  %s3672_s21 = sadd.s32 4294967295, %s3529_s20   ;;  %s3529_s20 = sphi %s3657_s20, %s5402_s20   ;;  %s3525_s19 = sphi %s3655_s19, %s5404_s19   ;;  %s3521_s18 = sphi %s3653_s18, %s5406_s18   ;;  %s3517_s17 = sphi %s3651_s17, %s5405_s17  }
   0x8   : > { %s3246_s22 = sadd.s32 4294967294, %s3529_s20   ;;  %s3676_s23 = sadd.s32 1, %s3529_s20  }
   0x9   : > { %5255 = sst [smem:[#allocation12_spill]] %s3676_s23  ;;  %s267_s24 = sadd.s32 1, %s3525_s19 }
   0xa   : > { %s264_s25 = ssub.s32 %s3529_s20, %s3676_s23  ;;  %p277_p0 = scmp.ne.s32.totalorder %s3525_s19, %s3521_s18 }
   0xb   : > { %p265_p1 = scmp.eq.s32.totalorder %s264_s25, 0  ;;  %p278_p2 = scmp.eq.s32.totalorder %s3672_s21, 1 }
   0xc   : > { %p283_p3 = scmp.ne.s32.totalorder %s3521_s18, %s3517_s17  ;;  %p284_p4 = scmp.eq.s32.totalorder %s3246_s22, 1 }
   0xd   : > { %s3687_s26 = scalar_select %p265_p1, %s3525_s19, %s267_s24  }
   0xe   : > { %p3689_p5 = por %p278_p2, %p277_p0  ;;  %p3693_p6 = por %p284_p4, %p283_p3 }
   0xf   : > { %5256 = sst [smem:[#allocation13_spill]] %s3687_s26  ;;  %p3249_p7 = scmp.ge.s32.totalorder %s3529_s20, 1 }
  0x10   : > { %s5258_s28 = scalar_select %p3693_p6, 1, 0 }
  0x11   : > { %p340_p8 = scmp.lt.s32.totalorder %s3529_s20, 3 }
  0x12   : > { %5259 = sst [smem:[#allocation14_spill]] %s5258_s28 }
  0x13   : > { %p341_p9 = pnand %p3249_p7, %p340_p8 }
  0x15   : > { %344 = sbr.rel (%p341_p9) target bundleno = 2859 (0xb2b), region = 64 }
  0x1a   : > { %p379_p10 = scmp.lt.s32.totalorder %s3672_s21, 1  ;;  %s5260_s0 = sld [smem:[#allocation49_spill]]  ;;  %vm5230_vm0 = vcmask 1031168   ;;  %vm571_vm1 = vcmask 1022976   ;;  %vm5231_vm2 = vcmask 818176   ;;  %vm717_vm3 = vcmask 809984  }
  0x1b   : > { %s5173_s15 = smov 126   ;;  %s5171_s16 = smov 125   ;;  %vm5229_vm4 = vcmask 801792   ;;  %vm5235_vm5 = vcmask 793600   ;;  %vm5236_vm6 = vcmask 785408   ;;  %vm5224_vm7 = vcmask 588800  }
  0x1c   : > { %s380_s29 = scalar_select %p379_p10, %s3672_s21, 1  ;;  %vm954_vm8 = vcmask 580608   ;;  %vm5228_vm9 = vcmask 572416   ;;  %vm5203_vm10 = vcmask 564224   ;;  %vm5202_vm11 = vcmask 556032  }
  0x1d   : > { %s5219_s22 = smov 124   ;;  %s5187_s24 = smov 100   ;;  %vm5214_vm12 = vcmask 359424   ;;  %vm1231_vm13 = vcmask 343040   ;;  %vm5208_vm14 = vcmask 351232   ;;  %vm5213_vm15 = vcmask 334848  }
  0x1e   : > { %s3334_s30 = smul.u32 28, %s380_s29  ;;  %s5177_s25 = smov 99  }
  0x1f   : > { %s5175_s29 = smov 98   ;;  %s5206_s12 = smov 96  }
  0x20   : > { %s3704_s14 = scalar_lea.vmem %s5260_s0, %s3334_s30  ;;  %s5204_s30 = smov 97  }
  0x21   : > { %v3707_v0 = vld [vmem:[%s3704_s14] sm:$0x77]  ;;  %v3710_v1 = vld [vmem:[%s3704_s14 + $0x10] sm:$0x77]  ;;  %v3714_v2 = vld [vmem:[%s3704_s14 + $0x8] sm:$0x77] }
  0x22   : > { %415 = vst [vmem:[#allocation1] ss:$2 sm:$0xff] %v3707_v0  ;;  %s5200_s13 = smov 72   ;;  %s5323_s0 = smov 68  }
  0x23   : > { %419 = vst [vmem:[#allocation1 + $0x20] ss:$2 sm:$0xff] %v3710_v1  ;;  %s5332_s26 = smov 14   ;;  %s5335_s1 = sld [smem:[#allocation50_spill]] }
  0x24   : > { %417 = vst [vmem:[#allocation1 + $0x10] ss:$2 sm:$0xff] %v3714_v2  ;;  %s5337_s19 = smov 96   ;;  %s5338_s23 = smov 97  }
  0x25   : > { %s5350_s2 = sld [smem:[#allocation51_spill]]  ;;  %s3578_s28 = smov 101  }
  0x29   : > { %v420_v3 = vld.sshfl [vmem:[#allocation1] sm:$0xff pattern:$0x75316420]  ;;  %v421_v4 = vld.sshfl [vmem:[#allocation1 + $0x8] sm:$0xff pattern:$0x75316420] }
  0x2a   : > { %439 = vst [vmem:[#allocation1] ss:$2 sm:$0xff] %v3707_v0  ;;  %v424_v5 = vld.sshfl [vmem:[#allocation1 + $0x20] sm:$0xff pattern:$0x75316420] }
  0x2b   : > { %432 = vst [vmem:[#allocation2] sm:$0x7] %v420_v3  ;;  %v3719_v6 = vld.sshfl [vmem:[#allocation1 + $0x28] sm:$0xff pattern:$0x75316420] }
  0x2c   : > { %5261 = vst [vmem:[#allocation15_spill] sm:$0xff] %v3719_v6  ;;  %v422_v7 = vld.sshfl [vmem:[#allocation1 + $0x10] sm:$0xff pattern:$0x75316420] }
  0x2d   : > { %433 = vst [vmem:[#allocation2 + $0x8] sm:$0x7] %v421_v4  ;;  %v423_v8 = vld.sshfl [vmem:[#allocation1 + $0x18] sm:$0xff pattern:$0x75316420] }
  0x2e   : > { %443 = vst [vmem:[#allocation1 + $0x20] ss:$2 sm:$0xff] %v3710_v1 }
  0x2f   : > { %436 = vst [vmem:[#allocation2 + $0x20] sm:$0x7] %v424_v5 }
  0x30   : > { %441 = vst [vmem:[#allocation1 + $0x10] ss:$2 sm:$0xff] %v3714_v2 }
  0x31   : > { %434 = vst [vmem:[#allocation2 + $0x10] sm:$0x7] %v422_v7  ;;  %v3723_v9 = vld.sshfl [vmem:[#allocation1] sm:$0xff pattern:$0x75316420] }
  0x32   : > { %v3725_v10 = vld.sshfl [vmem:[#allocation1 + $0x8] sm:$0xff pattern:$0x75316420]  ;;  %435 = vst [vmem:[#allocation2 + $0x18] sm:$0x7] %v423_v8 }
  0x33   : > { %487 = vst [vmem:[#allocation1] ss:$2 sm:$0xff] %v3707_v0 }
  0x35   : > { %v3728_v11 = vld.sshfl [vmem:[#allocation1 + $0x20] sm:$0xff pattern:$0x75316420]  ;;  %v3730_v12 = vld.sshfl [vmem:[#allocation1 + $0x28] sm:$0xff pattern:$0x75316420] }
  0x36   : > { %5262 = vst [vmem:[#allocation16_spill] sm:$0xff] %v3728_v11 }
  0x37   : > { %5263 = vst [vmem:[#allocation17_spill] sm:$0xff] %v3730_v12  ;;  %v3733_v13 = vld.sshfl [vmem:[#allocation1 + $0x10] sm:$0xff pattern:$0x75316420] }
  0x38   : > { %491 = vst [vmem:[#allocation1 + $0x20] ss:$2 sm:$0xff] %v3710_v1  ;;  %v3735_v14 = vld.sshfl [vmem:[#allocation1 + $0x18] sm:$0xff pattern:$0x75316420] }
  0x39   : > { %5264 = vst [vmem:[#allocation18_spill] sm:$0xff] %v3735_v14 }
  0x3a   : > { %489 = vst [vmem:[#allocation1 + $0x10] ss:$2 sm:$0xff] %v3714_v2  ;;  %v492_v15 = vld.sshfl [vmem:[#allocation1] sm:$0xff pattern:$0x75316420] }
  0x3b   : > { %v493_v16 = vld.sshfl [vmem:[#allocation1 + $0x8] sm:$0xff pattern:$0x75316420]  ;;  %v498_v17 = vrot.slane %v492_v15, 2 }
  0x3c   : > { %542 = vst [vmem:[#allocation1] ss:$2 sm:$0xff] %v3707_v0  ;;  %v499_v18 = vrot.slane %v493_v16, 2 }
  0x3d   : > { %504 = vrot.lane.b32.xlu1 %v498_v17, %s5173_s15 }
  0x3e   : > { %506 = vrot.lane.b32.xlu2 %v499_v18, %s5173_s15  ;;  %s5205_s15 = smov 70  }
  0x3f   : > { %v3741_v19 = vld.sshfl [vmem:[#allocation1 + $0x20] sm:$0xff pattern:$0x75316420]  ;;  %v3743_v20 = vld.sshfl [vmem:[#allocation1 + $0x28] sm:$0xff pattern:$0x75316420] }
  0x40   : > { %5265 = vst [vmem:[#allocation19_spill] sm:$0xff] %v3743_v20 }
  0x41   : > { %546 = vst [vmem:[#allocation1 + $0x20] ss:$2 sm:$0xff] %v3710_v1  ;;  %v3746_v21 = vld.sshfl [vmem:[#allocation1 + $0x10] sm:$0xff pattern:$0x75316420] }
  0x42   : > { %v3748_v22 = vld.sshfl [vmem:[#allocation1 + $0x18] sm:$0xff pattern:$0x75316420] }
  0x43   : > { %544 = vst [vmem:[#allocation1 + $0x10] ss:$2 sm:$0xff] %v3714_v2  ;;  %v547_v23 = vld.sshfl [vmem:[#allocation1] sm:$0xff pattern:$0x75316420] }
  0x44   : > { %v548_v24 = vld.sshfl [vmem:[#allocation1 + $0x8] sm:$0xff pattern:$0x75316420]  ;;  %v553_v25 = vrot.slane %v547_v23, 7 }
  0x45   : > { %v554_v26 = vrot.slane %v548_v24, 7  ;;  %591 = vst [vmem:[#allocation1 + $0x1] ss:$2 sm:$0xff] %v3707_v0 }
  0x46   : > { %559 = vrot.lane.b32.xlu0 %v553_v25, %s5171_s16 }
  0x47   : > { %561 = vrot.lane.b32.xlu1 %v554_v26, %s5171_s16  ;;  %s5210_s16 = smov 71  }
  0x48   : > { %v3754_v27 = vld.sshfl [vmem:[#allocation1 + $0x20] sm:$0xff pattern:$0x75316420]  ;;  %v3756_v28 = vld.sshfl [vmem:[#allocation1 + $0x28] sm:$0xff pattern:$0x75316420] }
  0x49   : > { %5266 = vst [vmem:[#allocation20_spill] sm:$0xff] %v3756_v28 }
  0x4a   : > { %595 = vst [vmem:[#allocation1 + $0x21] ss:$2 sm:$0xff] %v3710_v1  ;;  %v3759_v29 = vld.sshfl [vmem:[#allocation1 + $0x10] sm:$0xff pattern:$0x75316420] }
  0x4b   : > { %v3761_v30 = vld.sshfl [vmem:[#allocation1 + $0x18] sm:$0xff pattern:$0x75316420] }
  0x4c   : > { %593 = vst [vmem:[#allocation1 + $0x11] ss:$2 sm:$0xff] %v3714_v2  ;;  %v596_v31 = vld.sshfl [vmem:[#allocation1] sm:$0xff pattern:$0x75316420] }
  0x4d   : > { %v3764_v32 = vld.sshfl [vmem:[#allocation1 + $0x8] sm:$0xff pattern:$0x75316420]  ;;  %602 = vrot.lane.b32.xlu2 %v596_v31, %s5219_s22 }
  0x4e   : > { %633 = vst [vmem:[#allocation1] ss:$2 sm:$0xff] %v3707_v0 }
  0x51   : > { %v3768_v33 = vld.sshfl [vmem:[#allocation1 + $0x20] sm:$0xff pattern:$0x75316420]  ;;  %v3770_v34 = vld.sshfl [vmem:[#allocation1 + $0x28] sm:$0xff pattern:$0x75316420] }
  0x52   : > { %5267 = vst [vmem:[#allocation21_spill] sm:$0xff] %v3770_v34 }
  0x53   : > { %637 = vst [vmem:[#allocation1 + $0x20] ss:$2 sm:$0xff] %v3710_v1  ;;  %v3773_v35 = vld.sshfl [vmem:[#allocation1 + $0x10] sm:$0xff pattern:$0x75316420] }
  0x54   : > { %v3775_v36 = vld.sshfl [vmem:[#allocation1 + $0x18] sm:$0xff pattern:$0x75316420] }
  0x55   : > { %635 = vst [vmem:[#allocation1 + $0x10] ss:$2 sm:$0xff] %v3714_v2  ;;  %v638_v37 = vld.sshfl [vmem:[#allocation1] sm:$0xff pattern:$0x75316420] }
  0x56   : > { %v639_v38 = vld.sshfl [vmem:[#allocation1 + $0x8] sm:$0xff pattern:$0x75316420]  ;;  %v644_v39 = vrot.slane %v638_v37, 1 }
  0x57   : > { %688 = vst [vmem:[#allocation1] ss:$2 sm:$0xff] %v3707_v0  ;;  %v645_v40 = vrot.slane %v639_v38, 1 }
  0x58   : > { %650 = vrot.lane.b32.xlu1 %v644_v39, %s5187_s24 }
  0x59   : > { %652 = vrot.lane.b32.xlu2 %v645_v40, %s5187_s24  ;;  %s5194_s24 = smov 40  }
  0x5a   : > { %v3781_v41 = vld.sshfl [vmem:[#allocation1 + $0x20] sm:$0xff pattern:$0x75316420]  ;;  %v3783_v42 = vld.sshfl [vmem:[#allocation1 + $0x28] sm:$0xff pattern:$0x75316420] }
  0x5b   : > { %5268 = vst [vmem:[#allocation22_spill] sm:$0xff] %v3783_v42 }
  0x5c   : > { %692 = vst [vmem:[#allocation1 + $0x20] ss:$2 sm:$0xff] %v3710_v1  ;;  %v3786_v43 = vld.sshfl [vmem:[#allocation1 + $0x10] sm:$0xff pattern:$0x75316420] }
  0x5d   : > { %v3788_v44 = vld.sshfl [vmem:[#allocation1 + $0x18] sm:$0xff pattern:$0x75316420] }
  0x5e   : > { %690 = vst [vmem:[#allocation1 + $0x10] ss:$2 sm:$0xff] %v3714_v2  ;;  %v693_v45 = vld.sshfl [vmem:[#allocation1] sm:$0xff pattern:$0x75316420] }
  0x5f   : > { %v694_v46 = vld.sshfl [vmem:[#allocation1 + $0x8] sm:$0xff pattern:$0x75316420]  ;;  %v699_v47 = vrot.slane %v693_v45, 6 }
  0x60   : > { %736 = vst [vmem:[#allocation1] ss:$2 sm:$0xff] %v3707_v0  ;;  %v700_v48 = vrot.slane %v694_v46, 6 }
  0x61   : > { %705 = vrot.lane.b32.xlu0 %v699_v47, %s5177_s25 }
  0x62   : > { %707 = vrot.lane.b32.xlu1 %v700_v48, %s5177_s25  ;;  %s5181_s25 = smov 68  }
  0x63   : > { %v3794_v49 = vld.sshfl [vmem:[#allocation1 + $0x20] sm:$0xff pattern:$0x75316420]  ;;  %v3796_v50 = vld.sshfl [vmem:[#allocation1 + $0x28] sm:$0xff pattern:$0x75316420] }
  0x64   : > { %5269 = vst [vmem:[#allocation23_spill] sm:$0xff] %v3796_v50 }
  0x65   : > { %740 = vst [vmem:[#allocation1 + $0x20] ss:$2 sm:$0xff] %v3710_v1  ;;  %v3799_v51 = vld.sshfl [vmem:[#allocation1 + $0x10] sm:$0xff pattern:$0x75316420] }
  0x66   : > { %v3801_v52 = vld.sshfl [vmem:[#allocation1 + $0x18] sm:$0xff pattern:$0x75316420] }
  0x67   : > { %738 = vst [vmem:[#allocation1 + $0x10] ss:$2 sm:$0xff] %v3714_v2  ;;  %v741_v53 = vld.sshfl [vmem:[#allocation1] sm:$0xff pattern:$0x75316420] }
  0x68   : > { %v742_v54 = vld.sshfl [vmem:[#allocation1 + $0x8] sm:$0xff pattern:$0x75316420]  ;;  %v747_v56 = vrot.slane %v741_v53, 3 }
  0x69   : > { %v748_v55 = vrot.slane %v742_v54, 3  ;;  %784 = vst [vmem:[#allocation1] ss:$2 sm:$0xff] %v3707_v0 }
  0x6a   : > { %753 = vrot.lane.b32.xlu2 %v747_v56, %s5175_s29 }
  0x6b   : > { %755 = vrot.lane.b32.xlu0 %v748_v55, %s5175_s29  ;;  %s5179_s29 = smov 69  }
  0x6c   : > { %v3807_v57 = vld.sshfl [vmem:[#allocation1 + $0x20] sm:$0xff pattern:$0x75316420]  ;;  %v3809_v58 = vld.sshfl [vmem:[#allocation1 + $0x28] sm:$0xff pattern:$0x75316420] }
  0x6d   : > { %5270 = vst [vmem:[#allocation24_spill] sm:$0xff] %v3809_v58 }
  0x6e   : > { %788 = vst [vmem:[#allocation1 + $0x20] ss:$2 sm:$0xff] %v3710_v1  ;;  %v3812_v59 = vld.sshfl [vmem:[#allocation1 + $0x10] sm:$0xff pattern:$0x75316420] }
  0x6f   : > { %v3814_v60 = vld.sshfl [vmem:[#allocation1 + $0x18] sm:$0xff pattern:$0x75316420] }
  0x70   : > { %786 = vst [vmem:[#allocation1 + $0x10] ss:$2 sm:$0xff] %v3714_v2  ;;  %v789_v61 = vld.sshfl [vmem:[#allocation1] sm:$0xff pattern:$0x75316420] }
  0x71   : > { %v790_v62 = vld.sshfl [vmem:[#allocation1 + $0x8] sm:$0xff pattern:$0x75316420] }
  0x72   : > { %825 = vst [vmem:[#allocation1] ss:$2 sm:$0xff] %v3707_v0  ;;  %797 = vrot.lane.b32.xlu1 %v790_v62, %s5204_s30 }
  0x73   : > { %795 = vrot.lane.b32.xlu0 %v789_v61, %s5204_s30 }
  0x75   : > { %v3820_v63 = vld.sshfl [vmem:[#allocation1 + $0x20] sm:$0xff pattern:$0x75316420]  ;;  %v3822_v3 = vld.sshfl [vmem:[#allocation1 + $0x28] sm:$0xff pattern:$0x75316420] }
  0x76   : > { %5271 = vst [vmem:[#allocation25_spill] sm:$0xff] %v3822_v3 }
  0x77   : > { %829 = vst [vmem:[#allocation1 + $0x20] ss:$2 sm:$0xff] %v3710_v1  ;;  %v3825_v4 = vld.sshfl [vmem:[#allocation1 + $0x10] sm:$0xff pattern:$0x75316420] }
  0x78   : > { %v3827_v5 = vld.sshfl [vmem:[#allocation1 + $0x18] sm:$0xff pattern:$0x75316420] }
  0x79   : > { %827 = vst [vmem:[#allocation1 + $0x10] ss:$2 sm:$0xff] %v3714_v2  ;;  %v831_v7 = vld.sshfl [vmem:[#allocation1 + $0x8] sm:$0xff pattern:$0x75316420] }
  0x7a   : > { %v830_v8 = vld.sshfl [vmem:[#allocation1] sm:$0xff pattern:$0x75316420]  ;;  %v837_v15 = vrot.slane %v831_v7, 5 }
  0x7b   : > { %v836_v16 = vrot.slane %v830_v8, 5  ;;  %872 = vst [vmem:[#allocation1] ss:$2 sm:$0xff] %v3707_v0 }
  0x7c   : > { %844 = vrot.lane.b32.xlu0 %v837_v15, %s5206_s12 }
  0x7d   : > { %842 = vrot.lane.b32.xlu2 %v836_v16, %s5206_s12 }
  0x7e   : > { %v3833_v17 = vld.sshfl [vmem:[#allocation1 + $0x20] sm:$0xff pattern:$0x75316420]  ;;  %v3835_v18 = vld.sshfl [vmem:[#allocation1 + $0x28] sm:$0xff pattern:$0x75316420] }
  0x7f   : > { %5272 = vst [vmem:[#allocation26_spill] sm:$0xff] %v3835_v18 }
  0x80   : > { %876 = vst [vmem:[#allocation1 + $0x20] ss:$2 sm:$0xff] %v3710_v1  ;;  %v3838_v23 = vld.sshfl [vmem:[#allocation1 + $0x10] sm:$0xff pattern:$0x75316420] }
  0x81   : > { %v3840_v24 = vld.sshfl [vmem:[#allocation1 + $0x18] sm:$0xff pattern:$0x75316420] }
  0x82   : > { %874 = vst [vmem:[#allocation1 + $0x10] ss:$2 sm:$0xff] %v3714_v2  ;;  %v877_v25 = vld.sshfl [vmem:[#allocation1] sm:$0xff pattern:$0x75316420] }
  0x83   : > { %v878_v26 = vld.sshfl [vmem:[#allocation1 + $0x8] sm:$0xff pattern:$0x75316420]  ;;  %v883_v31 = vrot.slane %v877_v25, 2 }
  0x84   : > { %v884_v37 = vrot.slane %v878_v26, 2  ;;  %925 = vst [vmem:[#allocation1] ss:$2 sm:$0xff] %v3707_v0 }
  0x85   : > { %889 = vrot.lane.b32.xlu0 %v883_v31, %s5200_s13 }
  0x86   : > { %891 = vrot.lane.b32.xlu1 %v884_v37, %s5200_s13 }
  0x87   : > { %v3846_v38 = vld.sshfl [vmem:[#allocation1 + $0x20] sm:$0xff pattern:$0x75316420]  ;;  %v3848_v39 = vld.sshfl [vmem:[#allocation1 + $0x28] sm:$0xff pattern:$0x75316420] }
  0x88   : > { %5273 = vst [vmem:[#allocation27_spill] sm:$0xff] %v3848_v39 }
  0x89   : > { %929 = vst [vmem:[#allocation1 + $0x20] ss:$2 sm:$0xff] %v3710_v1  ;;  %v3851_v40 = vld.sshfl [vmem:[#allocation1 + $0x10] sm:$0xff pattern:$0x75316420] }
  0x8a   : > { %v3853_v45 = vld.sshfl [vmem:[#allocation1 + $0x18] sm:$0xff pattern:$0x75316420] }
  0x8b   : > { %927 = vst [vmem:[#allocation1 + $0x10] ss:$2 sm:$0xff] %v3714_v2  ;;  %v930_v46 = vld.sshfl [vmem:[#allocation1] sm:$0xff pattern:$0x75316420] }
  0x8c   : > { %v931_v47 = vld.sshfl [vmem:[#allocation1 + $0x8] sm:$0xff pattern:$0x75316420]  ;;  %v936_v48 = vrot.slane %v930_v46, 7 }
  0x8d   : > { %973 = vst [vmem:[#allocation1 + $0x1] ss:$2 sm:$0xff] %v3707_v0  ;;  %v937_v53 = vrot.slane %v931_v47, 7 }
  0x8e   : > { %942 = vrot.lane.b32.xlu2 %v936_v48, %s5210_s16 }
  0x8f   : > { %944 = vrot.lane.b32.xlu0 %v937_v53, %s5210_s16 }
  0x90   : > { %v3859_v54 = vld.sshfl [vmem:[#allocation1 + $0x20] sm:$0xff pattern:$0x75316420]  ;;  %v3861_v55 = vld.sshfl [vmem:[#allocation1 + $0x28] sm:$0xff pattern:$0x75316420] }
  0x91   : > { %5274 = vst [vmem:[#allocation28_spill] sm:$0xff] %v3861_v55 }
  0x92   : > { %977 = vst [vmem:[#allocation1 + $0x21] ss:$2 sm:$0xff] %v3710_v1  ;;  %v3864_v56 = vld.sshfl [vmem:[#allocation1 + $0x10] sm:$0xff pattern:$0x75316420] }
  0x93   : > { %v3866_v61 = vld.sshfl [vmem:[#allocation1 + $0x18] sm:$0xff pattern:$0x75316420] }
  0x94   : > { %975 = vst [vmem:[#allocation1 + $0x11] ss:$2 sm:$0xff] %v3714_v2  ;;  %v979_v62 = vld.sshfl [vmem:[#allocation1 + $0x8] sm:$0xff pattern:$0x75316420] }
  0x95   : > { %v978_v7 = vld.sshfl [vmem:[#allocation1] sm:$0xff pattern:$0x75316420] }
  0x96   : > { %984 = vrot.lane.b32.xlu1 %v978_v7, %s5205_s15  ;;  %1014 = vst [vmem:[#allocation1] ss:$2 sm:$0xff] %v3707_v0  ;;  %986 = vrot.lane.b32.xlu2 %v979_v62, %s5205_s15 }
  0x99   : > { %v3872_v8 = vld.sshfl [vmem:[#allocation1 + $0x20] sm:$0xff pattern:$0x75316420]  ;;  %v3874_v15 = vld.sshfl [vmem:[#allocation1 + $0x28] sm:$0xff pattern:$0x75316420] }
  0x9a   : > { %5275 = vst [vmem:[#allocation29_spill] sm:$0xff] %v3874_v15 }
  0x9b   : > { %1018 = vst [vmem:[#allocation1 + $0x20] ss:$2 sm:$0xff] %v3710_v1  ;;  %v3877_v16 = vld.sshfl [vmem:[#allocation1 + $0x10] sm:$0xff pattern:$0x75316420] }
  0x9c   : > { %v3879_v25 = vld.sshfl [vmem:[#allocation1 + $0x18] sm:$0xff pattern:$0x75316420] }
  0x9d   : > { %1016 = vst [vmem:[#allocation1 + $0x10] ss:$2 sm:$0xff] %v3714_v2  ;;  %v1019_v26 = vld.sshfl [vmem:[#allocation1] sm:$0xff pattern:$0x75316420] }
  0x9e   : > { %v1020_v31 = vld.sshfl [vmem:[#allocation1 + $0x8] sm:$0xff pattern:$0x75316420]  ;;  %v1025_v37 = vrot.slane %v1019_v26, 1 }
  0x9f   : > { %v1026_v46 = vrot.slane %v1020_v31, 1  ;;  %1067 = vst [vmem:[#allocation1] ss:$2 sm:$0xff] %v3707_v0 }
  0xa0   : > { %1031 = vrot.lane.b32.xlu0 %v1025_v37, %s5179_s29 }
  0xa1   : > { %1033 = vrot.lane.b32.xlu1 %v1026_v46, %s5179_s29 }
  0xa2   : > { %v1023_v47 = vld.sshfl [vmem:[#allocation1 + $0x20] sm:$0xff pattern:$0x75316420]  ;;  %v3883_v48 = vld.sshfl [vmem:[#allocation1 + $0x28] sm:$0xff pattern:$0x75316420] }
  0xa3   : > { %5276 = vst [vmem:[#allocation30_spill] sm:$0xff] %v3883_v48  ;;  %v1029_v53 = vrot.slane %v1023_v47, 1 }
  0xa4   : > { %1071 = vst [vmem:[#allocation1 + $0x20] ss:$2 sm:$0xff] %v3710_v1  ;;  %v1021_v62 = vld.sshfl [vmem:[#allocation1 + $0x10] sm:$0xff pattern:$0x75316420] }
  0xa5   : > { %v1022_v7 = vld.sshfl [vmem:[#allocation1 + $0x18] sm:$0xff pattern:$0x75316420]  ;;  %1039 = vrot.lane.b32.xlu2 %v1029_v53, %s5179_s29  ;;  %v1027_v26 = vrot.slane %v1021_v62, 1 }
  0xa6   : > { %1069 = vst [vmem:[#allocation1 + $0x10] ss:$2 sm:$0xff] %v3714_v2  ;;  %v1072_v31 = vld.sshfl [vmem:[#allocation1] sm:$0xff pattern:$0x75316420]  ;;  %v1028_v62 = vrot.slane %v1022_v7, 1 }
  0xa7   : > { %v1073_v6 = vld.sshfl [vmem:[#allocation1 + $0x8] sm:$0xff pattern:$0x75316420]  ;;  %v1078_v12 = vrot.slane %v1072_v31, 6 }
  0xa8   : > { %v1079_v34 = vrot.slane %v1073_v6, 6  ;;  %1114 = vst [vmem:[#allocation1] ss:$2 sm:$0xff] %v3707_v0 }
  0xa9   : > { %1035 = vrot.lane.b32.xlu1 %v1027_v26, %s5179_s29 }
  0xaa   : > { %1086 = vrot.lane.b32.xlu0 %v1079_v34, %s5181_s25 }
  0xab   : > { %v1076_v37 = vld.sshfl [vmem:[#allocation1 + $0x20] sm:$0xff pattern:$0x75316420]  ;;  %v3893_v46 = vld.sshfl [vmem:[#allocation1 + $0x28] sm:$0xff pattern:$0x75316420] }
  0xac   : > { %5277 = vst [vmem:[#allocation31_spill] sm:$0xff] %v3893_v46 }
  0xad   : > { %1118 = vst [vmem:[#allocation1 + $0x20] ss:$2 sm:$0xff] %v3710_v1  ;;  %v1074_v47 = vld.sshfl [vmem:[#allocation1 + $0x10] sm:$0xff pattern:$0x75316420]  ;;  %1084 = vrot.lane.b32.xlu2 %v1078_v12, %s5181_s25 }
  0xae   : > { %v1075_v53 = vld.sshfl [vmem:[#allocation1 + $0x18] sm:$0xff pattern:$0x75316420]  ;;  %v1080_v34 = vrot.slane %v1074_v47, 6 }
  0xaf   : > { %1116 = vst [vmem:[#allocation1 + $0x10] ss:$2 sm:$0xff] %v3714_v2  ;;  %v1081_v6 = vrot.slane %v1075_v53, 6  ;;  %v1120_v20 = vld.sshfl [vmem:[#allocation1 + $0x8] sm:$0xff pattern:$0x75316420] }
  0xb0   : > { %v1119_v31 = vld.sshfl [vmem:[#allocation1] sm:$0xff pattern:$0x75316420]  ;;  %v1082_v53 = vrot.slane %v1076_v37, 6  ;;  %v1126_v47 = vrot.slane %v1120_v20, 3  ;;  %v505_v37 = vpop.permute.xlu1 %504 }
  0xb1   : > { %1161 = vst [vmem:[#allocation1] ss:$2 sm:$0xff] %v3707_v0  ;;  %1037 = vrot.lane.b32.xlu1 %v1028_v62, %s5179_s29  ;;  %s5183_s29 = smov 44   ;;  %v1125_v15 = vrot.slane %v1119_v31, 3 }
  0xb2   : > { %1090 = vrot.lane.b32.xlu0 %v1081_v6, %s5181_s25  ;;  %v3907_v6 = vpop.permute.xlu2 %506 }
  0xb3   : > { %5279 = vst [vmem:[#allocation33_spill] sm:$0xff] %v3907_v6  ;;  %v517_v20 = vsel %vm5230_vm0, %v505_v37, %v3907_v6 }
  0xb4   : > { %v1123_v26 = vld.sshfl [vmem:[#allocation1 + $0x20] sm:$0xff pattern:$0x75316420]  ;;  %v3901_v28 = vld.sshfl [vmem:[#allocation1 + $0x28] sm:$0xff pattern:$0x75316420] }
  0xb5   : > { %5278 = vst [vmem:[#allocation32_spill] sm:$0xff] %v3901_v28  ;;  %1088 = vrot.lane.b32.xlu2 %v1080_v34, %s5181_s25  ;;  %v1129_v18 = vrot.slane %v1123_v26, 3 }
  0xb6   : > { %1165 = vst [vmem:[#allocation1 + $0x20] ss:$2 sm:$0xff] %v3710_v1  ;;  %v1121_v58 = vld.sshfl [vmem:[#allocation1 + $0x10] sm:$0xff pattern:$0x75316420] }
  0xb7   : > { %v1122_v12 = vld.sshfl [vmem:[#allocation1 + $0x18] sm:$0xff pattern:$0x75316420]  ;;  %v1127_v7 = vrot.slane %v1121_v58, 3  ;;  %528 = vst [vmem:[#allocation2] sm:$0xc0] %v517_v20 }
  0xb8   : > { %1163 = vst [vmem:[#allocation1 + $0x10] ss:$2 sm:$0xff] %v3714_v2  ;;  %v1166_v42 = vld.sshfl [vmem:[#allocation1] sm:$0xff pattern:$0x75316420]  ;;  %v1128_v39 = vrot.slane %v1122_v12, 3  ;;  %v560_v31 = vpop.permute.xlu0 %559 }
  0xb9   : > { %v1167_v50 = vld.sshfl [vmem:[#allocation1 + $0x8] sm:$0xff pattern:$0x75316420]  ;;  %1092 = vrot.lane.b32.xlu1 %v1082_v53, %s5181_s25  ;;  %535 = vst [vmem:[#allocation2 + $0x30] sm:$0x1] %v517_v20  ;;  %v3926_v26 = vpop.permute.xlu1 %561  ;;  %s5185_s25 = smov 43  }
  0xba   : > { %1202 = vst [vmem:[#allocation1] ss:$2 sm:$0xff] %v3707_v0  ;;  %1135 = vrot.lane.b32.xlu0 %v1127_v7, %s5183_s29  ;;  %v3923_v37 = vpop.permute.xlu2 %602 }
  0xbb   : > { %5282 = vst [vmem:[#allocation36_spill] sm:$0xff] %v3923_v37 }
  0xbc   : > { %5283 = vst [vmem:[#allocation37_spill] sm:$0xff] %v3926_v26 }
  0xbd   : > { %v1170_v62 = vld.sshfl [vmem:[#allocation1 + $0x20] sm:$0xff pattern:$0x75316420]  ;;  %v3911_v3 = vld.sshfl [vmem:[#allocation1 + $0x28] sm:$0xff pattern:$0x75316420]  ;;  %1133 = vrot.lane.b32.xlu2 %v1126_v47, %s5183_s29 }
  0xbe   : > { %5280 = vst [vmem:[#allocation34_spill] sm:$0xff] %v3911_v3 }
  0xbf   : > { %1206 = vst [vmem:[#allocation1 + $0x20] ss:$2 sm:$0xff] %v3710_v1  ;;  %v1168_v58 = vld.sshfl [vmem:[#allocation1 + $0x10] sm:$0xff pattern:$0x75316420] }
  0xc0   : > { %v1169_v34 = vld.sshfl [vmem:[#allocation1 + $0x18] sm:$0xff pattern:$0x75316420] }
  0xc1   : > { %1204 = vst [vmem:[#allocation1 + $0x10] ss:$2 sm:$0xff] %v3714_v2  ;;  %v1208_v7 = vld.sshfl [vmem:[#allocation1 + $0x8] sm:$0xff pattern:$0x75316420]  ;;  %1131 = vrot.lane.b32.xlu1 %v1125_v15, %s5183_s29 }
  0xc2   : > { %v1207_v53 = vld.sshfl [vmem:[#allocation1] sm:$0xff pattern:$0x75316420]  ;;  %1139 = vrot.lane.b32.xlu0 %v1129_v18, %s5183_s29  ;;  %v572_v18 = vsel %vm571_vm1, %v560_v31, %v3926_v26 }
  0xc3   : > { %1249 = vst [vmem:[#allocation1] ss:$2 sm:$0xff] %v3707_v0 }
  0xc4   : > { %583 = vst [vmem:[#allocation2 + $0x30] sm:$0xe] %v572_v18  ;;  %v3946_v18 = vpop.permute.xlu2 %652 }
  0xc5   : > { %1137 = vrot.lane.b32.xlu2 %v1128_v39, %s5183_s29  ;;  %5285 = vst [vmem:[#allocation39_spill] sm:$0xff] %v3946_v18  ;;  %s5190_s29 = smov 42  }
  0xc6   : > { %v1211_v47 = vld.sshfl [vmem:[#allocation1 + $0x20] sm:$0xff pattern:$0x75316420]  ;;  %v3921_v55 = vld.sshfl [vmem:[#allocation1 + $0x28] sm:$0xff pattern:$0x75316420] }
  0xc7   : > { %5281 = vst [vmem:[#allocation35_spill] sm:$0xff] %v3921_v55  ;;  %v1217_v55 = vrot.slane %v1211_v47, 5 }
  0xc8   : > { %1253 = vst [vmem:[#allocation1 + $0x20] ss:$2 sm:$0xff] %v3710_v1  ;;  %v1209_v20 = vld.sshfl [vmem:[#allocation1 + $0x10] sm:$0xff pattern:$0x75316420] }
  0xc9   : > { %v3928_v6 = vld.sshfl [vmem:[#allocation1 + $0x18] sm:$0xff pattern:$0x75316420]  ;;  %1176 = vrot.lane.b32.xlu1 %v1168_v58, %s5185_s25 }
  0xca   : > { %1251 = vst [vmem:[#allocation1 + $0x10] ss:$2 sm:$0xff] %v3714_v2  ;;  %v1255_v15 = vld.sshfl [vmem:[#allocation1 + $0x8] sm:$0xff pattern:$0x75316420]  ;;  %1174 = vrot.lane.b32.xlu0 %v1167_v50, %s5185_s25  ;;  %v1214_v50 = vrot.slane %v1208_v7, 5  ;;  %v651_v58 = vpop.permute.xlu1 %650 }
  0xcb   : > { %v3934_v12 = vld.sshfl [vmem:[#allocation1] sm:$0xff pattern:$0x75316420]  ;;  %v663_v3 = vsel %vm5231_vm2, %v651_v58, %v3946_v18 }
  0xcc   : > { %1302 = vst [vmem:[#allocation1] ss:$2 sm:$0xff] %v3707_v0 }
  0xcd   : > { %1172 = vrot.lane.b32.xlu2 %v1166_v42, %s5185_s25  ;;  %v1213_v42 = vrot.slane %v1207_v53, 5  ;;  %674 = vst [vmem:[#allocation2 + $0x30] sm:$0x80] %v663_v3 }
  0xce   : > { %681 = vst [vmem:[#allocation2 + $0x60] sm:$0x3] %v663_v3  ;;  %v1261_v3 = vrot.slane %v1255_v15, 2 }
  0xcf   : > { %v1258_v46 = vld.sshfl [vmem:[#allocation1 + $0x20] sm:$0xff pattern:$0x75316420]  ;;  %v3939_v28 = vld.sshfl [vmem:[#allocation1 + $0x28] sm:$0xff pattern:$0x75316420] }
  0xd0   : > { %5284 = vst [vmem:[#allocation38_spill] sm:$0xff] %v3939_v28  ;;  %v754_v28 = vpop.permute.xlu2 %753  ;;  %v1264_v58 = vrot.slane %v1258_v46, 2 }
  0xd1   : > { %1306 = vst [vmem:[#allocation1 + $0x20] ss:$2 sm:$0xff] %v3710_v1  ;;  %v1256_v39 = vld.sshfl [vmem:[#allocation1 + $0x10] sm:$0xff pattern:$0x75316420]  ;;  %1180 = vrot.lane.b32.xlu1 %v1170_v62, %s5185_s25 }
  0xd2   : > { %v3942_v31 = vld.sshfl [vmem:[#allocation1 + $0x18] sm:$0xff pattern:$0x75316420]  ;;  %1178 = vrot.lane.b32.xlu0 %v1169_v34, %s5185_s25  ;;  %v1215_v34 = vrot.slane %v1209_v20, 5  ;;  %s5197_s25 = smov 41  }
  0xd3   : > { %1304 = vst [vmem:[#allocation1 + $0x10] ss:$2 sm:$0xff] %v3714_v2  ;;  %v1307_v26 = vld.sshfl [vmem:[#allocation1] sm:$0xff pattern:$0x75316420]  ;;  %v706_v62 = vpop.permute.xlu0 %705 }
  0xd4   : > { %v3948_v48 = vld.sshfl [vmem:[#allocation1 + $0x8] sm:$0xff pattern:$0x75316420]  ;;  %v3962_v53 = vpop.permute.xlu1 %707 }
  0xd5   : > { %1351 = vst [vmem:[#allocation1 + $0x1] ss:$2 sm:$0xff] %v3707_v0  ;;  %1221 = vrot.lane.b32.xlu2 %v1214_v50, %s5190_s29  ;;  %v718_v18 = vsel %vm717_vm3, %v706_v62, %v3962_v53  ;;  %v1314_v11 = vrot.slane %v3948_v48, 7 }
  0xd6   : > { %5286 = vst [vmem:[#allocation40_spill] sm:$0xff] %v3962_v53 }
  0xd7   : > { %729 = vst [vmem:[#allocation2 + $0x60] sm:$0x1c] %v718_v18  ;;  %v1262_v18 = vrot.slane %v1256_v39, 2 }
  0xd8   : > { %v3964_v47 = vld.sshfl [vmem:[#allocation1 + $0x20] sm:$0xff pattern:$0x75316420]  ;;  %v3966_v50 = vld.sshfl [vmem:[#allocation1 + $0x28] sm:$0xff pattern:$0x75316420] }
  0xd9   : > { %1219 = vrot.lane.b32.xlu1 %v1213_v42, %s5190_s29  ;;  %5287 = vst [vmem:[#allocation41_spill] sm:$0xff] %v3966_v50  ;;  %v1260_v50 = vrot.slane %v3934_v12, 2  ;;  %v1317_v48 = vrot.slane %v3964_v47, 7 }
  0xda   : > { %v3956_v37 = vld.sshfl [vmem:[#allocation1 + $0x18] sm:$0xff pattern:$0x75316420]  ;;  %v1309_v7 = vld.sshfl [vmem:[#allocation1 + $0x10] sm:$0xff pattern:$0x75316420]  ;;  %1227 = vrot.lane.b32.xlu0 %v1217_v55, %s5190_s29 }
  0xdb   : > { %1353 = vst [vmem:[#allocation1 + $0x11] ss:$2 sm:$0xff] %v3714_v2  ;;  %v1216_v55 = vrot.slane %v3928_v6, 5 }
  0xdc   : > { %1355 = vst [vmem:[#allocation1 + $0x21] ss:$2 sm:$0xff] %v3710_v1  ;;  %v1359_v20 = vld.sshfl [vmem:[#allocation1 + $0x8] sm:$0xff pattern:$0x75316420] }
  0xdd   : > { %1223 = vrot.lane.b32.xlu2 %v1215_v34, %s5190_s29  ;;  %v843_v34 = vpop.permute.xlu2 %842  ;;  %v3976_v15 = vld.sshfl [vmem:[#allocation1] sm:$0xff pattern:$0x75316420]  ;;  %v3981_v62 = vpop.permute.xlu0 %755 }
  0xde   : > { %1398 = vst [vmem:[#allocation1] ss:$2 sm:$0xff] %v3707_v0  ;;  %v766_v6 = vsel %vm5229_vm4, %v754_v28, %v3981_v62 }
  0xdf   : > { %5288 = vst [vmem:[#allocation42_spill] sm:$0xff] %v3981_v62  ;;  %v1315_v62 = vrot.slane %v1309_v7, 7 }
  0xe0   : > { %777 = vst [vmem:[#allocation2 + $0x60] sm:$0xe0] %v766_v6 }
  0xe1   : > { %1274 = vrot.lane.b32.xlu1 %v1264_v58, %s5197_s25 }
  0xe2   : > { %v3972_v42 = vld.sshfl [vmem:[#allocation1 + $0x10] sm:$0xff pattern:$0x75316420]  ;;  %1268 = vrot.lane.b32.xlu0 %v1261_v3, %s5197_s25  ;;  %v3978_v46 = vld.sshfl [vmem:[#allocation1 + $0x18] sm:$0xff pattern:$0x75316420] }
  0xe3   : > { %1400 = vst [vmem:[#allocation1 + $0x10] ss:$2 sm:$0xff] %v3714_v2  ;;  %v1313_v3 = vrot.slane %v1307_v26, 7  ;;  %v3987_v58 = vld.sshfl [vmem:[#allocation1 + $0x20] sm:$0xff pattern:$0x75316420] }
  0xe4   : > { %v3989_v53 = vld.sshfl [vmem:[#allocation1 + $0x28] sm:$0xff pattern:$0x75316420] }
  0xe5   : > { %1225 = vrot.lane.b32.xlu2 %v1216_v55, %s5190_s29  ;;  %5289 = vst [vmem:[#allocation43_spill] sm:$0xff] %v3989_v53  ;;  %v3995_v55 = vpop.permute.xlu1 %797  ;;  %v3997_v28 = vld.sshfl [vmem:[#allocation1] sm:$0xff pattern:$0x75316420]  ;;  %v796_v6 = vpop.permute.xlu0 %795  ;;  %s5195_s29 = smov 16  }
  0xe6   : > { %1402 = vst [vmem:[#allocation1 + $0x20] ss:$2 sm:$0xff] %v3710_v1  ;;  %v3999_v39 = vld.sshfl [vmem:[#allocation1 + $0x8] sm:$0xff pattern:$0x75316420]  ;;  %v808_v12 = vsel %vm5235_vm5, %v796_v6, %v3995_v55 }
  0xe7   : > { %5290 = vst [vmem:[#allocation44_spill] sm:$0xff] %v3995_v55 }
  0xe8   : > { %1458 = vst [vmem:[#allocation1] ss:$2 sm:$0xff] %v3707_v0  ;;  %v943_v26 = vpop.permute.xlu2 %942 }
  0xe9   : > { %1319 = vrot.lane.b32.xlu1 %v1313_v3, %s5194_s24  ;;  %819 = vst [vmem:[#allocation2 + $0x90] sm:$0x7] %v808_v12 }
  0xea   : > { %1270 = vrot.lane.b32.xlu0 %v1262_v18, %s5197_s25  ;;  %v1263_v18 = vrot.slane %v3942_v31, 2  ;;  %v1408_v14 = vld.sshfl [vmem:[#allocation1 + $0x18] sm:$0xff pattern:$0x75316420] }
  0xed   : > { %1266 = vrot.lane.b32.xlu2 %v1260_v50, %s5197_s25  ;;  %v4006_v3 = vld.sshfl [vmem:[#allocation1 + $0x20] sm:$0xff pattern:$0x75316420]  ;;  %v4008_v53 = vld.sshfl [vmem:[#allocation1 + $0x28] sm:$0xff pattern:$0x75316420] }
  0xee   : > { %5291 = vst [vmem:[#allocation45_spill] sm:$0xff] %v4008_v53  ;;  %v1407_v50 = vld.sshfl [vmem:[#allocation1 + $0x10] sm:$0xff pattern:$0x75316420]  ;;  %v4015_v31 = vpop.permute.xlu0 %844 }
  0xef   : > { %1462 = vst [vmem:[#allocation1 + $0x20] ss:$2 sm:$0xff] %v3710_v1  ;;  %v855_v6 = vsel %vm5236_vm6, %v843_v34, %v4015_v31  ;;  %v1465_v12 = vld.sshfl [vmem:[#allocation1] sm:$0xff pattern:$0x75316420] }
  0xf0   : > { %1460 = vst [vmem:[#allocation1 + $0x10] ss:$2 sm:$0xff] %v3714_v2  ;;  %v4018_v7 = vpop.permute.xlu2 %986  ;;  %v1472_v53 = vrot.slane %v1465_v12, 6 }
  0xf1   : > { %1323 = vrot.lane.b32.xlu1 %v1315_v62, %s5194_s24  ;;  %5292 = vst [vmem:[#allocation46_spill] sm:$0xff] %v4015_v31  ;;  %v1316_v62 = vrot.slane %v3956_v37, 7 }
  0xf2   : > { %1272 = vrot.lane.b32.xlu0 %v1263_v18, %s5197_s25  ;;  %866 = vst [vmem:[#allocation2 + $0x90] sm:$0x38] %v855_v6  ;;  %v4023_v18 = vld.sshfl [vmem:[#allocation1 + $0x8] sm:$0xff pattern:$0x75316420]  ;;  %s5211_s25 = smov 13  }
  0xf3   : > { %1512 = vst [vmem:[#allocation1] ss:$2 sm:$0xff] %v3707_v0 }
  0xf5   : > { %1321 = vrot.lane.b32.xlu2 %v1314_v11, %s5194_s24 }
  0xf6   : > { %v4034_v34 = vld.sshfl [vmem:[#allocation1 + $0x28] sm:$0xff pattern:$0x75316420]  ;;  %v1469_v37 = vld.sshfl [vmem:[#allocation1 + $0x20] sm:$0xff pattern:$0x75316420] }
  0xf7   : > { %v890_v11 = vpop.permute.xlu0 %889  ;;  %5294 = vst [vmem:[#allocation48_spill] sm:$0xff] %v4034_v34  ;;  %v1476_v12 = vrot.slane %v1469_v37, 6 }
  0xf8   : > { %v4029_v55 = vpop.permute.xlu1 %891  ;;  %1516 = vst [vmem:[#allocation1 + $0x20] ss:$2 sm:$0xff] %v3710_v1 }
  0xf9   : > { %1367 = vrot.lane.b32.xlu1 %v1359_v20, %s5195_s29  ;;  %5293 = vst [vmem:[#allocation47_spill] sm:$0xff] %v4029_v55  ;;  %v902_v47 = vsel %vm5224_vm7, %v890_v11, %v4029_v55  ;;  %v4041_v20 = vld.sshfl [vmem:[#allocation1 + $0x18] sm:$0xff pattern:$0x75316420]  ;;  %v1414_v55 = vrot.slane %v1407_v50, 1 }
  0xfa   : > { %1327 = vrot.lane.b32.xlu0 %v1317_v48, %s5194_s24  ;;  %913 = vst [vmem:[#allocation2 + $0x90] sm:$0xc0] %v902_v47  ;;  %v4038_v48 = vld.sshfl [vmem:[#allocation1 + $0x8] sm:$0xff pattern:$0x75316420] }
  0xfb   : > { %919 = vst [vmem:[#allocation2 + $0xc0] sm:$0x1] %v902_v47  ;;  %v1467_v11 = vld.sshfl [vmem:[#allocation1 + $0x10] sm:$0xff pattern:$0x75316420] }
  0xfc   : > { %1514 = vst [vmem:[#allocation1 + $0x10] ss:$2 sm:$0xff] %v3714_v2 }
  0xfd   : > { %1325 = vrot.lane.b32.xlu2 %v1316_v62, %s5194_s24  ;;  %v1519_v62 = vld.sshfl [vmem:[#allocation1] sm:$0xff pattern:$0x75316420]  ;;  %s5198_s24 = smov 15  }
  0xfe   : > { %1566 = vst [vmem:[#allocation1] ss:$2 sm:$0xff] %v3707_v0 }
  0xff   : > { %v4036_v6 = vpop.permute.xlu2 %1039  ;;  %v4063_v50 = vld.sshfl [vmem:[#allocation1 + $0x20] sm:$0xff pattern:$0x75316420] }
 0x101   : > { %1371 = vrot.lane.b32.xlu1 %v3978_v46, %s5195_s29  ;;  %v4048_v31 = vpop.permute.xlu0 %944 }
 0x102   : > { %1365 = vrot.lane.b32.xlu0 %v3976_v15, %s5195_s29  ;;  %v955_v47 = vsel %vm954_vm8, %v943_v26, %v4048_v31  ;;  %v1412_v15 = vrot.slane %v3997_v28, 1  ;;  %v1413_v26 = vrot.slane %v3999_v39, 1 }
 0x103   : > { %966 = vst [vmem:[#allocation2 + $0xc0] sm:$0xe] %v955_v47  ;;  %v4065_v47 = vld.sshfl [vmem:[#allocation1 + $0x28] sm:$0xff pattern:$0x75316420] }
 0x104   : > { %1570 = vst [vmem:[#allocation1 + $0x20] ss:$2 sm:$0xff] %v3710_v1  ;;  %v1416_v1 = vrot.slane %v4006_v3, 1 }
 0x105   : > { %1369 = vrot.lane.b32.xlu2 %v3972_v42, %s5195_s29  ;;  %v1415_v42 = vrot.slane %v1408_v14, 1 }
 0x107   : > { %v1085_v46 = vpop.permute.xlu2 %1084 }
 0x108   : > { %v985_v0 = vpop.permute.xlu1 %984 }
 0x109   : > { %1419 = vrot.lane.b32.xlu1 %v1412_v15, %s5198_s24  ;;  %v997_v34 = vsel %vm5228_vm9, %v985_v0, %v4018_v7  ;;  %v1473_v0 = vrot.slane %v4023_v18, 6  ;;  %v1475_v18 = vrot.slane %v4041_v20, 6 }
 0x10a   : > { %1423 = vrot.lane.b32.xlu0 %v1414_v55, %s5198_s24  ;;  %1008 = vst [vmem:[#allocation2 + $0xc0] sm:$0x70] %v997_v34  ;;  %v1521_v55 = vld.sshfl [vmem:[#allocation1 + $0x10] sm:$0xff pattern:$0x75316420] }
 0x10b   : > { %v4070_v34 = vld.sshfl [vmem:[#allocation1 + $0x18] sm:$0xff pattern:$0x75316420] }
 0x10c   : > { %1568 = vst [vmem:[#allocation1 + $0x10] ss:$2 sm:$0xff] %v3714_v2 }
 0x10d   : > { %1373 = vrot.lane.b32.xlu2 %v3987_v58, %s5195_s29  ;;  %s5221_s29 = smov 14  }
 0x10f   : > { %v1089_v28 = vpop.permute.xlu2 %1088 }
 0x111   : > { %1421 = vrot.lane.b32.xlu1 %v1413_v26, %s5198_s24  ;;  %v1526_v26 = vrot.slane %v1519_v62, 3 }
 0x112   : > { %1425 = vrot.lane.b32.xlu0 %v1415_v42, %s5198_s24  ;;  %v1032_v58 = vpop.permute.xlu0 %1031 }
 0x113   : > { %v1034_v14 = vpop.permute.xlu1 %1033 }
 0x114   : > { %v1044_v39 = vsel %vm5203_vm10, %v1032_v58, %v1034_v14  ;;  %v1474_v58 = vrot.slane %v1467_v11, 6 }
 0x115   : > { %1479 = vrot.lane.b32.xlu2 %v1472_v53, %s5221_s29  ;;  %1055 = vst [vmem:[#allocation2 + $0xc0] sm:$0x80] %v1044_v39 }
 0x116   : > { %1061 = vst [vmem:[#allocation2 + $0xf0] sm:$0x3] %v1044_v39 }
 0x117   : > { %v4076_v15 = vpop.permute.xlu2 %1133 }
 0x119   : > { %1427 = vrot.lane.b32.xlu1 %v1416_v1, %s5198_s24  ;;  %v1527_v1 = vrot.slane %v4038_v48, 3  ;;  %s5222_s24 = smov 12  }
 0x11a   : > { %1487 = vrot.lane.b32.xlu0 %v1476_v12, %s5221_s29 }
 0x11b   : > { %v1036_v42 = vpop.permute.xlu1 %1035 }
 0x11c   : > { %v1087_v2 = vpop.permute.xlu0 %1086  ;;  %v1045_v3 = vsel %vm5203_vm10, %v1034_v14, %v1036_v42 }
 0x11d   : > { %1481 = vrot.lane.b32.xlu2 %v1473_v0, %s5221_s29  ;;  %v1097_v53 = vsel %vm5202_vm11, %v1085_v46, %v1087_v2  ;;  %v1098_v37 = vsel %vm5202_vm11, %v1087_v2, %v1089_v28  ;;  %1056 = vst [vmem:[#allocation2 + $0xc8] sm:$0x80] %v1045_v3  ;;  %v1573_v0 = vld.sshfl [vmem:[#allocation1] sm:$0xff pattern:$0x75316420]  ;;  %v1528_v2 = vrot.slane %v1521_v55, 3 }
 0x11e   : > { %1108 = vst [vmem:[#allocation2 + $0xf0] sm:$0x1c] %v1097_v53 }
 0x11f   : > { %v1138_v39 = vpop.permute.xlu2 %1137  ;;  %1109 = vst [vmem:[#allocation2 + $0xf8] sm:$0x1c] %v1098_v37  ;;  %v1529_v37 = vrot.slane %v4070_v34, 3 }
 0x120   : > { %1062 = vst [vmem:[#allocation2 + $0xf8] sm:$0x3] %v1045_v3 }
 0x121   : > { %1483 = vrot.lane.b32.xlu1 %v1474_v58, %s5221_s29  ;;  %v1530_v58 = vrot.slane %v4063_v50, 3  ;;  %v1576_v50 = vld.sshfl [vmem:[#allocation1 + $0x18] sm:$0xff pattern:$0x75316420] }
 0x122   : > { %1533 = vrot.lane.b32.xlu0 %v1526_v26, %s5211_s25  ;;  %v1574_v26 = vld.sshfl [vmem:[#allocation1 + $0x8] sm:$0xff pattern:$0x75316420] }
 0x123   : > { %v1038_v46 = vpop.permute.xlu1 %1037 }
 0x124   : > { %v1091_v12 = vpop.permute.xlu0 %1090  ;;  %v1046_v62 = vsel %vm5203_vm10, %v1036_v42, %v1038_v46  ;;  %v1047_v11 = vsel %vm5203_vm10, %v1038_v46, %v4036_v6  ;;  %vm5209_vm10 = vcmask 130048  }
 0x125   : > { %1485 = vrot.lane.b32.xlu2 %v1475_v18, %s5221_s29  ;;  %v1099_v14 = vsel %vm5202_vm11, %v1089_v28, %v1091_v12  ;;  %1057 = vst [vmem:[#allocation2 + $0xd0] sm:$0x80] %v1046_v62 }
 0x126   : > { %1110 = vst [vmem:[#allocation2 + $0x100] sm:$0x1c] %v1099_v14  ;;  %v1575_v14 = vld.sshfl [vmem:[#allocation1 + $0x10] sm:$0xff pattern:$0x75316420] }
 0x127   : > { %v1173_v20 = vpop.permute.xlu2 %1172  ;;  %1058 = vst [vmem:[#allocation2 + $0xd8] sm:$0x80] %v1047_v11 }
 0x128   : > { %1063 = vst [vmem:[#allocation2 + $0x100] sm:$0x3] %v1046_v62 }
 0x129   : > { %1064 = vst [vmem:[#allocation2 + $0x108] sm:$0x3] %v1047_v11  ;;  %1535 = vrot.lane.b32.xlu1 %v1527_v1, %s5211_s25  ;;  %v1577_v1 = vld.sshfl [vmem:[#allocation1 + $0x20] sm:$0xff pattern:$0x75316420] }
 0x12a   : > { %1580 = vrot.lane.b32.xlu0 %v1573_v0, %s5222_s24 }
 0x12b   : > { %v4096_v42 = vpop.permute.xlu1 %1092 }
 0x12c   : > { %v1136_v28 = vpop.permute.xlu0 %1135  ;;  %v1100_v55 = vsel %vm5202_vm11, %v1091_v12, %v4096_v42  ;;  %vm1331_vm11 = vcmask 326656  }
 0x12d   : > { %1537 = vrot.lane.b32.xlu2 %v1528_v2, %s5211_s25  ;;  %v1145_v48 = vsel %vm5214_vm12, %v4076_v15, %v1136_v28  ;;  %v1146_v53 = vsel %vm5214_vm12, %v1136_v28, %v1138_v39  ;;  %1111 = vst [vmem:[#allocation2 + $0x108] sm:$0x1c] %v1100_v55  ;;  %v885_v28 = vrot.slane %v3851_v40, 2  ;;  %v938_v55 = vrot.slane %v3864_v56, 7 }
 0x12e   : > { %1156 = vst [vmem:[#allocation2 + $0xf8] sm:$0xe0] %v1145_v48  ;;  %v887_v56 = vrot.slane %v3846_v38, 2  ;;  %v940_v38 = vrot.slane %v3859_v54, 7  ;;  %v451_v54 = vrot.slane %v3725_v10, 5 }
 0x12f   : > { %v1222_v3 = vpop.permute.xlu2 %1221  ;;  %1157 = vst [vmem:[#allocation2 + $0x100] sm:$0xe0] %v1146_v53 }
 0x131   : > { %1539 = vrot.lane.b32.xlu1 %v1529_v37, %s5211_s25 }
 0x132   : > { %1582 = vrot.lane.b32.xlu0 %v1574_v26, %s5222_s24 }
 0x133   : > { %v1132_v46 = vpop.permute.xlu1 %1131 }
 0x134   : > { %v4108_v18 = vpop.permute.xlu0 %1139  ;;  %v1144_v34 = vsel %vm5214_vm12, %v1132_v46, %v4076_v15 }
 0x135   : > { %1541 = vrot.lane.b32.xlu2 %v1530_v58, %s5211_s25  ;;  %v1147_v12 = vsel %vm5214_vm12, %v1138_v39, %v4108_v18  ;;  %1155 = vst [vmem:[#allocation2 + $0xf0] sm:$0xe0] %v1144_v34  ;;  %v886_v58 = vrot.slane %v3853_v45, 2  ;;  %v939_v45 = vrot.slane %v3866_v61, 7  ;;  %v450_v61 = vrot.slane %v3723_v9, 5  ;;  %s5299_s25 = smov 125  }
 0x136   : > { %1158 = vst [vmem:[#allocation2 + $0x108] sm:$0xe0] %v1147_v12  ;;  %v838_v9 = vrot.slane %v3838_v23, 5  ;;  %v839_v23 = vrot.slane %v3840_v24, 5  ;;  %vm1594_vm12 = vcmask 97280  }
 0x137   : > { %v1224_v62 = vpop.permute.xlu2 %1223 }
 0x138   : > { %v1233_v11 = vsel %vm1231_vm13, %v1222_v3, %v1224_v62 }
 0x139   : > { %1244 = vst [vmem:[#allocation2 + $0x128] sm:$0x38] %v1233_v11  ;;  %1586 = vrot.lane.b32.xlu1 %v1576_v50, %s5222_s24 }
 0x13a   : > { %1584 = vrot.lane.b32.xlu0 %v1575_v14, %s5222_s24 }
 0x13b   : > { %v1177_v2 = vpop.permute.xlu1 %1176 }
 0x13c   : > { %v1175_v0 = vpop.permute.xlu0 %1174 }
 0x13d   : > { %1588 = vrot.lane.b32.xlu2 %v1577_v1, %s5222_s24  ;;  %v1185_v15 = vsel %vm5208_vm14, %v1173_v20, %v1175_v0  ;;  %v1186_v39 = vsel %vm5208_vm14, %v1175_v0, %v1177_v2 }
 0x13e   : > { %1196 = vst [vmem:[#allocation2 + $0x120] sm:$0x7] %v1185_v15 }
 0x13f   : > { %v1226_v48 = vpop.permute.xlu2 %1225  ;;  %1197 = vst [vmem:[#allocation2 + $0x128] sm:$0x7] %v1186_v39 }
 0x140   : > { %v1234_v53 = vsel %vm1231_vm13, %v1224_v62, %v1226_v48 }
 0x141   : > { %1245 = vst [vmem:[#allocation2 + $0x130] sm:$0x38] %v1234_v53  ;;  %893 = vrot.lane.b32.xlu1 %v885_v28, %s5200_s13 }
 0x142   : > { %604 = vrot.lane.b32.xlu0 %v3764_v32, %s5219_s22 }
 0x143   : > { %v4127_v26 = vpop.permute.xlu1 %1180 }
 0x144   : > { %v1179_v37 = vpop.permute.xlu0 %1178 }
 0x145   : > { %946 = vrot.lane.b32.xlu2 %v938_v55, %s5210_s16  ;;  %v1187_v20 = vsel %vm5208_vm14, %v1177_v2, %v1179_v37  ;;  %v1188_v40 = vsel %vm5208_vm14, %v1179_v37, %v4127_v26  ;;  %v840_v55 = vrot.slane %v3833_v17, 5  ;;  %v646_v17 = vrot.slane %v3786_v43, 1 }
 0x146   : > { %1198 = vst [vmem:[#allocation2 + $0x130] sm:$0x7] %v1187_v20  ;;  %vm1493_vm14 = vcmask 113664  }
 0x147   : > { %v1267_v46 = vpop.permute.xlu2 %1266  ;;  %1199 = vst [vmem:[#allocation2 + $0x138] sm:$0x7] %v1188_v40  ;;  %v701_v40 = vrot.slane %v3799_v51, 6  ;;  %v647_v51 = vrot.slane %v3788_v44, 1  ;;  %v703_v44 = vrot.slane %v3794_v49, 6 }
 0x149   : > { %895 = vrot.lane.b32.xlu1 %v886_v58, %s5200_s13  ;;  %v749_v58 = vrot.slane %v3812_v59, 3  ;;  %v648_v59 = vrot.slane %v3781_v41, 1  ;;  %v750_v41 = vrot.slane %v3814_v60, 3  ;;  %v500_v60 = vrot.slane %v3746_v21, 2 }
 0x14a   : > { %988 = vrot.lane.b32.xlu0 %v3877_v16, %s5205_s15 }
 0x14b   : > { %v1220_v12 = vpop.permute.xlu1 %1219 }
 0x14c   : > { %v4138_v32 = vpop.permute.xlu0 %1227  ;;  %v1232_v14 = vsel %vm1231_vm13, %v1220_v12, %v1222_v3 }
 0x14d   : > { %897 = vrot.lane.b32.xlu2 %v887_v56, %s5200_s13  ;;  %v1235_v34 = vsel %vm1231_vm13, %v1226_v48, %v4138_v32  ;;  %1243 = vst [vmem:[#allocation2 + $0x120] sm:$0x38] %v1232_v14  ;;  %s5216_s13 = smov 127  }
 0x14e   : > { %1246 = vst [vmem:[#allocation2 + $0x138] sm:$0x38] %v1235_v34 }
 0x14f   : > { %v1322_v62 = vpop.permute.xlu2 %1321 }
 0x151   : > { %950 = vrot.lane.b32.xlu1 %v940_v38, %s5210_s16  ;;  %v702_v38 = vrot.slane %v3801_v52, 6 }
 0x152   : > { %948 = vrot.lane.b32.xlu0 %v939_v45, %s5210_s16  ;;  %s5298_s16 = smov 126  }
 0x153   : > { %v4148_v50 = vpop.permute.xlu1 %1274 }
 0x154   : > { %v1269_v16 = vpop.permute.xlu0 %1268 }
 0x155   : > { %990 = vrot.lane.b32.xlu2 %v3879_v25, %s5205_s15  ;;  %v1279_v3 = vsel %vm5213_vm15, %v1267_v46, %v1269_v16 }
 0x156   : > { %1290 = vst [vmem:[#allocation2 + $0x120] sm:$0xc0] %v1279_v3 }
 0x157   : > { %v1326_v11 = vpop.permute.xlu2 %1325  ;;  %1296 = vst [vmem:[#allocation2 + $0x150] sm:$0x1] %v1279_v3 }
 0x159   : > { %456 = vrot.lane.b32.xlu1 %v450_v61, %s5216_s13  ;;  %v751_v61 = vrot.slane %v3807_v57, 3  ;;  %v555_v57 = vrot.slane %v3759_v29, 7 }
 0x15a   : > { %992 = vrot.lane.b32.xlu0 %v3872_v8, %s5205_s15  ;;  %s5296_s15 = smov 99  }
 0x15b   : > { %v1320_v0 = vpop.permute.xlu1 %1319 }
 0x15c   : > { %v1271_v1 = vpop.permute.xlu0 %1270  ;;  %v1332_v2 = vsel %vm1331_vm11, %v1320_v0, %v1322_v62 }
 0x15d   : > { %458 = vrot.lane.b32.xlu2 %v451_v54, %s5216_s13  ;;  %v1280_v25 = vsel %vm5213_vm15, %v1269_v16, %v1271_v1  ;;  %1343 = vst [vmem:[#allocation2 + $0x150] sm:$0xe] %v1332_v2 }
 0x15e   : > { %1291 = vst [vmem:[#allocation2 + $0x128] sm:$0xc0] %v1280_v25 }
 0x15f   : > { %v1370_v15 = vpop.permute.xlu2 %1369  ;;  %1297 = vst [vmem:[#allocation2 + $0x158] sm:$0x1] %v1280_v25  ;;  %v4216_v25 = vld [vmem:[%s3704_s14 + $0x18] sm:$0x7]  ;;  %s5304_s14 = smov 15  }
 0x160   : > { %1357 = vst [vmem:[#allocation1 + $0x31] ss:$2 sm:$0xff] %v4216_v25 }
 0x161   : > { %846 = vrot.lane.b32.xlu1 %v838_v9, %s5206_s12 }
 0x162   : > { %799 = vrot.lane.b32.xlu0 %v3825_v4, %s5204_s30 }
 0x163   : > { %v1324_v8 = vpop.permute.xlu1 %1323 }
 0x164   : > { %v1273_v10 = vpop.permute.xlu0 %1272  ;;  %v1333_v4 = vsel %vm1331_vm11, %v1322_v62, %v1324_v8  ;;  %v1334_v53 = vsel %vm1331_vm11, %v1324_v8, %v1326_v11 }
 0x165   : > { %801 = vrot.lane.b32.xlu2 %v3827_v5, %s5204_s30  ;;  %v1281_v39 = vsel %vm5213_vm15, %v1271_v1, %v1273_v10  ;;  %v1282_v28 = vsel %vm5213_vm15, %v1273_v10, %v4148_v50  ;;  %1344 = vst [vmem:[#allocation2 + $0x158] sm:$0xe] %v1333_v4  ;;  %v502_v10 = vrot.slane %v3741_v19, 2  ;;  %v557_v4 = vrot.slane %v3754_v27, 7 }
 0x166   : > { %1292 = vst [vmem:[#allocation2 + $0x130] sm:$0xc0] %v1281_v39  ;;  %vm5218_vm15 = vcmask 105472  }
 0x167   : > { %v4171_v48 = vpop.permute.xlu2 %1373  ;;  %1293 = vst [vmem:[#allocation2 + $0x138] sm:$0xc0] %v1282_v28 }
 0x168   : > { %1298 = vst [vmem:[#allocation2 + $0x160] sm:$0x1] %v1281_v39  ;;  %v556_v39 = vrot.slane %v3761_v30, 7 }
 0x169   : > { %1299 = vst [vmem:[#allocation2 + $0x168] sm:$0x1] %v1282_v28  ;;  %848 = vrot.lane.b32.xlu1 %v839_v23, %s5206_s12 }
 0x16a   : > { %803 = vrot.lane.b32.xlu0 %v3820_v63, %s5204_s30  ;;  %1345 = vst [vmem:[#allocation2 + $0x160] sm:$0xe] %v1334_v53  ;;  %s5295_s30 = smov 100  }
 0x16b   : > { %v1368_v24 = vpop.permute.xlu1 %1367 }
 0x16c   : > { %v4179_v5 = vpop.permute.xlu0 %1327  ;;  %v1381_v20 = vsel %vm5209_vm10, %v1368_v24, %v1370_v15 }
 0x16d   : > { %850 = vrot.lane.b32.xlu2 %v840_v55, %s5206_s12  ;;  %v1335_v37 = vsel %vm1331_vm11, %v1326_v11, %v4179_v5  ;;  %1393 = vst [vmem:[#allocation2 + $0x158] sm:$0x70] %v1381_v20  ;;  %s5297_s12 = smov 98   ;;  %v452_v20 = vrot.slane %v3733_v13, 5 }
 0x16e   : > { %1346 = vst [vmem:[#allocation2 + $0x168] sm:$0xe] %v1335_v37 }
 0x16f   : > { %v1480_v63 = vpop.permute.xlu2 %1479 }
 0x171   : > { %709 = vrot.lane.b32.xlu1 %v701_v40, %s5296_s15 }
 0x172   : > { %654 = vrot.lane.b32.xlu0 %v646_v17, %s5295_s30 }
 0x173   : > { %v1372_v56 = vpop.permute.xlu1 %1371 }
 0x174   : > { %v1366_v46 = vpop.permute.xlu0 %1365  ;;  %v1382_v34 = vsel %vm5209_vm10, %v1370_v15, %v1372_v56  ;;  %v1383_v43 = vsel %vm5209_vm10, %v1372_v56, %v4171_v48  ;;  %v501_v15 = vrot.slane %v3748_v22, 2 }
 0x175   : > { %757 = vrot.lane.b32.xlu2 %v749_v58, %s5297_s12  ;;  %v1380_v12 = vsel %vm5209_vm10, %v1366_v46, %v1368_v24  ;;  %1394 = vst [vmem:[#allocation2 + $0x160] sm:$0x70] %v1382_v34  ;;  %vm5215_vm10 = vcmask 121856   ;;  %v5301_v34 = vld [vmem:[#allocation16_spill] sm:$0xff] }
 0x176   : > { %1392 = vst [vmem:[#allocation2 + $0x150] sm:$0x70] %v1380_v12 }
 0x177   : > { %v1482_v14 = vpop.permute.xlu2 %1481  ;;  %1395 = vst [vmem:[#allocation2 + $0x168] sm:$0x70] %v1383_v43  ;;  %v454_v43 = vrot.slane %v5301_v34, 5  ;;  %v5317_v34 = vld [vmem:[#allocation34_spill] sm:$0xff] }
 0x178   : > { %v1494_v45 = vsel %vm1493_vm14, %v1480_v63, %v1482_v14  ;;  %v5300_v63 = vld [vmem:[#allocation18_spill] sm:$0xff] }
 0x179   : > { %1506 = vst [vmem:[#allocation2 + $0x180] sm:$0x1c] %v1494_v45  ;;  %658 = vrot.lane.b32.xlu1 %v648_v59, %s5295_s30  ;;  %v453_v58 = vrot.slane %v5300_v63, 5  ;;  %v5303_v45 = vld [vmem:[#allocation48_spill] sm:$0xff]  ;;  %v5314_v63 = vld [vmem:[#allocation43_spill] sm:$0xff] }
 0x17a   : > { %656 = vrot.lane.b32.xlu0 %v647_v51, %s5295_s30  ;;  %v5302_v51 = vld [vmem:[#allocation45_spill] sm:$0xff] }
 0x17b   : > { %v1420_v16 = vpop.permute.xlu1 %1419  ;;  %v1417_v59 = vrot.slane %v5302_v51, 1 }
 0x17c   : > { %v1424_v62 = vpop.permute.xlu0 %1423 }
 0x17d   : > { %711 = vrot.lane.b32.xlu2 %v702_v38, %s5296_s15  ;;  %v1477_v38 = vrot.slane %v5303_v45, 6  ;;  %v1650_v45 = vld [vmem:[#allocation2 + $0x128] sm:$0xff] }
 0x17f   : > { %v1486_v3 = vpop.permute.xlu2 %1485 }
 0x181   : > { %759 = vrot.lane.b32.xlu1 %v750_v41, %s5297_s12 }
 0x182   : > { %713 = vrot.lane.b32.xlu0 %v703_v44, %s5296_s15 }
 0x183   : > { %v1422_v11 = vpop.permute.xlu1 %1421 }
 0x184   : > { %v1426_v52 = vpop.permute.xlu0 %1425  ;;  %v1434_v1 = vsel %vm5215_vm10, %v1420_v16, %v1422_v11  ;;  %v1435_v49 = vsel %vm5215_vm10, %v1422_v11, %v1424_v62  ;;  %v1531_v11 = vrot.slane %v4065_v47, 3 }
 0x185   : > { %761 = vrot.lane.b32.xlu2 %v751_v61, %s5297_s12  ;;  %v1436_v54 = vsel %vm5215_vm10, %v1424_v62, %v1426_v52  ;;  %1446 = vst [vmem:[#allocation2 + $0x150] sm:$0x80] %v1434_v1 }
 0x186   : > { %1448 = vst [vmem:[#allocation2 + $0x160] sm:$0x80] %v1436_v54 }
 0x187   : > { %v4213_v0 = vpop.permute.xlu2 %1537  ;;  %1454 = vst [vmem:[#allocation2 + $0x190] sm:$0x3] %v1436_v54 }
 0x188   : > { %1447 = vst [vmem:[#allocation2 + $0x158] sm:$0x80] %v1435_v49 }
 0x189   : > { %1452 = vst [vmem:[#allocation2 + $0x180] sm:$0x3] %v1434_v1  ;;  %563 = vrot.lane.b32.xlu1 %v555_v57, %s5299_s25  ;;  %v5306_v57 = vld [vmem:[#allocation41_spill] sm:$0xff] }
 0x18a   : > { %508 = vrot.lane.b32.xlu0 %v500_v60, %s5298_s16  ;;  %1453 = vst [vmem:[#allocation2 + $0x188] sm:$0x3] %v1435_v49  ;;  %v5305_v49 = vld [vmem:[#allocation38_spill] sm:$0xff] }
 0x18b   : > { %v4222_v9 = vpop.permute.xlu1 %1427  ;;  %v1265_v60 = vrot.slane %v5305_v49, 2  ;;  %v1646_v49 = vld [vmem:[#allocation2 + $0x108] sm:$0xff] }
 0x18c   : > { %v4220_v2 = vpop.permute.xlu0 %1487  ;;  %v1437_v29 = vsel %vm5215_vm10, %v1426_v52, %v4222_v9  ;;  %vm1682_vm10 = vcmask 1042432  }
 0x18d   : > { %606 = vrot.lane.b32.xlu2 %v3773_v35, %s5219_s22  ;;  %v1497_v21 = vsel %vm1493_vm14, %v1486_v3, %v4220_v2  ;;  %1449 = vst [vmem:[#allocation2 + $0x168] sm:$0x80] %v1437_v29  ;;  %v4238_v35 = vld.sshfl [vmem:[#allocation1 + $0x30] sm:$0xff pattern:$0x75316420] }
 0x18e   : > { %1509 = vst [vmem:[#allocation2 + $0x198] sm:$0x1c] %v1497_v21  ;;  %v1649_v21 = vld [vmem:[#allocation2 + $0x120] sm:$0xff] }
 0x18f   : > { %v4233_v8 = vpop.permute.xlu2 %1541  ;;  %1455 = vst [vmem:[#allocation2 + $0x198] sm:$0x3] %v1437_v29 }
 0x190   : > { %1404 = vst [vmem:[#allocation1 + $0x30] ss:$2 sm:$0xff] %v4216_v25 }
 0x191   : > { %512 = vrot.lane.b32.xlu1 %v502_v10, %s5298_s16 }
 0x192   : > { %510 = vrot.lane.b32.xlu0 %v501_v15, %s5298_s16  ;;  %v5310_v15 = vld [vmem:[#allocation36_spill] sm:$0xff] }
 0x193   : > { %v1484_v23 = vpop.permute.xlu1 %1483 }
 0x194   : > { %v1534_v28 = vpop.permute.xlu0 %1533  ;;  %v1495_v19 = vsel %vm1493_vm14, %v1482_v14, %v1484_v23  ;;  %v1496_v22 = vsel %vm1493_vm14, %v1484_v23, %v1486_v3  ;;  %v1643_v23 = vld [vmem:[#allocation2 + $0xf0] sm:$0xff] }
 0x195   : > { %565 = vrot.lane.b32.xlu2 %v556_v39, %s5299_s25  ;;  %1507 = vst [vmem:[#allocation2 + $0x188] sm:$0x1c] %v1495_v19  ;;  %v5311_v39 = vld [vmem:[#allocation47_spill] sm:$0xff] }
 0x196   : > { %1508 = vst [vmem:[#allocation2 + $0x190] sm:$0x1c] %v1496_v22 }
 0x197   : > { %v4245_v30 = vpop.permute.xlu2 %1588  ;;  %v4250_v53 = vld.sshfl [vmem:[#allocation1 + $0x30] sm:$0xff pattern:$0x75316420] }
 0x198   : > { %1464 = vst [vmem:[#allocation1 + $0x30] ss:$2 sm:$0xff] %v4216_v25 }
 0x199   : > { %608 = vrot.lane.b32.xlu1 %v3775_v36, %s5219_s22  ;;  %v1578_v36 = vld.sshfl [vmem:[#allocation1 + $0x28] sm:$0xff pattern:$0x75316420] }
 0x19a   : > { %567 = vrot.lane.b32.xlu0 %v557_v4, %s5299_s25 }
 0x19b   : > { %v1536_v24 = vpop.permute.xlu1 %1535 }
 0x19c   : > { %v1581_v55 = vpop.permute.xlu0 %1580  ;;  %v1548_v27 = vsel %vm5218_vm15, %v1534_v28, %v1536_v24  ;;  %v1549_v37 = vsel %vm5218_vm15, %v1536_v24, %v4213_v0  ;;  %v1637_v24 = vld [vmem:[#allocation2 + $0xc0] sm:$0xff] }
 0x19d   : > { %610 = vrot.lane.b32.xlu2 %v3768_v33, %s5219_s22  ;;  %1560 = vst [vmem:[#allocation2 + $0x180] sm:$0xe0] %v1548_v27  ;;  %s5308_s22 = smov 41  }
 0x19e   : > { %1561 = vst [vmem:[#allocation2 + $0x188] sm:$0xe0] %v1549_v37 }
 0x19f   : > { %v4259_v17 = vpop.permute.xlu2 %946  ;;  %v4267_v33 = vld.sshfl [vmem:[#allocation1 + $0x30] sm:$0xff pattern:$0x75316420] }
 0x1a0   : > { %v956_v40 = vsel %vm954_vm8, %v4048_v31, %v4259_v17  ;;  %1518 = vst [vmem:[#allocation1 + $0x30] ss:$2 sm:$0xff] %v4216_v25 }
 0x1a1   : > { %967 = vst [vmem:[#allocation2 + $0xc8] sm:$0xe] %v956_v40  ;;  %460 = vrot.lane.b32.xlu1 %v452_v20, %s5216_s13 }
 0x1a2   : > { %1590 = vrot.lane.b32.xlu0 %v1578_v36, %s5222_s24  ;;  %v5312_v36 = vld [vmem:[#allocation35_spill] sm:$0xff]  ;;  %s5316_s24 = smov 43  }
 0x1a3   : > { %v1540_v13 = vpop.permute.xlu1 %1539  ;;  %v1218_v40 = vrot.slane %v5312_v36, 5 }
 0x1a4   : > { %v1583_v46 = vpop.permute.xlu0 %1582  ;;  %v1550_v31 = vsel %vm5218_vm15, %v4213_v0, %v1540_v13  ;;  %v1551_v12 = vsel %vm5218_vm15, %v1540_v13, %v4233_v8  ;;  %v1661_v1 = vld [vmem:[#allocation2 + $0x180] sm:$0xff]  ;;  %v1318_v0 = vrot.slane %v5306_v57, 7  ;;  %vm5232_vm15 = vcmask 1014784  }
 0x1a5   : > { %462 = vrot.lane.b32.xlu2 %v453_v58, %s5216_s13  ;;  %v1595_v56 = vsel %vm1594_vm12, %v1581_v55, %v1583_v46  ;;  %1562 = vst [vmem:[#allocation2 + $0x190] sm:$0xe0] %v1550_v31  ;;  %v1662_v27 = vld [vmem:[#allocation2 + $0x188] sm:$0xff]  ;;  %v1631_v58 = vld [vmem:[#allocation2 + $0x90] sm:$0xff]  ;;  %v1657_v13 = vld [vmem:[#allocation2 + $0x160] sm:$0xff] }
 0x1a6   : > { %1607 = vst [vmem:[#allocation2 + $0x1b0] sm:$0x7] %v1595_v56  ;;  %v1658_v56 = vld [vmem:[#allocation2 + $0x168] sm:$0xff] }
 0x1a7   : > { %v4278_v14 = vpop.permute.xlu2 %897  ;;  %1563 = vst [vmem:[#allocation2 + $0x198] sm:$0xe0] %v1551_v12  ;;  %v4283_v62 = vld.sshfl [vmem:[#allocation1 + $0x30] sm:$0xff pattern:$0x75316420] }
 0x1a8   : > { %1572 = vst [vmem:[#allocation1 + $0x30] ss:$2 sm:$0xff] %v4216_v25  ;;  %v1655_v25 = vld [vmem:[#allocation2 + $0x150] sm:$0xff] }
 0x1a9   : > { %1429 = vrot.lane.b32.xlu1 %v1417_v59, %s5304_s14  ;;  %v1625_v59 = vld [vmem:[#allocation2 + $0x60] sm:$0xff] }
 0x1aa   : > { %464 = vrot.lane.b32.xlu0 %v454_v43, %s5216_s13  ;;  %s5307_s13 = smov 13  }
 0x1ab   : > { %v1587_v44 = vpop.permute.xlu1 %1586 }
 0x1ac   : > { %v1585_v16 = vpop.permute.xlu0 %1584  ;;  %v1598_v61 = vsel %vm1594_vm12, %v1587_v44, %v4245_v30  ;;  %v1663_v37 = vld [vmem:[#allocation2 + $0x190] sm:$0xff] }
 0x1ad   : > { %1489 = vrot.lane.b32.xlu2 %v1477_v38, %s5221_s29  ;;  %v1596_v41 = vsel %vm1594_vm12, %v1583_v46, %v1585_v16  ;;  %v1597_v3 = vsel %vm1594_vm12, %v1585_v16, %v1587_v44  ;;  %v1667_v52 = vld [vmem:[#allocation2 + $0x1b0] sm:$0x7]  ;;  %1610 = vst [vmem:[#allocation2 + $0x1c8] sm:$0x7] %v1598_v61  ;;  %s5309_s29 = smov 40   ;;  %v1656_v46 = vld [vmem:[#allocation2 + $0x158] sm:$0xff] }
 0x1ae   : > { %1608 = vst [vmem:[#allocation2 + $0x1b8] sm:$0x7] %v1596_v41  ;;  %3254 = vmatpush.msk.msra.mxu0 %vm1682_vm10, %v1667_v52  ;;  %v1664_v20 = vld [vmem:[#allocation2 + $0x198] sm:$0xff]  ;;  %v1651_v44 = vld [vmem:[#allocation2 + $0x130] sm:$0xff] }
 0x1af   : > { %v4293_v54 = vpop.permute.xlu2 %990  ;;  %1609 = vst [vmem:[#allocation2 + $0x1c0] sm:$0x7] %v1597_v3  ;;  %v1652_v41 = vld [vmem:[#allocation2 + $0x138] sm:$0xff] }
 0x1b0   : > { %1708 = vmatpush.msra.mxu0 %v1661_v1  ;;  %v5318_v61 = vld [vmem:[#allocation30_spill] sm:$0xff]  ;;  %v1645_v1 = vld [vmem:[#allocation2 + $0x100] sm:$0xff] }
 0x1b1   : > { %1276 = vrot.lane.b32.xlu1 %v1265_v60, %s5308_s22  ;;  %s5313_s22 = smov 16   ;;  %v1030_v52 = vrot.slane %v5318_v61, 1  ;;  %v5319_v60 = vld [vmem:[#allocation32_spill] sm:$0xff] }
 0x1b2   : > { %1543 = vrot.lane.b32.xlu0 %v1531_v11, %s5307_s13  ;;  %1709 = vmatpush.msra.mxu0 %v1655_v25  ;;  %v1130_v57 = vrot.slane %v5319_v60, 3 }
 0x1b3   : > { %v894_v47 = vpop.permute.xlu1 %893 }
 0x1b4   : > { %v4299_v29 = vpop.permute.xlu0 %604  ;;  %1710 = vmatpush.msra.mxu0 %v1649_v21  ;;  %v903_v28 = vsel %vm5224_vm7, %v5311_v39, %v894_v47  ;;  %v1670_v55 = vld [vmem:[#allocation2 + $0x1c8] sm:$0x7] }
 0x1b5   : > { %1329 = vrot.lane.b32.xlu2 %v1318_v0, %s5309_s29  ;;  %v615_v10 = vsel %vm5232_vm15, %v5310_v15, %v4299_v29  ;;  %v1668_v19 = vld [vmem:[#allocation2 + $0x1b8] sm:$0x7]  ;;  %914 = vst [vmem:[#allocation2 + $0x98] sm:$0xc0] %v903_v28  ;;  %3260 = vmatpush.msk.msra.mxu3 %vm1682_vm10, %v1670_v55  ;;  %s5315_s29 = smov 42  }
 0x1b6   : > { %626 = vst [vmem:[#allocation2 + $0x30] sm:$0x70] %v615_v10  ;;  %1711 = vmatpush.msra.mxu0 %v1643_v23  ;;  %3256 = vmatpush.msk.msra.mxu1 %vm1682_vm10, %v1668_v19  ;;  %v1669_v22 = vld [vmem:[#allocation2 + $0x1c0] sm:$0x7] }
 0x1b7   : > { %v4308_v4 = vpop.permute.xlu2 %458  ;;  %3258 = vmatpush.msk.msra.mxu2 %vm1682_vm10, %v1669_v22  ;;  %920 = vst [vmem:[#allocation2 + $0xc8] sm:$0x1] %v903_v28  ;;  %1768 = vmatpush.msra.mxu3 %v1664_v20  ;;  %v5320_v0 = vld [vmem:[#allocation31_spill] sm:$0xff]  ;;  %v1579_v23 = vld.sshfl [vmem:[#allocation1 + $0x30] sm:$0xff pattern:$0x75316420] }
 0x1b8   : > { %1712 = vmatpush.msra.mxu0 %v1637_v24  ;;  %1728 = vmatpush.msra.mxu1 %v1662_v27  ;;  %v1083_v25 = vrot.slane %v5320_v0, 6  ;;  %v5324_v19 = vld [vmem:[#allocation28_spill] sm:$0xff]  ;;  %v5325_v55 = vld [vmem:[#allocation27_spill] sm:$0xff] }
 0x1b9   : > { %1748 = vmatpush.msra.mxu2 %v1663_v37  ;;  %1769 = vmatpush.msra.mxu3 %v1658_v56  ;;  %v941_v22 = vrot.slane %v5324_v19, 7  ;;  %v888_v24 = vrot.slane %v5325_v55, 2  ;;  %v5340_v0 = vld [vmem:[#allocation23_spill] sm:$0xff]  ;;  %v5343_v19 = vld [vmem:[#allocation40_spill] sm:$0xff] }
 0x1ba   : > { %1375 = vrot.lane.b32.xlu0 %v5314_v63, %s5313_s22  ;;  %1713 = vmatpush.msra.mxu0 %v1631_v58  ;;  %v5329_v63 = vld [vmem:[#allocation42_spill] sm:$0xff] }
 0x1bb   : > { %1729 = vmatpush.msra.mxu1 %v1656_v46  ;;  %1749 = vmatpush.msra.mxu2 %v1657_v13  ;;  %v896_v12 = vpop.permute.xlu1 %895  ;;  %v1478_v46 = vrot.slane %v4267_v33, 6  ;;  %v1418_v13 = vrot.slane %v4250_v53, 1  ;;  %v4373_v53 = vld [vmem:[%s5335_s1] sm:$0x3f]  ;;  %s3576_s1 = smov 76  }
 0x1bc   : > { %v989_v31 = vpop.permute.xlu0 %988  ;;  %1182 = vrot.lane.b32.xlu1 %v5317_v34, %s5316_s24  ;;  %v904_v38 = vsel %vm5224_vm7, %v894_v47, %v896_v12  ;;  %1714 = vmatpush.msra.mxu0 %v1625_v59  ;;  %v905_v3 = vsel %vm5224_vm7, %v896_v12, %v4278_v14  ;;  %s5321_s24 = smov 69   ;;  %vm5233_vm7 = vcmask 1039360   ;;  %v5333_v12 = vld [vmem:[#allocation44_spill] sm:$0xff] }
 0x1bd   : > { %1229 = vrot.lane.b32.xlu2 %v1218_v40, %s5315_s29  ;;  %v998_v43 = vsel %vm5228_vm9, %v4018_v7, %v989_v31  ;;  %v999_v51 = vsel %vm5228_vm9, %v989_v31, %v4293_v54  ;;  %v1619_v16 = vld [vmem:[#allocation2 + $0x30] sm:$0xff]  ;;  %1730 = vmatpush.msra.mxu1 %v1650_v45  ;;  %v1644_v7 = vld [vmem:[#allocation2 + $0xf8] sm:$0xff]  ;;  %915 = vst [vmem:[#allocation2 + $0xa0] sm:$0xc0] %v904_v38  ;;  %s5322_s29 = smov 44  }
 0x1be   : > { %1009 = vst [vmem:[#allocation2 + $0xc8] sm:$0x70] %v998_v43  ;;  %1750 = vmatpush.msra.mxu2 %v1651_v44  ;;  %1770 = vmatpush.msra.mxu3 %v1652_v41  ;;  %v5336_v44 = vld [vmem:[#allocation26_spill] sm:$0xff] }
 0x1bf   : > { %v4326_v11 = vpop.permute.xlu2 %801  ;;  %1010 = vst [vmem:[#allocation2 + $0xd0] sm:$0x70] %v999_v51  ;;  %1715 = vmatpush.msra.mxu0 %v1619_v16  ;;  %1731 = vmatpush.msra.mxu1 %v1644_v7  ;;  %v5334_v51 = vld [vmem:[#allocation46_spill] sm:$0xff]  ;;  %v841_v41 = vrot.slane %v5336_v44, 5 }
 0x1c0   : > { %916 = vst [vmem:[#allocation2 + $0xa8] sm:$0xc0] %v905_v3  ;;  %1751 = vmatpush.msra.mxu2 %v1645_v1  ;;  %1771 = vmatpush.msra.mxu3 %v1646_v49 }
 0x1c1   : > { %921 = vst [vmem:[#allocation2 + $0xd0] sm:$0x1] %v904_v38  ;;  %v1532_v38 = vrot.slane %v4283_v62, 3  ;;  %v5339_v62 = vld [vmem:[#allocation25_spill] sm:$0xff] }
 0x1c2   : > { %1041 = vrot.lane.b32.xlu0 %v1030_v52, %s5321_s24  ;;  %922 = vst [vmem:[#allocation2 + $0xd8] sm:$0x1] %v905_v3  ;;  %s5326_s24 = smov 12   ;;  %v3555_v3 = vmov 0  }
 0x1c3   : > { %v4331_v47 = vpop.permute.xlu1 %950  ;;  %3434 = vset.pattern.permute.xlu2 %v3555_v3  ;;  %3435 = vset.pattern.permute.xlu1 %v3555_v3 }
 0x1c4   : > { %v949_v21 = vpop.permute.xlu0 %948  ;;  %1094 = vrot.lane.b32.xlu1 %v1083_v25, %s5323_s0  ;;  %s5327_s0 = smov 71   ;;  %3466 = vset.pattern.permute.xlu0 %v3555_v3  ;;  %v704_v25 = vrot.slane %v5340_v0, 6 }
 0x1c5   : > { %1141 = vrot.lane.b32.xlu2 %v1130_v57, %s5322_s29  ;;  %v957_v15 = vsel %vm954_vm8, %v4259_v17, %v949_v21  ;;  %v958_v10 = vsel %vm954_vm8, %v949_v21, %v4331_v47  ;;  %v1638_v39 = vld [vmem:[#allocation2 + $0xc8] sm:$0xff]  ;;  %s5328_s29 = smov 72   ;;  %v5341_v21 = vld [vmem:[#allocation22_spill] sm:$0xff] }
 0x1c6   : > { %968 = vst [vmem:[#allocation2 + $0xd0] sm:$0xe] %v957_v15  ;;  %1732 = vmatpush.msra.mxu1 %v1638_v39  ;;  %v649_v15 = vrot.slane %v5341_v21, 1  ;;  %v5342_v39 = vld [vmem:[#allocation39_spill] sm:$0xff] }
 0x1c7   : > { %v4339_v28 = vpop.permute.xlu2 %850  ;;  %969 = vst [vmem:[#allocation2 + $0xd8] sm:$0xe] %v958_v10 }
 0x1ca   : > { %1592 = vrot.lane.b32.xlu0 %v1579_v23, %s5326_s24 }
 0x1cb   : > { %v457_v17 = vpop.permute.xlu1 %456 }
 0x1cc   : > { %v4344_v27 = vpop.permute.xlu0 %992  ;;  %899 = vrot.lane.b32.xlu1 %v888_v24, %s5328_s29  ;;  %v469_v20 = vsel %vm5233_vm7, %v457_v17, %v4308_v4  ;;  %v5344_v24 = vld [vmem:[#allocation24_spill] sm:$0xff] }
 0x1cd   : > { %952 = vrot.lane.b32.xlu2 %v941_v22, %s5327_s0  ;;  %v1000_v37 = vsel %vm5228_vm9, %v4293_v54, %v4344_v27  ;;  %v1639_v36 = vld [vmem:[#allocation2 + $0xd0] sm:$0xff]  ;;  %480 = vst [vmem:[#allocation2] sm:$0x38] %v469_v20  ;;  %s5330_s0 = smov 70   ;;  %vm5234_vm9 = vcmask 613376   ;;  %v752_v17 = vrot.slane %v5344_v24, 3 }
 0x1ce   : > { %1011 = vst [vmem:[#allocation2 + $0xd8] sm:$0x70] %v1000_v37  ;;  %1752 = vmatpush.msra.mxu2 %v1639_v36  ;;  %v5331_v54 = vld [vmem:[#allocation29_spill] sm:$0xff] }
 0x1cf   : > { %v4353_v40 = vpop.permute.xlu2 %757 }
 0x1d0   : > { %v767_v58 = vsel %vm5229_vm4, %v5329_v63, %v4353_v40  ;;  %v5345_v63 = vld [vmem:[#allocation20_spill] sm:$0xff] }
 0x1d1   : > { %778 = vst [vmem:[#allocation2 + $0x68] sm:$0xe0] %v767_v58  ;;  %v558_v58 = vrot.slane %v5345_v63, 7  ;;  %v5354_v63 = vld [vmem:[#allocation15_spill] sm:$0xff] }
 0x1d2   : > { %994 = vrot.lane.b32.xlu0 %v5331_v54, %s5330_s0  ;;  %s5247_s0 = smov 48  }
 0x1d3   : > { %v847_v31 = vpop.permute.xlu1 %846 }
 0x1d4   : > { %v800_v56 = vpop.permute.xlu0 %799  ;;  %1431 = vrot.lane.b32.xlu1 %v1418_v13, %s5304_s14  ;;  %v856_v33 = vsel %vm5236_vm6, %v5334_v51, %v847_v31  ;;  %v1613_v45 = vld [vmem:[#allocation2] sm:$0xff]  ;;  %s5241_s14 = smov 88  }
 0x1d5   : > { %1491 = vrot.lane.b32.xlu2 %v1478_v46, %s5332_s26  ;;  %v809_v34 = vsel %vm5235_vm5, %v5333_v12, %v800_v56  ;;  %v810_v43 = vsel %vm5235_vm5, %v800_v56, %v4326_v11  ;;  %v1640_v59 = vld [vmem:[#allocation2 + $0xd8] sm:$0xff]  ;;  %1716 = vmatpush.msra.mxu0 %v1613_v45  ;;  %867 = vst [vmem:[#allocation2 + $0x98] sm:$0x38] %v856_v33  ;;  %s5348_s26 = smov 124   ;;  %v5349_v33 = vld [vmem:[#allocation21_spill] sm:$0xff] }
 0x1d6   : > { %820 = vst [vmem:[#allocation2 + $0x98] sm:$0x7] %v809_v34  ;;  %1772 = vmatpush.msra.mxu3 %v1640_v59  ;;  %3255 = vmatmul.msk.f32.vlgmr.msra.gmra.mxu0 %vm5234_vm9, %v4373_v53  ;;  %v5346_v46 = vld [vmem:[#allocation19_spill] sm:$0xff] }
 0x1d7   : > { %v4376_v16 = vpop.permute.xlu2 %711  ;;  %821 = vst [vmem:[#allocation2 + $0xa0] sm:$0x7] %v810_v43  ;;  %v503_v13 = vrot.slane %v5346_v46, 2  ;;  %v5347_v43 = vld [vmem:[#allocation17_spill] sm:$0xff]  ;;  %v385_v59 = vld [vmem:[%s5350_s2] sm:$0x3f] }
 0x1d8   : > { %v455_v51 = vrot.slane %v5347_v43, 5  ;;  %s3577_s2 = smov 92  }
 0x1da   : > { %1545 = vrot.lane.b32.xlu0 %v1532_v38, %s5307_s13  ;;  %s5351_s13 = smov 127  }
 0x1db   : > { %v849_v52 = vpop.permute.xlu1 %848 }
 0x1dc   : > { %v4382_v61 = vpop.permute.xlu0 %803  ;;  %805 = vrot.lane.b32.xlu1 %v5339_v62, %s5338_s23  ;;  %v857_v1 = vsel %vm5236_vm6, %v847_v31, %v849_v52  ;;  %v858_v49 = vsel %vm5236_vm6, %v849_v52, %v4339_v28  ;;  %s5239_s23 = smov 104  }
 0x1dd   : > { %852 = vrot.lane.b32.xlu2 %v841_v41, %s5337_s19  ;;  %v811_v7 = vsel %vm5235_vm5, %v4326_v11, %v4382_v61  ;;  %868 = vst [vmem:[#allocation2 + $0xa0] sm:$0x38] %v857_v1  ;;  %v1632_v57 = vld [vmem:[#allocation2 + $0x98] sm:$0xff]  ;;  %v5352_v1 = vld [vmem:[#allocation33_spill] sm:$0xff]  ;;  %vm679_vm5 = vcmask 228359  }
 0x1de   : > { %822 = vst [vmem:[#allocation2 + $0xa8] sm:$0x7] %v811_v7  ;;  %1733 = vmatpush.msra.mxu1 %v1632_v57  ;;  %v5353_v57 = vld [vmem:[#allocation37_spill] sm:$0xff] }
 0x1df   : > { %v4393_v60 = vpop.permute.xlu2 %761  ;;  %869 = vst [vmem:[#allocation2 + $0xa8] sm:$0x38] %v858_v49 }
 0x1e2   : > { %1377 = vrot.lane.b32.xlu0 %v4238_v35, %s5313_s22 }
 0x1e3   : > { %v710_v10 = vpop.permute.xlu1 %709 }
 0x1e4   : > { %v655_v11 = vpop.permute.xlu0 %654  ;;  %660 = vrot.lane.b32.xlu1 %v649_v15, %s5295_s30  ;;  %v719_v22 = vsel %vm717_vm3, %v5343_v19, %v710_v10  ;;  %v1633_v55 = vld [vmem:[#allocation2 + $0xa0] sm:$0xff]  ;;  %v720_v35 = vsel %vm717_vm3, %v710_v10, %v4376_v16 }
 0x1e5   : > { %715 = vrot.lane.b32.xlu2 %v704_v25, %s5296_s15  ;;  %v664_v23 = vsel %vm5231_vm2, %v5342_v39, %v655_v11  ;;  %1753 = vmatpush.msra.mxu2 %v1633_v55  ;;  %730 = vst [vmem:[#allocation2 + $0x68] sm:$0x1c] %v719_v22  ;;  %s5237_s15 = smov 64  }
 0x1e6   : > { %675 = vst [vmem:[#allocation2 + $0x38] sm:$0x80] %v664_v23  ;;  %v1634_v20 = vld [vmem:[#allocation2 + $0xa8] sm:$0xff] }
 0x1e7   : > { %v4406_v37 = vpop.permute.xlu2 %606  ;;  %682 = vst [vmem:[#allocation2 + $0x68] sm:$0x3] %v664_v23  ;;  %1773 = vmatpush.msra.mxu3 %v1634_v20 }
 0x1e8   : > { %v616_v36 = vsel %vm5232_vm15, %v4299_v29, %v4406_v37  ;;  %731 = vst [vmem:[#allocation2 + $0x70] sm:$0x1c] %v720_v35 }
 0x1e9   : > { %627 = vst [vmem:[#allocation2 + $0x38] sm:$0x70] %v616_v36 }
 0x1ea   : > { %763 = vrot.lane.b32.xlu0 %v752_v17, %s5297_s12  ;;  %s3560_s12 = smov 120  }
 0x1eb   : > { %v4416_v56 = vpop.permute.xlu1 %658 }
 0x1ec   : > { %v657_v54 = vpop.permute.xlu0 %656  ;;  %514 = vrot.lane.b32.xlu1 %v503_v13, %s5298_s16 }
 0x1ed   : > { %569 = vrot.lane.b32.xlu2 %v558_v58, %s5299_s25  ;;  %v665_v31 = vsel %vm5231_vm2, %v655_v11, %v657_v54  ;;  %v666_v29 = vsel %vm5231_vm2, %v657_v54, %v4416_v56  ;;  %vm485_vm2 = vcmask 226307  }
 0x1ee   : > { %676 = vst [vmem:[#allocation2 + $0x40] sm:$0x80] %v665_v31  ;;  %v1626_v34 = vld [vmem:[#allocation2 + $0x68] sm:$0xff] }
 0x1ef   : > { %v566_v12 = vpop.permute.xlu2 %565  ;;  %683 = vst [vmem:[#allocation2 + $0x70] sm:$0x3] %v665_v31  ;;  %1734 = vmatpush.msra.mxu1 %v1626_v34 }
 0x1f0   : > { %677 = vst [vmem:[#allocation2 + $0x48] sm:$0x80] %v666_v29 }
 0x1f1   : > { %684 = vst [vmem:[#allocation2 + $0x78] sm:$0x3] %v666_v29 }
 0x1f2   : > { %612 = vrot.lane.b32.xlu0 %v5349_v33, %s5348_s26 }
 0x1f3   : > { %v760_v38 = vpop.permute.xlu1 %759 }
 0x1f4   : > { %v4429_v45 = vpop.permute.xlu0 %713  ;;  %466 = vrot.lane.b32.xlu1 %v455_v51, %s5351_s13  ;;  %v768_v41 = vsel %vm5229_vm4, %v4353_v40, %v760_v38  ;;  %v769_v3 = vsel %vm5229_vm4, %v760_v38, %v4393_v60  ;;  %vm588_vm4 = vcmask 224257  }
 0x1f5   : > { %v721_v44 = vsel %vm717_vm3, %v4376_v16, %v4429_v45  ;;  %1675 = vperm.xlu2 %3434, %v385_v59   ;;  %779 = vst [vmem:[#allocation2 + $0x70] sm:$0xe0] %v768_v41 }
 0x1f6   : > { %732 = vst [vmem:[#allocation2 + $0x78] sm:$0x1c] %v721_v44 }
 0x1f7   : > { %v4439_v52 = vpop.permute.xlu2 %610  ;;  %780 = vst [vmem:[#allocation2 + $0x78] sm:$0xe0] %v769_v3 }
 0x1fb   : > { %v564_v7 = vpop.permute.xlu1 %563 }
 0x1fc   : > { %v509_v62 = vpop.permute.xlu0 %508  ;;  %v573_v16 = vsel %vm571_vm1, %v5353_v57, %v564_v7  ;;  %v574_v40 = vsel %vm571_vm1, %v564_v7, %v566_v12  ;;  %v1627_v0 = vld [vmem:[#allocation2 + $0x70] sm:$0xff] }
 0x1fd   : > { %v518_v49 = vsel %vm5230_vm0, %v5352_v1, %v509_v62  ;;  %1754 = vmatpush.msra.mxu2 %v1627_v0  ;;  %584 = vst [vmem:[#allocation2 + $0x38] sm:$0xe] %v573_v16 }
 0x1fe   : > { %529 = vst [vmem:[#allocation2 + $0x8] sm:$0xc0] %v518_v49  ;;  %v1628_v21 = vld [vmem:[#allocation2 + $0x78] sm:$0xff] }
 0x1ff   : > { %v463_v25 = vpop.permute.xlu2 %462  ;;  %536 = vst [vmem:[#allocation2 + $0x38] sm:$0x1] %v518_v49  ;;  %1774 = vmatpush.msra.mxu3 %v1628_v21 }
 0x200   : > { %585 = vst [vmem:[#allocation2 + $0x40] sm:$0xe] %v574_v40 }
 0x203   : > { %v4446_v11 = vpop.permute.xlu1 %512 }
 0x204   : > { %v511_v15 = vpop.permute.xlu0 %510 }
 0x205   : > { %v519_v10 = vsel %vm5230_vm0, %v509_v62, %v511_v15  ;;  %v520_v39 = vsel %vm5230_vm0, %v511_v15, %v4446_v11  ;;  %vm437_vm0 = vcmask 223232  }
 0x206   : > { %530 = vst [vmem:[#allocation2 + $0x10] sm:$0xc0] %v519_v10  ;;  %v1620_v19 = vld [vmem:[#allocation2 + $0x38] sm:$0xff] }
 0x207   : > { %v4451_v23 = vpop.permute.xlu2 %1489  ;;  %537 = vst [vmem:[#allocation2 + $0x40] sm:$0x1] %v519_v10  ;;  %1735 = vmatpush.msra.mxu1 %v1620_v19 }
 0x208   : > { %v1498_v22 = vsel %vm1493_vm14, %v4220_v2, %v4451_v23  ;;  %531 = vst [vmem:[#allocation2 + $0x18] sm:$0xc0] %v520_v39 }
 0x209   : > { %1510 = vst [vmem:[#allocation2 + $0x1a0] sm:$0x1c] %v1498_v22 }
 0x20a   : > { %538 = vst [vmem:[#allocation2 + $0x48] sm:$0x1] %v520_v39 }
 0x20b   : > { %v609_v24 = vpop.permute.xlu1 %608  ;;  %438 = vst.msk [vmem:[#allocation2 + $0x28] sm:$0x7] %vm437_vm0, %v5354_v63 }
 0x20c   : > { %v4456_v55 = vpop.permute.xlu0 %567  ;;  %v617_v35 = vsel %vm5232_vm15, %v4406_v37, %v609_v24  ;;  %v618_v36 = vsel %vm5232_vm15, %v609_v24, %v4439_v52  ;;  %vm5355_vm15 = vcmask 121856  }
 0x20d   : > { %v575_v17 = vsel %vm571_vm1, %v566_v12, %v4456_v55  ;;  %628 = vst [vmem:[#allocation2 + $0x40] sm:$0x70] %v617_v35 }
 0x20e   : > { %586 = vst [vmem:[#allocation2 + $0x48] sm:$0xe] %v575_v17 }
 0x20f   : > { %v1330_v20 = vpop.permute.xlu2 %1329  ;;  %629 = vst [vmem:[#allocation2 + $0x48] sm:$0x70] %v618_v36 }
 0x210   : > { %v1336_v2 = vsel %vm1331_vm11, %v4179_v5, %v1330_v20  ;;  %1348 = vst.msk [vmem:[#allocation2 + $0x178] sm:$0xe] %vm588_vm4, %v1330_v20  ;;  %vm782_vm11 = vcmask 228357  }
 0x211   : > { %1347 = vst [vmem:[#allocation2 + $0x170] sm:$0xe] %v1336_v2 }
 0x213   : > { %v461_v37 = vpop.permute.xlu1 %460 }
 0x214   : > { %v4469_v58 = vpop.permute.xlu0 %1590  ;;  %v470_v13 = vsel %vm5233_vm7, %v4308_v4, %v461_v37  ;;  %v1621_v5 = vld [vmem:[#allocation2 + $0x40] sm:$0xff]  ;;  %v471_v31 = vsel %vm5233_vm7, %v461_v37, %v463_v25 }
 0x215   : > { %v1599_v46 = vsel %vm1594_vm12, %v4245_v30, %v4469_v58  ;;  %481 = vst [vmem:[#allocation2 + $0x8] sm:$0x38] %v470_v13  ;;  %1755 = vmatpush.msra.mxu2 %v1621_v5 }
 0x216   : > { %1611 = vst [vmem:[#allocation2 + $0x1d0] sm:$0x7] %v1599_v46  ;;  %v1622_v12 = vld [vmem:[#allocation2 + $0x48] sm:$0xff] }
 0x217   : > { %v1230_v54 = vpop.permute.xlu2 %1229  ;;  %482 = vst [vmem:[#allocation2 + $0x10] sm:$0x38] %v471_v31  ;;  %1775 = vmatpush.msra.mxu3 %v1622_v12 }
 0x218   : > { %v1236_v29 = vsel %vm1231_vm13, %v4138_v32, %v1230_v54  ;;  %1248 = vst.msk [vmem:[#allocation2 + $0x148] sm:$0x38] %vm485_vm2, %v1230_v54  ;;  %vm5356_vm13 = vcmask 359424  }
 0x219   : > { %1247 = vst [vmem:[#allocation2 + $0x140] sm:$0x38] %v1236_v29 }
 0x21b   : > { %v4482_v34 = vpop.permute.xlu1 %1429 }
 0x21c   : > { %v4480_v30 = vpop.permute.xlu0 %464  ;;  %v1438_v43 = vsel %vm5355_vm15, %v4222_v9, %v4482_v34  ;;  %v1614_v32 = vld [vmem:[#allocation2 + $0x8] sm:$0xff]  ;;  %vm5357_vm15 = vcmask 105472  }
 0x21d   : > { %v472_v4 = vsel %vm5233_vm7, %v463_v25, %v4480_v30  ;;  %v1671_v51 = vld [vmem:[#allocation2 + $0x1d0] sm:$0x7]  ;;  %1450 = vst [vmem:[#allocation2 + $0x170] sm:$0x80] %v1438_v43  ;;  %1736 = vmatpush.msra.mxu1 %v1614_v32  ;;  %vm533_vm7 = vcmask 228358  }
 0x21e   : > { %483 = vst [vmem:[#allocation2 + $0x18] sm:$0x38] %v472_v4  ;;  %3262 = vmatpush.msk.msrb.mxu0 %vm1682_vm10, %v1671_v51  ;;  %3257 = vmatmul.msk.f32.vlgmr.msra.gmra.mxu1 %vm5234_vm9, %v4373_v53  ;;  %v1615_v38 = vld [vmem:[#allocation2 + $0x10] sm:$0xff] }
 0x21f   : > { %v1142_v33 = vpop.permute.xlu2 %1141  ;;  %1456 = vst [vmem:[#allocation2 + $0x1a0] sm:$0x3] %v1438_v43  ;;  %1756 = vmatpush.msra.mxu2 %v1615_v38 }
 0x220   : > { %v1148_v59 = vsel %vm5356_vm13, %v4108_v18, %v1142_v33  ;;  %1160 = vst.msk [vmem:[#allocation2 + $0x118] sm:$0xe0] %vm782_vm11, %v1142_v33  ;;  %3259 = vmatmul.msk.f32.vlgmr.msra.gmra.mxu2 %vm5234_vm9, %v4373_v53  ;;  %vm5358_vm13 = vcmask 334848  }
 0x221   : > { %1159 = vst [vmem:[#allocation2 + $0x110] sm:$0xe0] %v1148_v59 }
 0x223   : > { %v1277_v41 = vpop.permute.xlu1 %1276 }
 0x224   : > { %v4497_v9 = vpop.permute.xlu0 %1543  ;;  %v1283_v3 = vsel %vm5358_vm13, %v4148_v50, %v1277_v41  ;;  %1295 = vst.msk [vmem:[#allocation2 + $0x148] sm:$0xc0] %vm533_vm7, %v1277_v41  ;;  %vm5359_vm13 = vcmask 130048  }
 0x225   : > { %v1552_v44 = vsel %vm5357_vm15, %v4233_v8, %v4497_v9  ;;  %v1616_v18 = vld [vmem:[#allocation2 + $0x18] sm:$0xff]  ;;  %1294 = vst [vmem:[#allocation2 + $0x140] sm:$0xc0] %v1283_v3  ;;  %vm540_vm15 = vcmask 221184  }
 0x226   : > { %1564 = vst [vmem:[#allocation2 + $0x1a0] sm:$0xe0] %v1552_v44  ;;  %1776 = vmatpush.msra.mxu3 %v1616_v18 }
 0x227   : > { %v953_v62 = vpop.permute.xlu2 %952  ;;  %3261 = vmatmul.msk.f32.vlgmr.msra.gmra.mxu3 %vm5234_vm9, %v4373_v53  ;;  %1300 = vst [vmem:[#allocation2 + $0x170] sm:$0x1] %v1283_v3  ;;  %vm734_vm9 = vcmask 225282  }
 0x228   : > { %v959_v7 = vsel %vm954_vm8, %v4331_v47, %v953_v62  ;;  %971 = vst.msk [vmem:[#allocation2 + $0xe8] sm:$0xe] %vm588_vm4, %v953_v62  ;;  %vm5360_vm8 = vcmask 351232  }
 0x229   : > { %970 = vst [vmem:[#allocation2 + $0xe0] sm:$0xe] %v959_v7 }
 0x22a   : > { %1301 = vst.msk [vmem:[#allocation2 + $0x178] sm:$0x1] %vm540_vm15, %v1277_v41 }
 0x22c   : > { %v4511_v50 = vpop.permute.xlu0 %1375 }
 0x22d   : > { %v1384_v8 = vsel %vm5359_vm13, %v4171_v48, %v4511_v50  ;;  %v1665_v1 = vld [vmem:[#allocation2 + $0x1a0] sm:$0xff]  ;;  %vm5361_vm13 = vcmask 564224  }
 0x22e   : > { %1396 = vst [vmem:[#allocation2 + $0x170] sm:$0x70] %v1384_v8  ;;  %1788 = vmatpush.msrb.mxu0 %v1665_v1  ;;  %v1183_v49 = vpop.permute.xlu1 %1182 }
 0x22f   : > { %v1492_v47 = vpop.permute.xlu2 %1491  ;;  %v1189_v16 = vsel %vm5360_vm8, %v4127_v26, %v1183_v49  ;;  %1201 = vst.msk [vmem:[#allocation2 + $0x148] sm:$0x7] %vm437_vm0, %v1183_v49  ;;  %vm5362_vm8 = vcmask 556032  }
 0x230   : > { %v1499_v57 = vsel %vm1493_vm14, %v4451_v23, %v1492_v47  ;;  %1200 = vst [vmem:[#allocation2 + $0x140] sm:$0x7] %v1189_v16  ;;  %vm686_vm14 = vcmask 222208  }
 0x231   : > { %1511 = vst.msk [vmem:[#allocation2 + $0x1a8] sm:$0x1c] %vm734_vm9, %v1499_v57 }
 0x234   : > { %v1042_v40 = vpop.permute.xlu0 %1041 }
 0x235   : > { %v1048_v48 = vsel %vm5361_vm13, %v4036_v6, %v1042_v40  ;;  %1060 = vst.msk [vmem:[#allocation2 + $0xe8] sm:$0x80] %vm679_vm5, %v1042_v40  ;;  %v1659_v0 = vld [vmem:[#allocation2 + $0x170] sm:$0xff]  ;;  %vm5363_vm13 = vcmask 588800  }
 0x236   : > { %1059 = vst [vmem:[#allocation2 + $0xe0] sm:$0x80] %v1048_v48  ;;  %1789 = vmatpush.msrb.mxu0 %v1659_v0  ;;  %v1095_v21 = vpop.permute.xlu1 %1094  ;;  %v1654_v32 = vld [vmem:[#allocation2 + $0x148] sm:$0xff] }
 0x237   : > { %v853_v25 = vpop.permute.xlu2 %852  ;;  %1065 = vst [vmem:[#allocation2 + $0x110] sm:$0x3] %v1048_v48  ;;  %v1101_v15 = vsel %vm5362_vm8, %v4096_v42, %v1095_v21  ;;  %v1653_v10 = vld [vmem:[#allocation2 + $0x140] sm:$0xff]  ;;  %vm631_vm8 = vcmask 227332  }
 0x238   : > { %v859_v26 = vsel %vm5236_vm6, %v4339_v28, %v853_v25  ;;  %871 = vst.msk [vmem:[#allocation2 + $0xb8] sm:$0x38] %vm485_vm2, %v853_v25  ;;  %1790 = vmatpush.msrb.mxu0 %v1653_v10  ;;  %vm5364_vm6 = vcmask 572416  }
 0x239   : > { %870 = vst [vmem:[#allocation2 + $0xb0] sm:$0x38] %v859_v26 }
 0x23a   : > { %1066 = vst.msk [vmem:[#allocation2 + $0x118] sm:$0x3] %vm686_vm14, %v1042_v40 }
 0x23b   : > { %1112 = vst [vmem:[#allocation2 + $0x110] sm:$0x1c] %v1101_v15 }
 0x23c   : > { %1113 = vst.msk [vmem:[#allocation2 + $0x118] sm:$0x1c] %vm734_vm9, %v1095_v21  ;;  %v1593_v6 = vpop.permute.xlu0 %1592 }
 0x23d   : > { %v1600_v39 = vsel %vm1594_vm12, %v4469_v58, %v1593_v6 }
 0x23e   : > { %1612 = vst.msk [vmem:[#allocation2 + $0x1d8] sm:$0x7] %vm437_vm0, %v1600_v39  ;;  %v900_v23 = vpop.permute.xlu1 %899 }
 0x23f   : > { %v716_v28 = vpop.permute.xlu2 %715  ;;  %v906_v42 = vsel %vm5363_vm13, %v4278_v14, %v900_v23  ;;  %918 = vst.msk [vmem:[#allocation2 + $0xb8] sm:$0xc0] %vm533_vm7, %v900_v23 }
 0x240   : > { %v722_v19 = vsel %vm717_vm3, %v4429_v45, %v716_v28  ;;  %735 = vst.msk [vmem:[#allocation2 + $0x88] sm:$0x1c] %vm734_vm9, %v716_v28  ;;  %vm5365_vm3 = vcmask 121856   ;;  %vm5369_vm9 = vcmask 818176  }
 0x241   : > { %733 = vst [vmem:[#allocation2 + $0x80] sm:$0x1c] %v722_v19 }
 0x242   : > { %917 = vst [vmem:[#allocation2 + $0xb0] sm:$0xc0] %v906_v42  ;;  %v1647_v22 = vld [vmem:[#allocation2 + $0x110] sm:$0xff] }
 0x243   : > { %1791 = vmatpush.msrb.mxu0 %v1647_v22  ;;  %923 = vst [vmem:[#allocation2 + $0xe0] sm:$0x1] %v906_v42  ;;  %v1648_v59 = vld [vmem:[#allocation2 + $0x118] sm:$0xff] }
 0x244   : > { %v995_v24 = vpop.permute.xlu0 %994  ;;  %924 = vst.msk [vmem:[#allocation2 + $0xe8] sm:$0x1] %vm540_vm15, %v900_v23 }
 0x245   : > { %v1001_v17 = vsel %vm5364_vm6, %v4344_v27, %v995_v24  ;;  %v1672_v45 = vld [vmem:[#allocation2 + $0x1d8] sm:$0x7]  ;;  %1013 = vst.msk [vmem:[#allocation2 + $0xe8] sm:$0x70] %vm631_vm8, %v995_v24  ;;  %vm5366_vm6 = vcmask 105472  }
 0x246   : > { %1012 = vst [vmem:[#allocation2 + $0xe0] sm:$0x70] %v1001_v17  ;;  %3264 = vmatpush.msk.msrb.mxu1 %vm1682_vm10, %v1672_v45  ;;  %v1432_v14 = vpop.permute.xlu1 %1431  ;;  %vm5372_vm10 = vcmask 1014784  }
 0x247   : > { %v570_v35 = vpop.permute.xlu2 %569  ;;  %v1439_v36 = vsel %vm5365_vm3, %v4482_v34, %v1432_v14  ;;  %vm5379_vm3 = vmmov %vm5369_vm9 }
 0x248   : > { %v576_v20 = vsel %vm571_vm1, %v4456_v55, %v570_v35  ;;  %589 = vst.msk [vmem:[#allocation2 + $0x58] sm:$0xe] %vm588_vm4, %v570_v35  ;;  %vm5367_vm1 = vcmask 793600   ;;  %vm5368_vm4 = vcmask 130048  }
 0x249   : > { %587 = vst [vmem:[#allocation2 + $0x50] sm:$0xe] %v576_v20 }
 0x24a   : > { %1451 = vst.msk [vmem:[#allocation2 + $0x178] sm:$0x80] %vm679_vm5, %v1439_v36 }
 0x24b   : > { %1457 = vst.msk [vmem:[#allocation2 + $0x1a8] sm:$0x3] %vm686_vm14, %v1439_v36 }
 0x24c   : > { %v1546_v27 = vpop.permute.xlu0 %1545  ;;  %v1642_v38 = vld [vmem:[#allocation2 + $0xe8] sm:$0xff] }
 0x24d   : > { %v1553_v2 = vsel %vm5366_vm6, %v4497_v9, %v1546_v27  ;;  %v1641_v63 = vld [vmem:[#allocation2 + $0xe0] sm:$0xff]  ;;  %vm1849_vm6 = vcmask 1046528  }
 0x24e   : > { %1565 = vst.msk [vmem:[#allocation2 + $0x1a8] sm:$0xe0] %vm782_vm11, %v1553_v2  ;;  %1792 = vmatpush.msrb.mxu0 %v1641_v63  ;;  %v806_v58 = vpop.permute.xlu1 %805 }
 0x24f   : > { %v812_v55 = vsel %vm5367_vm1, %v4382_v61, %v806_v58  ;;  %824 = vst.msk [vmem:[#allocation2 + $0xb8] sm:$0x7] %vm437_vm0, %v806_v58  ;;  %v4559_v37 = vpop.permute.xlu2 %1675  ;;  %vm5370_vm0 = vcmask 801792  }
 0x250   : > { %823 = vst [vmem:[#allocation2 + $0xb0] sm:$0x7] %v812_v55 }
 0x253   : > { %v1718_v5 = vpop.f32.mrf.mxu0 }
 0x254   : > { %v1378_v46 = vpop.permute.xlu0 %1377  ;;  %v1719_v31 = vadd.f32 %v1718_v5, %v4559_v37 }
 0x255   : > { %v1385_v13 = vsel %vm5368_vm4, %v4511_v50, %v1378_v46  ;;  %v1666_v54 = vld [vmem:[#allocation2 + $0x1a8] sm:$0xff]  ;;  %vm5380_vm4 = vmmov %vm5379_vm3 }
 0x256   : > { %1397 = vst.msk [vmem:[#allocation2 + $0x178] sm:$0x70] %vm631_vm8, %v1385_v13  ;;  %1808 = vmatpush.msrb.mxu1 %v1666_v54  ;;  %v661_v29 = vpop.permute.xlu1 %660  ;;  %v1821_v12 = vmax.f32 %v1719_v31, 0.0  ;;  %v1636_v41 = vld [vmem:[#allocation2 + $0xb8] sm:$0xff] }
 0x257   : > { %v667_v61 = vsel %vm5369_vm9, %v4416_v56, %v661_v29  ;;  %680 = vst.msk [vmem:[#allocation2 + $0x58] sm:$0x80] %vm679_vm5, %v661_v29  ;;  %v1635_v34 = vld [vmem:[#allocation2 + $0xb0] sm:$0xff]  ;;  %vm5371_vm5 = vcmask 1031168  }
 0x258   : > { %678 = vst [vmem:[#allocation2 + $0x50] sm:$0x80] %v667_v61  ;;  %1793 = vmatpush.msrb.mxu0 %v1635_v34 }
 0x259   : > { %685 = vst [vmem:[#allocation2 + $0x80] sm:$0x3] %v667_v61 }
 0x25a   : > { %687 = vst.msk [vmem:[#allocation2 + $0x88] sm:$0x3] %vm686_vm14, %v661_v29 }
 0x25b   : > { %1827 = vst [vmem:[#allocation3] sm:$0x3f] %v1821_v12 }
 0x25c   : > { %v764_v4 = vpop.permute.xlu0 %763 }
 0x25d   : > { %v770_v43 = vsel %vm5370_vm0, %v4393_v60, %v764_v4  ;;  %783 = vst.msk [vmem:[#allocation2 + $0x88] sm:$0xe0] %vm782_vm11, %v764_v4  ;;  %v1660_v51 = vld [vmem:[#allocation2 + $0x178] sm:$0xff]  ;;  %vm5374_vm11 = vcmask 613376  }
 0x25e   : > { %781 = vst [vmem:[#allocation2 + $0x80] sm:$0xe0] %v770_v43  ;;  %1809 = vmatpush.msrb.mxu1 %v1660_v51  ;;  %v515_v56 = vpop.permute.xlu1 %514 }
 0x25f   : > { %v521_v33 = vsel %vm5371_vm5, %v4446_v11, %v515_v56  ;;  %534 = vst.msk [vmem:[#allocation2 + $0x28] sm:$0xc0] %vm533_vm7, %v515_v56  ;;  %vm5373_vm7 = vcmask 1039360  }
 0x260   : > { %1810 = vmatpush.msrb.mxu1 %v1654_v32  ;;  %532 = vst [vmem:[#allocation2 + $0x20] sm:$0xc0] %v521_v33  ;;  %vm5376_vm14 = vmmov %vm5373_vm7 }
 0x261   : > { %539 = vst [vmem:[#allocation2 + $0x50] sm:$0x1] %v521_v33  ;;  %vm5377_vm13 = vmmov %vm5373_vm7 }
 0x262   : > { %1811 = vmatpush.msrb.mxu1 %v1648_v59  ;;  %541 = vst.msk [vmem:[#allocation2 + $0x58] sm:$0x1] %vm540_vm15, %v515_v56  ;;  %v4576_v60 = vld [vmem:[#allocation3] sm:$0x3f]  ;;  %vm5375_vm15 = vmmov %vm5374_vm11 }
 0x263   : > { %1877 = vrot.lane.b32.xlu0 %v4576_v60, %s5351_s13  ;;  %v1917_v27 = vld [vmem:[#allocation3] sm:$0x3f]  ;;  %vm5385_vm5 = vmmov %vm5373_vm7 }
 0x264   : > { %v613_v9 = vpop.permute.xlu0 %612  ;;  %1812 = vmatpush.msrb.mxu1 %v1642_v38  ;;  %v1630_v3 = vld [vmem:[#allocation2 + $0x88] sm:$0xff]  ;;  %v1834_v2 = vld [vmem:[#allocation3] sm:$0x3f] }
 0x265   : > { %v619_v11 = vsel %vm5372_vm10, %v4439_v52, %v613_v9  ;;  %632 = vst.msk [vmem:[#allocation2 + $0x58] sm:$0x70] %vm631_vm8, %v613_v9  ;;  %v1629_v44 = vld [vmem:[#allocation2 + $0x80] sm:$0xff]  ;;  %vm5378_vm8 = vmmov %vm5373_vm7  ;;  %vm1845_vm10 = vcmask 187392  }
 0x266   : > { %630 = vst [vmem:[#allocation2 + $0x50] sm:$0x70] %v619_v11  ;;  %1794 = vmatpush.msrb.mxu0 %v1629_v44  ;;  %1813 = vmatpush.msrb.mxu1 %v1636_v41  ;;  %v467_v18 = vpop.permute.xlu1 %466 }
 0x267   : > { %v473_v62 = vsel %vm5373_vm7, %v4480_v30, %v467_v18  ;;  %486 = vst.msk [vmem:[#allocation2 + $0x28] sm:$0x38] %vm485_vm2, %v467_v18  ;;  %vm1832_vm2 = vcmask 226304   ;;  %vm5386_vm7 = vcmask 130048  }
 0x268   : > { %1814 = vmatpush.msrb.mxu1 %v1630_v3  ;;  %484 = vst [vmem:[#allocation2 + $0x20] sm:$0x38] %v473_v62 }
 0x26c   : > { %v1624_v7 = vld [vmem:[#allocation2 + $0x58] sm:$0xff] }
 0x26d   : > { %1815 = vmatpush.msrb.mxu1 %v1624_v7  ;;  %v1623_v50 = vld [vmem:[#allocation2 + $0x50] sm:$0xff] }
 0x26e   : > { %1795 = vmatpush.msrb.mxu0 %v1623_v50  ;;  %v1618_v52 = vld [vmem:[#allocation2 + $0x28] sm:$0xff] }
 0x26f   : > { %1816 = vmatpush.msrb.mxu1 %v1618_v52  ;;  %v1617_v8 = vld [vmem:[#allocation2 + $0x20] sm:$0xff] }
 0x270   : > { %1796 = vmatpush.msrb.mxu0 %v1617_v8  ;;  %3265 = vmatmul.msk.f32.vlgmr.msrb.gmra.mxu1 %vm5374_vm11, %v4373_v53  ;;  %vm2274_vm11 = vcmask 64512  }
 0x271   : > { %3263 = vmatmul.msk.f32.vlgmr.msrb.gmra.mxu0 %vm5375_vm15, %v4373_v53  ;;  %vm1873_vm15 = vcmask 95232  }
 0x29b   : > { %v1738_v1 = vpop.f32.mrf.mxu1 }
 0x29c   : > { %v1739_v30 = vadd.f32 %v1738_v1, %v4559_v37 }
 0x29e   : > { %v1822_v47 = vmax.f32 %v1739_v30, 0.0 }
 0x2a0   : > { %1828 = vst [vmem:[#allocation3 + $0x8] sm:$0x3f] %v1822_v47 }
 0x2a3   : > { %v1758_v49 = vpop.f32.mrf.mxu2 }
 0x2a4   : > { %v1759_v57 = vadd.f32 %v1758_v49, %v4559_v37 }
 0x2a6   : > { %v1823_v16 = vmax.f32 %v1759_v57, 0.0 }
 0x2a7   : > { %v1971_v40 = vld [vmem:[#allocation3 + $0x8] sm:$0x3f] }
 0x2a8   : > { %v1918_v48 = vld [vmem:[#allocation3 + $0x8] sm:$0x3f]  ;;  %1973 = vrot.lane.b32.xlu2 %v1971_v40, %s5351_s13  ;;  %1829 = vst [vmem:[#allocation3 + $0x10] sm:$0x3f] %v1823_v16 }
 0x2a9   : > { %1923 = vrot.lane.b32.xlu1 %v1918_v48, %s5351_s13  ;;  %v4594_v0 = vld [vmem:[#allocation3 + $0x8] sm:$0x3f] }
 0x2aa   : > { %v1778_v25 = vpop.f32.mrf.mxu3  ;;  %2015 = vrot.lane.b32.xlu0 %v4594_v0, %s5351_s13 }
 0x2ab   : > { %v1779_v53 = vadd.f32 %v1778_v25, %v4559_v37 }
 0x2ad   : > { %v1824_v21 = vmax.f32 %v1779_v53, 0.0 }
 0x2af   : > { %1830 = vst [vmem:[#allocation3 + $0x18] sm:$0x3f] %v1824_v21  ;;  %v4599_v26 = vld [vmem:[#allocation3 + $0x10] sm:$0x3f] }
 0x2b0   : > { %v2019_v15 = vld [vmem:[#allocation3 + $0x10] sm:$0x3f]  ;;  %2112 = vrot.lane.b32.xlu2 %v4599_v26, %s5351_s13 }
 0x2b1   : > { %2021 = vrot.lane.b32.xlu1 %v2019_v15, %s5351_s13  ;;  %v2068_v39 = vld [vmem:[#allocation3 + $0x10] sm:$0x3f] }
 0x2b6   : > { %v2116_v10 = vld [vmem:[#allocation3 + $0x18] sm:$0x3f] }
 0x2b7   : > { %2118 = vrot.lane.b32.xlu0 %v2116_v10, %s5351_s13  ;;  %v2165_v6 = vld [vmem:[#allocation3 + $0x18] sm:$0x3f] }
 0x2b8   : > { %2167 = vrot.lane.b32.xlu2 %v2165_v6, %s5351_s13  ;;  %v2207_v28 = vld [vmem:[#allocation3 + $0x18] sm:$0x3f] }
 0x2b9   : > { %2070 = vrot.lane.b32.xlu1 %v2068_v39, %s5351_s13  ;;  %v4634_v32 = vld [vmem:[#allocation3 + $0x18] sm:$0x3f] }
 0x2bf   : > { %2209 = vrot.lane.b32.xlu0 %v2207_v28, %s5351_s13 }
 0x2d5   : > { %v1878_v20 = vpop.permute.xlu0 %1877 }
 0x2d6   : > { %v1880_v36 = vmax.f32 %v4576_v60, %v1878_v20 }
 0x2ed   : > { %v1818_v23 = vpop.f32.mrf.mxu1 }
 0x2ee   : > { %v1819_v19 = vadd.f32 %v1818_v23, %v4559_v37  ;;  %v1798_v42 = vpop.f32.mrf.mxu0 }
 0x2ef   : > { %v1799_v22 = vadd.f32 %v1798_v42, %v4559_v37 }
 0x2f0   : > { %v1826_v24 = vmax.f32 %v1819_v19, 0.0 }
 0x2f1   : > { %v1825_v17 = vmax.f32 %v1799_v22, 0.0 }
 0x2f2   : > { %1833 = vst.msk [vmem:[#allocation3 + $0x28] sm:$0x3f] %vm1832_vm2, %v1826_v24  ;;  %vm1915_vm2 = vcmask 193632  }
 0x2f3   : > { %1831 = vst [vmem:[#allocation3 + $0x20] sm:$0x3f] %v1825_v17 }
 0x2f9   : > { %v4610_v45 = vld [vmem:[#allocation3 + $0x28] sm:$0x3f] }
 0x2fa   : > { %2356 = vrot.lane.b32.xlu0 %v4610_v45, %s5351_s13  ;;  %v2304_v35 = vld [vmem:[#allocation3 + $0x20] sm:$0x3f] }
 0x2fb   : > { %v2250_v14 = vld [vmem:[#allocation3 + $0x20] sm:$0x3f]  ;;  %2306 = vrot.lane.b32.xlu2 %v2304_v35, %s5351_s13 }
 0x2fc   : > { %2255 = vrot.lane.b32.xlu1 %v2250_v14, %s5351_s13  ;;  %v4640_v38 = vld [vmem:[#allocation3 + $0x20] sm:$0x3f] }
 0x302   : > { %1921 = vrot.lane.b32.xlu0 %v1917_v27, %s5351_s13  ;;  %v1974_v63 = vpop.permute.xlu2 %1973 }
 0x303   : > { %1882 = vrot.lane.b32.xlu2 %v1880_v36, %s5295_s30  ;;  %v1976_v58 = vmax.f32 %v1971_v40, %v1974_v63 }
 0x304   : > { %1836 = vrot.lane.b32.xlu1 %v1834_v2, %s5351_s13 }
 0x30a   : > { %v2113_v54 = vpop.permute.xlu2 %2112 }
 0x30b   : > { %1978 = vrot.lane.b32.xlu2 %v1976_v58, %s5295_s30  ;;  %v2115_v25 = vmax.f32 %v4599_v26, %v2113_v54 }
 0x312   : > { %v2168_v59 = vpop.permute.xlu2 %2167 }
 0x313   : > { %v2170_v60 = vmax.f32 %v2165_v6, %v2168_v59 }
 0x31b   : > { %v1924_v55 = vpop.permute.xlu1 %1923 }
 0x31c   : > { %v1929_v37 = vmax.f32 %v1918_v48, %v1924_v55  ;;  %v4622_v46 = vpop.permute.xlu0 %2015 }
 0x31d   : > { %v2018_v63 = vmax.f32 %v4594_v0, %v4622_v46 }
 0x31e   : > { %1931 = vrot.lane.b32.xlu1 %v1929_v37, %s5295_s30 }
 0x323   : > { %v2022_v13 = vpop.permute.xlu1 %2021 }
 0x324   : > { %v2027_v5 = vmax.f32 %v2019_v15, %v2022_v13  ;;  %v2023_v43 = vsel %vm5377_vm13, %v4622_v46, %v2022_v13  ;;  %vm2011_vm13 = vcmask 390432  }
 0x325   : > { %v2026_v51 = vmax.f32 %v4594_v0, %v2023_v43 }
 0x326   : > { %2032 = vrot.lane.b32.xlu1 %v2027_v5, %s5295_s30 }
 0x329   : > { %v2119_v31 = vpop.permute.xlu0 %2118 }
 0x32a   : > { %v2120_v29 = vsel %vm5376_vm14, %v2113_v54, %v2119_v31  ;;  %v2124_v61 = vmax.f32 %v2116_v10, %v2119_v31  ;;  %vm1969_vm14 = vcmask 292032  }
 0x32b   : > { %v2123_v12 = vmax.f32 %v4599_v26, %v2120_v29  ;;  %v2071_v34 = vpop.permute.xlu1 %2070  ;;  %v392_v26 = vlaneseq }
 0x32c   : > { %2129 = vrot.lane.b32.xlu0 %v2124_v61, %s5295_s30  ;;  %v2073_v4 = vmax.f32 %v2068_v39, %v2071_v34 }
 0x32d   : > { %2127 = vrot.lane.b32.xlu2 %v2123_v12, %s5295_s30  ;;  %v393_v24 = vshrl.u32 %v392_v26, 7  ;;  %v397_v17 = vand.u32 127, %v392_v26 }
 0x32e   : > { %2075 = vrot.lane.b32.xlu1 %v2073_v4, %s5295_s30 }
 0x331   : > { %v2210_v56 = vpop.permute.xlu0 %2209 }
 0x332   : > { %v2212_v33 = vmax.f32 %v2207_v28, %v2210_v56 }
 0x334   : > { %2030 = vrot.lane.b32.xlu0 %v2026_v51, %s5295_s30 }
 0x335   : > { %2253 = vrot.lane.b32.xlu2 %v4634_v32, %s5351_s13 }
 0x336   : > { %2214 = vrot.lane.b32.xlu1 %v2212_v33, %s5295_s30 }
 0x33c   : > { %2172 = vrot.lane.b32.xlu0 %v2170_v60, %s5295_s30 }
 0x344   : > { %2350 = vrot.lane.b32.xlu0 %v4640_v38, %s5351_s13 }
 0x355   : > { %v2307_v9 = vpop.permute.xlu2 %2306 }
 0x356   : > { %v4644_v11 = vmax.f32 %v2304_v35, %v2307_v9  ;;  %v398_v35 = vmul.u32 2, %v397_v17 }
 0x358   : > { %2311 = vrot.lane.b32.xlu1 %v4644_v11, %s5295_s30  ;;  %vm4686_vm0 = vcmp.eq.s32.totalorder %v393_v24, %v398_v35 }
 0x35d   : > { %v1883_v44 = vpop.permute.xlu2 %1882 }
 0x35e   : > { %v1885_v41 = vmax.f32 %v1880_v36, %v1883_v44  ;;  %v3561_v36 = vmov 0.0  }
 0x360   : > { %1887 = vrot.lane.b32.xlu1 %v1885_v41, %s5328_s29 }
 0x365   : > { %v1979_v18 = vpop.permute.xlu2 %1978 }
 0x366   : > { %v1981_v3 = vmax.f32 %v1976_v58, %v1979_v18 }
 0x368   : > { %1983 = vrot.lane.b32.xlu1 %v1981_v3, %s5241_s14  ;;  %s3566_s14 = smov 24  }
 0x36c   : > { %v2357_v50 = vpop.permute.xlu0 %2356 }
 0x36d   : > { %v2359_v8 = vmax.f32 %v4610_v45, %v2357_v50  ;;  %v395_v45 = vadd.s32 16, %v393_v24 }
 0x36e   : > { %v4650_v62 = vpop.permute.xlu1 %2255 }
 0x36f   : > { %v4653_v7 = vmax.f32 %v2250_v14, %v4650_v62  ;;  %v394_v14 = vadd.s32 8, %v393_v24  ;;  %vm401_vm1 = vcmp.eq.s32.totalorder %v395_v45, %v398_v35 }
 0x371   : > { %2263 = vrot.lane.b32.xlu2 %v4653_v7, %s5295_s30  ;;  %vm4676_vm9 = vcmp.eq.s32.totalorder %v394_v14, %v398_v35 }
 0x374   : > { %v1922_v30 = vpop.permute.xlu0 %1921 }
 0x375   : > { %v1925_v47 = vsel %vm5378_vm8, %v1922_v30, %v1924_v55  ;;  %vm2346_vm8 = vcmask 29696  }
 0x376   : > { %v1837_v52 = vpop.permute.xlu1 %1836  ;;  %v1928_v49 = vmax.f32 %v1917_v27, %v1925_v47  ;;  %v4674_v27 = vsel %vm401_vm1, 1.0, %v3561_v36  ;;  %vm2108_vm1 = vcmask 587232  }
 0x377   : > { %v4658_v1 = vmax.f32 %v1834_v2, %v1837_v52  ;;  %3270 = vmatpush.msk.msrb.mxu3 %vm1849_vm6, %v4674_v27  ;;  %3266 = vmatpush.msk.msrb.mxu2 %vm1849_vm6, %v4674_v27 }
 0x378   : > { %3290 = vmatpush.msk.msra.mxu1 %vm1849_vm6, %v4674_v27  ;;  %3306 = vmatpush.msk.msra.mxu0 %vm1849_vm6, %v4674_v27 }
 0x379   : > { %2361 = vrot.lane.b32.xlu2 %v2359_v8, %s5295_s30  ;;  %1841 = vrot.lane.b32.xlu0 %v4658_v1, %s5295_s30 }
 0x387   : > { %v2128_v53 = vpop.permute.xlu2 %2127 }
 0x38f   : > { %v2254_v0 = vpop.permute.xlu2 %2253 }
 0x390   : > { %v1932_v57 = vpop.permute.xlu1 %1931  ;;  %v2257_v46 = vsel %vm5385_vm5, %v2254_v0, %v4650_v62  ;;  %vm2247_vm5 = vcmask 882432  }
 0x391   : > { %v1934_v16 = vmax.f32 %v1928_v49, %v1932_v57  ;;  %v1935_v40 = vmax.f32 %v1929_v37, %v1932_v57  ;;  %v3562_v37 = vmov 1.0   ;;  %v2260_v13 = vmax.f32 %v4634_v32, %v2257_v46 }
 0x392   : > { %3271 = vmatpush.msk.msrb.mxu3 %vm4676_vm9, %v3562_v37  ;;  %3267 = vmatpush.msk.msrb.mxu2 %vm4676_vm9, %v3562_v37 }
 0x393   : > { %1940 = vrot.lane.b32.xlu0 %v1935_v40, %s5313_s22  ;;  %1938 = vrot.lane.b32.xlu2 %v1934_v16, %s5313_s22 }
 0x394   : > { %3291 = vmatpush.msk.msra.mxu1 %vm4676_vm9, %v3562_v37  ;;  %3307 = vmatpush.msk.msra.mxu0 %vm4676_vm9, %v3562_v37 }
 0x395   : > { %3272 = vmatpush.msk.msrb.mxu3 %vm4686_vm0, %v3562_v37  ;;  %3268 = vmatpush.msk.msrb.mxu2 %vm4686_vm0, %v3562_v37 }
 0x396   : > { %3292 = vmatpush.msk.msra.mxu1 %vm4686_vm0, %v3562_v37  ;;  %3308 = vmatpush.msk.msra.mxu0 %vm4686_vm0, %v3562_v37 }
 0x397   : > { %3278 = vmatpush.msk.msra.mxu3 %vm1849_vm6, %v4674_v27  ;;  %3274 = vmatpush.msk.msra.mxu2 %vm1849_vm6, %v4674_v27 }
 0x398   : > { %v2033_v48 = vpop.permute.xlu1 %2032  ;;  %3294 = vmatpush.msk.msrb.mxu1 %vm1849_vm6, %v4674_v27 }
 0x399   : > { %3279 = vmatpush.msk.msra.mxu3 %vm4676_vm9, %v3562_v37  ;;  %3275 = vmatpush.msk.msra.mxu2 %vm4676_vm9, %v3562_v37 }
 0x39a   : > { %3295 = vmatpush.msk.msrb.mxu1 %vm4676_vm9, %v3562_v37 }
 0x39b   : > { %3280 = vmatpush.msk.msra.mxu3 %vm4686_vm0, %v3562_v37  ;;  %3276 = vmatpush.msk.msra.mxu2 %vm4686_vm0, %v3562_v37 }
 0x39c   : > { %3296 = vmatpush.msk.msrb.mxu1 %vm4686_vm0, %v3562_v37 }
 0x39e   : > { %v2130_v21 = vpop.permute.xlu0 %2129 }
 0x39f   : > { %v2131_v15 = vsel %vm5379_vm3, %v2128_v53, %v2130_v21  ;;  %vm2066_vm3 = vcmask 488832  }
 0x3a0   : > { %v2133_v10 = vmax.f32 %v2115_v25, %v2131_v15  ;;  %v2076_v6 = vpop.permute.xlu1 %2075 }
 0x3a1   : > { %v2078_v39 = vmax.f32 %v2073_v4, %v2076_v6 }
 0x3a2   : > { %2135 = vrot.lane.b32.xlu0 %v2133_v10, %s5247_s0 }
 0x3a3   : > { %2080 = vrot.lane.b32.xlu1 %v2078_v39, %s5239_s23  ;;  %s5245_s23 = smov 80  }
 0x3a6   : > { %v2031_v28 = vpop.permute.xlu0 %2030 }
 0x3a7   : > { %v2034_v20 = vsel %vm5380_vm4, %v2031_v28, %v2033_v48  ;;  %vm2163_vm4 = vcmask 685632  }
 0x3a8   : > { %v2215_v23 = vpop.permute.xlu1 %2214  ;;  %v2036_v55 = vmax.f32 %v2018_v63, %v2034_v20 }
 0x3a9   : > { %v2217_v19 = vmax.f32 %v2212_v33, %v2215_v23 }
 0x3ab   : > { %2219 = vrot.lane.b32.xlu0 %v2217_v19, %s5237_s15  ;;  %s5238_s15 = smov 32  }
 0x3ae   : > { %v2173_v42 = vpop.permute.xlu0 %2172 }
 0x3af   : > { %v2175_v22 = vmax.f32 %v2170_v60, %v2173_v42 }
 0x3b1   : > { %2177 = vrot.lane.b32.xlu2 %v2175_v22, %s3560_s12 }
 0x3b6   : > { %v2351_v12 = vpop.permute.xlu0 %2350 }
 0x3b7   : > { %v2353_v34 = vmax.f32 %v4640_v38, %v2351_v12 }
 0x3b9   : > { %2038 = vrot.lane.b32.xlu2 %v2036_v55, %s5238_s15  ;;  %s5243_s15 = smov 8  }
 0x3ca   : > { %v2312_v54 = vpop.permute.xlu1 %2311 }
 0x3cb   : > { %v2264_v5 = vpop.permute.xlu2 %2263  ;;  %v2314_v61 = vmax.f32 %v4644_v11, %v2312_v54 }
 0x3cc   : > { %v2266_v31 = vmax.f32 %v2260_v13, %v2264_v5  ;;  %v2267_v29 = vmax.f32 %v4653_v7, %v2264_v5 }
 0x3cd   : > { %2316 = vrot.lane.b32.xlu0 %v2314_v61, %s5245_s23  ;;  %s3568_s23 = smov 60  }
 0x3ce   : > { %2272 = vrot.lane.b32.xlu2 %v2267_v29, %s5243_s15  ;;  %2270 = vrot.lane.b32.xlu1 %v2266_v31, %s5243_s15  ;;  %s3567_s15 = smov 36  }
 0x3d2   : > { %v1888_v43 = vpop.permute.xlu1 %1887 }
 0x3d3   : > { %v2362_v4 = vpop.permute.xlu2 %2361  ;;  %3273 = vmatmul.msk.f32.vlgmr.msrb.gmra.mxu3 %vm1845_vm10, %v1888_v43 }
 0x3d4   : > { %v2364_v51 = vmax.f32 %v2353_v34, %v2362_v4  ;;  %3286 = vmatpush.msk.msrb.mxu3 %vm1849_vm6, %v4674_v27 }
 0x3d6   : > { %2366 = vrot.lane.b32.xlu1 %v2364_v51, %s3566_s14  ;;  %3287 = vmatpush.msk.msrb.mxu3 %vm4676_vm9, %v3562_v37 }
 0x3d8   : > { %3288 = vmatpush.msk.msrb.mxu3 %vm4686_vm0, %v3562_v37 }
 0x3da   : > { %v1984_v56 = vpop.permute.xlu1 %1983 }
 0x3db   : > { %3281 = vmatmul.msk.f32.vlgmr.msra.gmra.mxu3 %vm1845_vm10, %v1984_v56 }
 0x3dc   : > { %3302 = vmatpush.msk.msra.mxu3 %vm1849_vm6, %v4674_v27 }
 0x3de   : > { %3303 = vmatpush.msk.msra.mxu3 %vm4676_vm9, %v3562_v37 }
 0x3e0   : > { %3304 = vmatpush.msk.msra.mxu3 %vm4686_vm0, %v3562_v37 }
 0x3eb   : > { %v1842_v32 = vpop.permute.xlu0 %1841 }
 0x3ec   : > { %v1844_v33 = vmax.f32 %v4658_v1, %v1842_v32 }
 0x3ed   : > { %v1939_v59 = vpop.permute.xlu2 %1938 }
 0x3ee   : > { %3269 = vmatmul.msk.f32.vlgmr.msrb.gmra.mxu2 %vm1845_vm10, %v1844_v33 }
 0x3ef   : > { %3282 = vmatpush.msk.msrb.mxu2 %vm1849_vm6, %v4674_v27 }
 0x3f1   : > { %3283 = vmatpush.msk.msrb.mxu2 %vm4676_vm9, %v3562_v37 }
 0x3f3   : > { %3284 = vmatpush.msk.msrb.mxu2 %vm4686_vm0, %v3562_v37 }
 0x405   : > { %v1941_v60 = vpop.permute.xlu0 %1940 }
 0x406   : > { %v1942_v38 = vsel %vm5386_vm7, %v1939_v59, %v1941_v60  ;;  %vm2344_vm7 = vcmask 1046464  }
 0x407   : > { %3277 = vmatmul.msk.f32.vlgmr.msra.gmra.mxu2 %vm1845_vm10, %v1942_v38 }
 0x408   : > { %3298 = vmatpush.msk.msra.mxu2 %vm1849_vm6, %v4674_v27 }
 0x40a   : > { %3299 = vmatpush.msk.msra.mxu2 %vm4676_vm9, %v3562_v37 }
 0x40b   : > { %v2178_v9 = vpop.permute.xlu2 %2177 }
 0x40c   : > { %3300 = vmatpush.msk.msra.mxu2 %vm4686_vm0, %v3562_v37 }
 0x413   : > { %v2039_v11 = vpop.permute.xlu2 %2038 }
 0x414   : > { %v2136_v44 = vpop.permute.xlu0 %2135  ;;  %3285 = vmatmul.msk.f32.vlgmr.msrb.gmra.mxu2 %vm1845_vm10, %v2039_v11 }
 0x415   : > { %3293 = vmatmul.msk.f32.vlgmr.msra.gmra.mxu1 %vm1845_vm10, %v2136_v44  ;;  %v2081_v41 = vpop.permute.xlu1 %2080 }
 0x416   : > { %3310 = vmatpush.msk.msra.mxu1 %vm1849_vm6, %v4674_v27  ;;  %3289 = vmatmul.msk.f32.vlgmr.msrb.gmra.mxu3 %vm1845_vm10, %v2081_v41 }
 0x418   : > { %3311 = vmatpush.msk.msra.mxu1 %vm4676_vm9, %v3562_v37  ;;  %vm2205_vm9 = vcmask 784032  }
 0x41a   : > { %3312 = vmatpush.msk.msra.mxu1 %vm4686_vm0, %v3562_v37 }
 0x41d   : > { %3297 = vmatmul.msk.f32.vlgmr.msrb.gmra.mxu1 %vm1845_vm10, %v2178_v9  ;;  %v2220_v18 = vpop.permute.xlu0 %2219 }
 0x41e   : > { %3301 = vmatmul.msk.f32.vlgmr.msra.gmra.mxu2 %vm1845_vm10, %v2220_v18 }
 0x428   : > { %v2273_v3 = vpop.permute.xlu2 %2272 }
 0x43f   : > { %v2317_v7 = vpop.permute.xlu0 %2316 }
 0x440   : > { %v2271_v62 = vpop.permute.xlu1 %2270  ;;  %3309 = vmatmul.msk.f32.vlgmr.msra.gmra.mxu0 %vm1845_vm10, %v2317_v7 }
 0x441   : > { %v2275_v50 = vsel %vm2274_vm11, %v2271_v62, %v2273_v3  ;;  %v391_v3 = vld [vmem:[%s5163_s4 + $0x8] sm:$0xff] }
 0x442   : > { %3305 = vmatmul.msk.f32.vlgmr.msra.gmra.mxu3 %vm1845_vm10, %v2275_v50 }
 0x448   : > { %v2367_v52 = vpop.permute.xlu1 %2366 }
 0x449   : > { %3313 = vmatmul.msk.f32.vlgmr.msra.gmra.mxu1 %vm1845_vm10, %v2367_v52  ;;  %vm2302_vm10 = vcmask 980832  }
 0x456   : > { %v1908_v8 = vpop.f32.mrf.mxu3 }
 0x457   : > { %1912 = vrot.lane.b32.xlu2 %v1908_v8, %s5326_s24 }
 0x45e   : > { %v2004_v49 = vpop.f32.mrf.mxu3 }
 0x471   : > { %v1870_v1 = vpop.f32.mrf.mxu2 }
 0x472   : > { %1874 = vst.msk [vmem:[#allocation4] sm:$0x3f] %vm1873_vm15, %v1870_v1  ;;  %vm2394_vm15 = vcmask 128032  }
 0x48a   : > { %v1962_v30 = vpop.f32.mrf.mxu2 }
 0x48b   : > { %1966 = vrot.lane.b32.xlu0 %v1962_v30, %s3566_s14  ;;  %s3569_s14 = smov 108  }
 0x492   : > { %v2156_v47 = vpop.f32.mrf.mxu1 }
 0x493   : > { %2160 = vrot.lane.b32.xlu1 %v2156_v47, %s5328_s29  ;;  %s5248_s29 = smov 4  }
 0x497   : > { %v2059_v57 = vpop.f32.mrf.mxu2 }
 0x499   : > { %v2101_v16 = vpop.f32.mrf.mxu3 }
 0x49a   : > { %2105 = vrot.lane.b32.xlu0 %v2101_v16, %s3568_s23  ;;  %v2198_v25 = vpop.f32.mrf.mxu1  ;;  %s3571_s23 = smov 84  }
 0x49b   : > { %2008 = vrot.lane.b32.xlu1 %v2004_v49, %s3567_s15  ;;  %s3572_s15 = smov 79  }
 0x4a1   : > { %v2240_v40 = vpop.f32.mrf.mxu2 }
 0x4a2   : > { %2244 = vrot.lane.b32.xlu0 %v2240_v40, %s5337_s19 }
 0x4b1   : > { %v1913_v48 = vpop.permute.xlu2 %1912 }
 0x4b2   : > { %1916 = vst.msk [vmem:[#allocation4] sm:$0x3f] %vm1915_vm2, %v1913_v48  ;;  %vm2397_vm2 = vcmask 750592  }
 0x4bd   : > { %v2337_v53 = vpop.f32.mrf.mxu0 }
 0x4be   : > { %2341 = vrot.lane.b32.xlu2 %v2337_v53, %s3560_s12  ;;  %s5387_s12 = smov 80  }
 0x4c5   : > { %v2295_v21 = vpop.f32.mrf.mxu3 }
 0x4c6   : > { %2299 = vrot.lane.b32.xlu1 %v2295_v21, %s3569_s14  ;;  %v2387_v15 = vpop.f32.mrf.mxu1  ;;  %2063 = vrot.lane.b32.xlu2 %v2059_v57, %s5247_s0  ;;  %s3573_s14 = smov 89   ;;  %s3574_s0 = smov 90  }
 0x4c7   : > { %2391 = vrot.lane.b32.xlu0 %v2387_v15, %s5248_s29  ;;  %s3575_s29 = smov 91  }
 0x4ce   : > { %2202 = vrot.lane.b32.xlu2 %v2198_v25, %s3571_s23  ;;  %s5388_s23 = smov 88  }
 0x4fd   : > { %v1967_v10 = vpop.permute.xlu0 %1966 }
 0x4fe   : > { %1970 = vst.msk [vmem:[#allocation4] sm:$0x3f] %vm1969_vm14, %v1967_v10  ;;  %vm2521_vm14 = vcmask 728064  }
 0x505   : > { %v2161_v6 = vpop.permute.xlu1 %2160 }
 0x50c   : > { %v2106_v23 = vpop.permute.xlu0 %2105 }
 0x50d   : > { %v2009_v39 = vpop.permute.xlu1 %2008 }
 0x50e   : > { %2012 = vst.msk [vmem:[#allocation4] sm:$0x3f] %vm2011_vm13, %v2009_v39  ;;  %vm2497_vm13 = vcmask 744448  }
 0x514   : > { %v2245_v42 = vpop.permute.xlu0 %2244 }
 0x518   : > { %v2342_v28 = vpop.permute.xlu2 %2341 }
 0x519   : > { %2347 = vst.msk [vmem:[#allocation4 + $0x8] sm:$0x3f] %vm2346_vm8, %v2342_v28  ;;  %vm2557_vm8 = vcmask 646144  }
 0x520   : > { %v2064_v19 = vpop.permute.xlu2 %2063 }
 0x521   : > { %2067 = vst.msk [vmem:[#allocation4] sm:$0x3f] %vm2066_vm3, %v2064_v19  ;;  %vm2545_vm3 = vcmask 654336  }
 0x522   : > { %2109 = vst.msk [vmem:[#allocation4] sm:$0x3f] %vm2108_vm1, %v2106_v23  ;;  %vm2509_vm1 = vcmask 736256  }
 0x523   : > { %2164 = vst.msk [vmem:[#allocation4] sm:$0x3f] %vm2163_vm4, %v2161_v6  ;;  %vm2533_vm4 = vcmask 719872  }
 0x528   : > { %v2203_v26 = vpop.permute.xlu2 %2202 }
 0x529   : > { %2206 = vst.msk [vmem:[#allocation4] sm:$0x3f] %vm2205_vm9, %v2203_v26  ;;  %vm2593_vm9 = vcmask 621568  }
 0x52a   : > { %2248 = vst.msk [vmem:[#allocation4] sm:$0x3f] %vm2247_vm5, %v2245_v42  ;;  %vm2633_vm5 = vcmask 1045504  }
 0x538   : > { %v2300_v22 = vpop.permute.xlu1 %2299 }
 0x539   : > { %2303 = vst.msk [vmem:[#allocation4] sm:$0x3f] %vm2302_vm10, %v2300_v22  ;;  %v2392_v24 = vpop.permute.xlu0 %2391  ;;  %vm2569_vm10 = vcmask 637952  }
 0x53a   : > { %2345 = vst.msk [vmem:[#allocation4] sm:$0x3f] %vm2344_vm7, %v2342_v28  ;;  %vm2581_vm7 = vcmask 629760  }
 0x53b   : > { %2395 = vst.msk [vmem:[#allocation4 + $0x8] sm:$0x3f] %vm2394_vm15, %v2392_v24  ;;  %vm2626_vm15 = vcmask 179200  }
 0x541   : > { %v2396_v2 = vld [vmem:[#allocation4] sm:$0x3f] }
 0x542   : > { %v2550_v17 = vld [vmem:[#allocation4 + $0x8] sm:$0x3f]  ;;  %2398 = vst.msk [vmem:[#allocation5] sm:$0x3f] %vm2397_vm2, %v2396_v2  ;;  %v2513_v55 = vld [vmem:[#allocation4] sm:$0x3f] }
 0x543   : > { %v2538_v45 = vld [vmem:[#allocation4 + $0x8] sm:$0x3f]  ;;  %2555 = vrot.lane.b32.xlu1 %v2550_v17, %s3572_s15  ;;  %v2549_v37 = vld [vmem:[#allocation4] sm:$0x3f] }
 0x544   : > { %v2514_v35 = vld [vmem:[#allocation4 + $0x8] sm:$0x3f]  ;;  %2543 = vrot.lane.b32.xlu2 %v2538_v45, %s5387_s12  ;;  %v2537_v0 = vld [vmem:[#allocation4] sm:$0x3f] }
 0x545   : > { %2519 = vrot.lane.b32.xlu0 %v2514_v35, %s3573_s14  ;;  %v2526_v14 = vld [vmem:[#allocation4 + $0x8] sm:$0x3f]  ;;  %v2489_v46 = vld [vmem:[#allocation4] sm:$0x3f] }
 0x546   : > { %v2502_v20 = vld [vmem:[#allocation4 + $0x8] sm:$0x3f]  ;;  %v2501_v13 = vld [vmem:[#allocation4] sm:$0x3f] }
 0x547   : > { %v2490_v27 = vld [vmem:[#allocation4 + $0x8] sm:$0x3f]  ;;  %v2525_v5 = vld [vmem:[#allocation4] sm:$0x3f] }
 0x548   : > { %v2586_v63 = vld [vmem:[#allocation4 + $0x8] sm:$0x3f]  ;;  %v2483_v54 = vld [vmem:[#allocation4] sm:$0x3f] }
 0x549   : > { %v2471_v31 = vld [vmem:[#allocation4] sm:$0x3f]  ;;  %v2562_v44 = vld [vmem:[#allocation4 + $0x8] sm:$0x3f] }
 0x54a   : > { %v2477_v29 = vld [vmem:[#allocation4] sm:$0x3f]  ;;  %v2574_v18 = vld [vmem:[#allocation4 + $0x8] sm:$0x3f] }
 0x54b   : > { %2507 = vrot.lane.b32.xlu1 %v2502_v20, %s3574_s0  ;;  %v2453_v61 = vld [vmem:[#allocation4] sm:$0x3f] }
 0x54c   : > { %2531 = vrot.lane.b32.xlu2 %v2526_v14, %s5388_s23  ;;  %v2459_v12 = vld [vmem:[#allocation4] sm:$0x3f] }
 0x54d   : > { %2495 = vrot.lane.b32.xlu0 %v2490_v27, %s3575_s29  ;;  %v2465_v34 = vld [vmem:[#allocation4] sm:$0x3f] }
 0x54e   : > { %v2441_v4 = vld [vmem:[#allocation4] sm:$0x3f] }
 0x54f   : > { %v2429_v43 = vld [vmem:[#allocation4] sm:$0x3f] }
 0x550   : > { %v2447_v51 = vld [vmem:[#allocation4] sm:$0x3f] }
 0x551   : > { %v2423_v56 = vld [vmem:[#allocation4] sm:$0x3f] }
 0x552   : > { %v2417_v32 = vld [vmem:[#allocation4] sm:$0x3f] }
 0x553   : > { %2591 = vrot.lane.b32.xlu1 %v2586_v63, %s3576_s1  ;;  %v2435_v33 = vld [vmem:[#allocation4] sm:$0x3f] }
 0x554   : > { %2517 = vrot.lane.b32.xlu2 %v2513_v55, %s3573_s14  ;;  %s3579_s14 = smov 103   ;;  %v2411_v59 = vld [vmem:[#allocation4] sm:$0x3f] }
 0x555   : > { %2553 = vrot.lane.b32.xlu0 %v2549_v37, %s3572_s15  ;;  %s5389_s15 = smov 104   ;;  %v2585_v60 = vld [vmem:[#allocation4] sm:$0x3f] }
 0x556   : > { %v2405_v38 = vld [vmem:[#allocation4] sm:$0x3f] }
 0x557   : > { %v2399_v9 = vld [vmem:[#allocation4] sm:$0x3f] }
 0x558   : > { %v2561_v11 = vld [vmem:[#allocation4] sm:$0x3f] }
 0x559   : > { %v2573_v41 = vld [vmem:[#allocation4] sm:$0x3f] }
 0x55b   : > { %2541 = vrot.lane.b32.xlu1 %v2537_v0, %s5387_s12 }
 0x55c   : > { %2493 = vrot.lane.b32.xlu2 %v2489_v46, %s3575_s29  ;;  %s3581_s29 = smov 113  }
 0x55d   : > { %2505 = vrot.lane.b32.xlu0 %v2501_v13, %s3574_s0  ;;  %s3580_s0 = smov 102  }
 0x563   : > { %2529 = vrot.lane.b32.xlu1 %v2525_v5, %s5388_s23  ;;  %s3585_s23 = smov 114  }
 0x564   : > { %2485 = vrot.lane.b32.xlu2 %v2483_v54, %s3577_s2  ;;  %s3582_s2 = smov 115  }
 0x565   : > { %2473 = vrot.lane.b32.xlu0 %v2471_v31, %s3578_s28  ;;  %s3583_s28 = smov 112  }
 0x56b   : > { %2479 = vrot.lane.b32.xlu1 %v2477_v29, %s5295_s30  ;;  %s3584_s30 = smov 116  }
 0x56c   : > { %2455 = vrot.lane.b32.xlu2 %v2453_v61, %s5389_s15 }
 0x56d   : > { %2461 = vrot.lane.b32.xlu0 %v2459_v12, %s3579_s14  ;;  %s3586_s14 = smov 78   ;;  %v390_v12 = vld [vmem:[%s5163_s4] sm:$0xff] }
 0x573   : > { %2467 = vrot.lane.b32.xlu1 %v2465_v34, %s3580_s0 }
 0x574   : > { %2443 = vrot.lane.b32.xlu2 %v2441_v4, %s3581_s29 }
 0x575   : > { %2431 = vrot.lane.b32.xlu0 %v2429_v43, %s3582_s2  ;;  %s377_s2 = sand.u32 1, %s3521_s18  }
 0x576   : > { %s378_s0 = scalar_lea.vmem [#allocation8], %s377_s2 }
 0x57b   : > { %2449 = vrot.lane.b32.xlu1 %v2447_v51, %s3583_s28 }
 0x57c   : > { %2425 = vrot.lane.b32.xlu2 %v2423_v56, %s3584_s30 }
 0x57d   : > { %2419 = vrot.lane.b32.xlu0 %v2417_v32, %s5348_s26  ;;  %s3587_s26 = smov 77  }
 0x583   : > { %2437 = vrot.lane.b32.xlu1 %v2435_v33, %s3585_s23 }
 0x584   : > { %2413 = vrot.lane.b32.xlu2 %v2411_v59, %s5299_s25  ;;  %s3189_s25 = sshll.u32 %s378_s0, 4  ;;  %s3190_s25 = int_to_ptr.vmem [resolvable:$true] %s3189_s25 }
 0x585   : > { %2589 = vrot.lane.b32.xlu0 %v2585_v60, %s3576_s1  ;;  %s3179_s1 = scalar_lea.sflag [#allocation9], %s377_s2 }
 0x58b   : > { %2407 = vrot.lane.b32.xlu1 %v2405_v38, %s5298_s16  ;;  %s5395_s16 = smov 48  }
 0x58c   : > { %2401 = vrot.lane.b32.xlu2 %v2399_v9, %s5351_s13 }
 0x58d   : > { %2565 = vrot.lane.b32.xlu0 %v2561_v11, %s3586_s14 }
 0x593   : > { %2567 = vrot.lane.b32.xlu1 %v2562_v44, %s3586_s14 }
 0x594   : > { %2577 = vrot.lane.b32.xlu2 %v2573_v41, %s3587_s26  ;;  %v386_v41 = vld [vmem:[%s5162_s3] sm:$0xff] }
 0x595   : > { %2579 = vrot.lane.b32.xlu0 %v2574_v18, %s3587_s26 }
 0x59b   : > { %2618 = vperm.xlu1 %3435, %v390_v12   ;;  %v3589_v12 = vmov 1983009808  }
 0x59c   : > { %2623 = vperm.xlu2 %3434, %v391_v3  }
 0x59e   : > { %v2544_v62 = vpop.permute.xlu2 %2543 }
 0x5a6   : > { %v2532_v7 = vpop.permute.xlu2 %2531 }
 0x5ae   : > { %v2518_v50 = vpop.permute.xlu2 %2517 }
 0x5b5   : > { %v2556_v8 = vpop.permute.xlu1 %2555 }
 0x5b6   : > { %v2494_v52 = vpop.permute.xlu2 %2493 }
 0x5b7   : > { %v2520_v1 = vpop.permute.xlu0 %2519 }
 0x5b8   : > { %v2522_v30 = vsel %vm2521_vm14, %v2518_v50, %v2520_v1  ;;  %vm2710_vm14 = vcmask 56320  }
 0x5b9   : > { %2524 = vst.msk [vmem:[#allocation5 + $0x6c] sm:$0x3f] %vm2397_vm2, %v2522_v30 }
 0x5bd   : > { %v2508_v49 = vpop.permute.xlu1 %2507 }
 0x5be   : > { %v2486_v47 = vpop.permute.xlu2 %2485 }
 0x5bf   : > { %v2496_v57 = vpop.permute.xlu0 %2495  ;;  %2488 = vst.msk [vmem:[#allocation5 + $0x5a] sm:$0x3f] %vm2397_vm2, %v2486_v47 }
 0x5c0   : > { %v2498_v16 = vsel %vm2497_vm13, %v2494_v52, %v2496_v57  ;;  %v389_v52 = vld [vmem:[%s5162_s3 + $0x18] sm:$0xff] }
 0x5c1   : > { %2500 = vst.msk [vmem:[#allocation5 + $0x60] sm:$0x3f] %vm2397_vm2, %v2498_v16 }
 0x5c5   : > { %v2592_v48 = vpop.permute.xlu1 %2591 }
 0x5c6   : > { %v2456_v40 = vpop.permute.xlu2 %2455 }
 0x5c7   : > { %v2554_v25 = vpop.permute.xlu0 %2553  ;;  %2458 = vst.msk [vmem:[#allocation5 + $0x3c] sm:$0x3f] %vm2397_vm2, %v2456_v40 }
 0x5c8   : > { %v2558_v53 = vsel %vm2557_vm8, %v2554_v25, %v2556_v8  ;;  %vm2872_vm8 = vcmask 1047556  }
 0x5c9   : > { %2560 = vst.msk [vmem:[#allocation5 + $0x7e] sm:$0x3f] %vm2397_vm2, %v2558_v53 }
 0x5cd   : > { %v2542_v15 = vpop.permute.xlu1 %2541 }
 0x5ce   : > { %v2444_v21 = vpop.permute.xlu2 %2443  ;;  %v2546_v6 = vsel %vm2545_vm3, %v2542_v15, %v2544_v62  ;;  %v387_v62 = vld [vmem:[%s5162_s3 + $0x8] sm:$0xff] }
 0x5cf   : > { %v2506_v10 = vpop.permute.xlu0 %2505  ;;  %2446 = vst.msk [vmem:[#allocation5 + $0x30] sm:$0x3f] %vm2397_vm2, %v2444_v21 }
 0x5d0   : > { %v2510_v39 = vsel %vm2509_vm1, %v2506_v10, %v2508_v49  ;;  %2548 = vst.msk [vmem:[#allocation5 + $0x78] sm:$0x3f] %vm2397_vm2, %v2546_v6  ;;  %vm3005_vm1 = vcmask 261120  }
 0x5d1   : > { %2512 = vst.msk [vmem:[#allocation5 + $0x66] sm:$0x3f] %vm2397_vm2, %v2510_v39 }
 0x5d5   : > { %v2530_v23 = vpop.permute.xlu1 %2529 }
 0x5d6   : > { %v2426_v28 = vpop.permute.xlu2 %2425  ;;  %v2534_v26 = vsel %vm2533_vm4, %v2530_v23, %v2532_v7  ;;  %v388_v7 = vld [vmem:[%s5162_s3 + $0x10] sm:$0xff]  ;;  %vm3007_vm4 = vcmask 392192  }
 0x5d7   : > { %v2474_v19 = vpop.permute.xlu0 %2473  ;;  %2428 = vst.msk [vmem:[#allocation5 + $0x1e] sm:$0x3f] %vm2397_vm2, %v2426_v28  ;;  %v2612_v42 = vld [vmem:[#allocation5 + $0x78] sm:$0xff] }
 0x5d8   : > { %2476 = vst.msk [vmem:[#allocation5 + $0x4e] sm:$0x3f] %vm2397_vm2, %v2474_v19  ;;  %2637 = vmatpush.msrb.mxu2 %v2612_v42  ;;  %v2610_v35 = vld [vmem:[#allocation5 + $0x68] sm:$0xff]  ;;  %v2609_v14 = vld [vmem:[#allocation5 + $0x60] sm:$0xff]  ;;  %v3251_v19 = vsel %vm4686_vm0, 1.0, %v3561_v36  ;;  %vm5392_vm0 = vcmask 130048  }
 0x5d9   : > { %2536 = vst.msk [vmem:[#allocation5 + $0x72] sm:$0x3f] %vm2397_vm2, %v2534_v26  ;;  %3317 = vmatpush.msk.msrb.mxu0 %vm1849_vm6, %v3251_v19  ;;  %3320 = vmatpush.msk.msrb.mxu1 %vm1849_vm6, %v3251_v19  ;;  %vm5393_vm13 = vmmov %vm5392_vm0 }
 0x5db   : > { %3326 = vmatpush.msk.msra.mxu0 %vm1849_vm6, %v3251_v19 }
 0x5dd   : > { %v2480_v24 = vpop.permute.xlu1 %2479 }
 0x5de   : > { %v2414_v22 = vpop.permute.xlu2 %2413  ;;  %2482 = vst.msk [vmem:[#allocation5 + $0x54] sm:$0x3f] %vm2397_vm2, %v2480_v24 }
 0x5df   : > { %v2462_v17 = vpop.permute.xlu0 %2461  ;;  %2416 = vst.msk [vmem:[#allocation5 + $0x12] sm:$0x3f] %vm2397_vm2, %v2414_v22 }
 0x5e0   : > { %2464 = vst.msk [vmem:[#allocation5 + $0x42] sm:$0x3f] %vm2397_vm2, %v2462_v17  ;;  %v2611_v45 = vld [vmem:[#allocation5 + $0x70] sm:$0xff] }
 0x5e1   : > { %2638 = vmatpush.msrb.mxu2 %v2611_v45 }
 0x5e3   : > { %2639 = vmatpush.msrb.mxu2 %v2610_v35 }
 0x5e5   : > { %2640 = vmatpush.msrb.mxu2 %v2609_v14  ;;  %v2468_v27 = vpop.permute.xlu1 %2467  ;;  %v2608_v63 = vld [vmem:[#allocation5 + $0x58] sm:$0xff]  ;;  %v2607_v55 = vld [vmem:[#allocation5 + $0x50] sm:$0xff] }
 0x5e6   : > { %v2402_v20 = vpop.permute.xlu2 %2401  ;;  %2470 = vst.msk [vmem:[#allocation5 + $0x48] sm:$0x3f] %vm2397_vm2, %v2468_v27 }
 0x5e7   : > { %v2432_v2 = vpop.permute.xlu0 %2431  ;;  %2404 = vst.msk [vmem:[#allocation5 + $0x6] sm:$0x3f] %vm2397_vm2, %v2402_v20  ;;  %2641 = vmatpush.msrb.mxu2 %v2608_v63  ;;  %v2605_v13 = vld [vmem:[#allocation5 + $0x40] sm:$0xff] }
 0x5e8   : > { %2434 = vst.msk [vmem:[#allocation5 + $0x24] sm:$0x3f] %vm2397_vm2, %v2432_v2 }
 0x5e9   : > { %2642 = vmatpush.msrb.mxu2 %v2607_v55 }
 0x5ed   : > { %v2450_v37 = vpop.permute.xlu1 %2449  ;;  %v2606_v46 = vld [vmem:[#allocation5 + $0x48] sm:$0xff] }
 0x5ee   : > { %2452 = vst.msk [vmem:[#allocation5 + $0x36] sm:$0x3f] %vm2397_vm2, %v2450_v37  ;;  %2643 = vmatpush.msrb.mxu2 %v2606_v46  ;;  %v2578_v60 = vpop.permute.xlu2 %2577  ;;  %v2597_v18 = vld [vmem:[#allocation5] sm:$0xff] }
 0x5ef   : > { %v2420_v0 = vpop.permute.xlu0 %2419  ;;  %v2601_v56 = vld [vmem:[#allocation5 + $0x20] sm:$0xff] }
 0x5f0   : > { %2422 = vst.msk [vmem:[#allocation5 + $0x18] sm:$0x3f] %vm2397_vm2, %v2420_v0  ;;  %2644 = vmatpush.msrb.mxu2 %v2605_v13 }
 0x5f5   : > { %v2438_v5 = vpop.permute.xlu1 %2437  ;;  %v2604_v54 = vld [vmem:[#allocation5 + $0x38] sm:$0xff]  ;;  %v2603_v61 = vld [vmem:[#allocation5 + $0x30] sm:$0xff] }
 0x5f6   : > { %2440 = vst.msk [vmem:[#allocation5 + $0x2a] sm:$0x3f] %vm2397_vm2, %v2438_v5  ;;  %2645 = vmatpush.msrb.mxu2 %v2604_v54  ;;  %v2624_v40 = vpop.permute.xlu2 %2623 }
 0x5f7   : > { %v2590_v31 = vpop.permute.xlu0 %2589  ;;  %v2600_v32 = vld [vmem:[#allocation5 + $0x18] sm:$0xff] }
 0x5f8   : > { %v2594_v29 = vsel %vm2593_vm9, %v2590_v31, %v2592_v48  ;;  %2646 = vmatpush.msrb.mxu2 %v2603_v61  ;;  %vm3009_vm9 = vcmask 523264  }
 0x5f9   : > { %2596 = vst.msk [vmem:[#allocation5 + $0x90] sm:$0x3f] %vm2397_vm2, %v2594_v29 }
 0x5fd   : > { %v2408_v34 = vpop.permute.xlu1 %2407  ;;  %v2602_v4 = vld [vmem:[#allocation5 + $0x28] sm:$0xff] }
 0x5fe   : > { %2410 = vst.msk [vmem:[#allocation5 + $0xc] sm:$0x3f] %vm2397_vm2, %v2408_v34  ;;  %2647 = vmatpush.msrb.mxu2 %v2602_v4  ;;  %v2875_v34 = vunpack.c.l.s4 %v3589_v12  ;;  %v3035_v12 = vld [vmem:[%s5164_s5 + $0x68] sm:$0xff] }
 0x5ff   : > { %v2566_v43 = vpop.permute.xlu0 %2565 }
 0x600   : > { %v2615_v51 = vld [vmem:[#allocation5 + $0x90] sm:$0x3f]  ;;  %2648 = vmatpush.msrb.mxu2 %v2601_v56 }
 0x601   : > { %3314 = vmatpush.msk.msrb.mxu3 %vm2633_vm5, %v2615_v51  ;;  %v2876_v51 = vunpack.c.0.s8 %v2875_v34  ;;  %v3051_v34 = vld [vmem:[%s5164_s5 + $0xe8] sm:$0xff]  ;;  %vm3013_vm5 = vcmask 916480  }
 0x602   : > { %2649 = vmatpush.msrb.mxu2 %v2600_v32 }
 0x605   : > { %v2568_v33 = vpop.permute.xlu1 %2567  ;;  %v2599_v59 = vld [vmem:[#allocation5 + $0x10] sm:$0xff]  ;;  %v2598_v44 = vld [vmem:[#allocation5 + $0x8] sm:$0xff] }
 0x606   : > { %v2570_v9 = vsel %vm2569_vm10, %v2566_v43, %v2568_v33  ;;  %2650 = vmatpush.msrb.mxu2 %v2599_v59  ;;  %v3590_v59 = vmov 1934713408   ;;  %vm5399_vm10 = vcmask 785408  }
 0x607   : > { %v2580_v38 = vpop.permute.xlu0 %2579  ;;  %2572 = vst.msk [vmem:[#allocation5 + $0x84] sm:$0x3f] %vm2397_vm2, %v2570_v9 }
 0x608   : > { %v2582_v11 = vsel %vm2581_vm7, %v2578_v60, %v2580_v38  ;;  %2651 = vmatpush.msrb.mxu2 %v2598_v44  ;;  %v2885_v60 = vunpack.c.l.s4 %v3590_v59  ;;  %v3031_v59 = vld [vmem:[%s5164_s5 + $0x48] sm:$0xff]  ;;  %vm5400_vm7 = vmmov %vm5399_vm10 }
 0x609   : > { %2584 = vst.msk [vmem:[#allocation5 + $0x8a] sm:$0x3f] %vm2397_vm2, %v2582_v11  ;;  %vm2685_vm2 = vcmask 752640  }
 0x60a   : > { %2652 = vmatpush.msrb.mxu2 %v2597_v18  ;;  %v2886_v44 = vunpack.c.0.s8 %v2885_v60  ;;  %v3047_v60 = vld [vmem:[%s5164_s5 + $0xc8] sm:$0xff] }
 0x60b   : > { %2653 = vmatmul.f32.vlgmr.msrb.gmra.mxu2 %v386_v41 }
 0x60d   : > { %v2619_v1 = vpop.permute.xlu1 %2618 }
 0x60e   : > { %v2613_v50 = vld [vmem:[#allocation5 + $0x80] sm:$0xff] }
 0x610   : > { %v2614_v3 = vld [vmem:[#allocation5 + $0x88] sm:$0xff] }
 0x611   : > { %2674 = vmatpush.msrb.mxu3 %v2614_v3 }
 0x613   : > { %2675 = vmatpush.msrb.mxu3 %v2613_v50  ;;  %2656 = vmatmul.f32.gmra.mxu2 %v388_v7 }
 0x614   : > { %3315 = vmatmul.msk.f32.vlgmr.msrb.gmra.mxu3 %vm2626_vm15, %v387_v62 }
 0x615   : > { %3323 = vmatpush.msk.msra.mxu3 %vm1849_vm6, %v3251_v19  ;;  %vm2860_vm6 = vcmask 31744  }
 0x61c   : > { %3316 = vmatmul.msk.f32.gmra.mxu3 %vm2626_vm15, %v389_v52  ;;  %vm3112_vm15 = vcmask 982016  }
 0x68e   : > { %v2654_v8 = vpop.f32.mrf.mxu2 }
 0x68f   : > { %v2655_v30 = vadd.f32 %v2654_v8, %v2619_v1 }
 0x696   : > { %v2657_v16 = vpop.f32.mrf.mxu2 }
 0x697   : > { %v2677_v47 = vpop.f32.mrf.mxu3  ;;  %v2658_v48 = vadd.f32 %v2657_v16, %v2624_v40 }
 0x698   : > { %v2678_v49 = vadd.f32 %v2677_v47, %v2655_v30 }
 0x69a   : > { %v2683_v57 = vmax.f32 %v2678_v49, 0.0 }
 0x69c   : > { %2686 = vst.msk [vmem:[#allocation6] sm:$0xff] %vm2685_vm2, %v2683_v57 }
 0x69f   : > { %v2680_v25 = vpop.f32.mrf.mxu3 }
 0x6a0   : > { %v2681_v53 = vadd.f32 %v2680_v25, %v2658_v48 }
 0x6a2   : > { %v2684_v21 = vmax.f32 %v2681_v53, 0.0 }
 0x6a3   : > { %v2688_v15 = vld [vmem:[#allocation6] sm:$0xff] }
 0x6a4   : > { %2687 = vst.msk [vmem:[#allocation6 + $0x8] sm:$0xff] %vm2685_vm2, %v2684_v21  ;;  %2692 = vrot.lane.b32.xlu0 %v2688_v15, %s5351_s13  ;;  %vm3149_vm2 = vcmask 687104  }
 0x6ab   : > { %v2689_v10 = vld [vmem:[#allocation6 + $0x8] sm:$0xff] }
 0x6ac   : > { %2694 = vrot.lane.b32.xlu1 %v2689_v10, %s5351_s13  ;;  %s3588_s13 = smov 56  }
 0x716   : > { %v2693_v6 = vpop.permute.xlu0 %2692 }
 0x717   : > { %v2698_v39 = vmax.f32 %v2688_v15, %v2693_v6 }
 0x719   : > { %2702 = vrot.lane.b32.xlu2 %v2698_v39, %s3584_s30 }
 0x71e   : > { %v2695_v28 = vpop.permute.xlu1 %2694 }
 0x71f   : > { %v2699_v23 = vmax.f32 %v2689_v10, %v2695_v28 }
 0x721   : > { %2704 = vrot.lane.b32.xlu0 %v2699_v23, %s3584_s30  ;;  %s5391_s30 = smov 8  }
 0x773   : > { %v2703_v26 = vpop.permute.xlu2 %2702 }
 0x774   : > { %v2708_v42 = vmax.f32 %v2698_v39, %v2703_v26 }
 0x776   : > { %2743 = vrot.lane.b32.xlu2 %v2708_v42, %s5389_s15  ;;  %2774 = vrot.lane.b32.xlu1 %v2708_v42, %s5387_s12 }
 0x777   : > { %3318 = vmatmul.msk.f32.vlgmr.msrb.gmra.mxu0 %vm2710_vm14, %v2708_v42  ;;  %2805 = vrot.lane.b32.xlu0 %v2708_v42, %s3588_s13 }
 0x793   : > { %v2705_v36 = vpop.permute.xlu0 %2704 }
 0x794   : > { %v2709_v58 = vmax.f32 %v2699_v23, %v2705_v36 }
 0x796   : > { %2807 = vrot.lane.b32.xlu0 %v2709_v58, %s3588_s13  ;;  %2745 = vrot.lane.b32.xlu2 %v2709_v58, %s5389_s15  ;;  %s5390_s15 = smov 4  }
 0x797   : > { %2776 = vrot.lane.b32.xlu1 %v2709_v58, %s5387_s12  ;;  %3319 = vmatmul.msk.f32.gmra.mxu0 %vm2710_vm14, %v2709_v58 }
 0x7d0   : > { %v2744_v22 = vpop.permute.xlu2 %2743 }
 0x7d1   : > { %3321 = vmatmul.msk.f32.vlgmr.msrb.gmra.mxu1 %vm2710_vm14, %v2744_v22 }
 0x7e8   : > { %v2775_v24 = vpop.permute.xlu1 %2774 }
 0x7e9   : > { %v2806_v17 = vpop.permute.xlu0 %2805  ;;  %3324 = vmatmul.msk.f32.vlgmr.msra.gmra.mxu3 %vm2710_vm14, %v2775_v24 }
 0x7ea   : > { %3327 = vmatmul.msk.f32.vlgmr.msra.gmra.mxu0 %vm2710_vm14, %v2806_v17 }
 0x7f0   : > { %v2746_v45 = vpop.permute.xlu2 %2745 }
 0x7f1   : > { %3322 = vmatmul.msk.f32.gmra.mxu1 %vm2710_vm14, %v2746_v45 }
 0x7f4   : > { %v2737_v27 = vpop.f32.mrf.mxu0 }
 0x808   : > { %v2808_v35 = vpop.permute.xlu0 %2807 }
 0x809   : > { %v2777_v14 = vpop.permute.xlu1 %2776  ;;  %3328 = vmatmul.msk.f32.gmra.mxu0 %vm2710_vm14, %v2808_v35 }
 0x80a   : > { %3325 = vmatmul.msk.f32.gmra.mxu3 %vm2710_vm14, %v2777_v14 }
 0x814   : > { %v2740_v63 = vpop.f32.mrf.mxu0 }
 0x84e   : > { %v2768_v20 = vpop.f32.mrf.mxu1 }
 0x867   : > { %v2830_v55 = vpop.f32.mrf.mxu0 }
 0x86c   : > { %v2799_v37 = vpop.f32.mrf.mxu3 }
 0x86e   : > { %v2771_v2 = vpop.f32.mrf.mxu1 }
 0x86f   : > { %2840 = vrot.lane.b32.xlu1 %v2771_v2, %s5390_s15 }
 0x877   : > { %2838 = vrot.lane.b32.xlu1 %v2768_v20, %s5390_s15 }
 0x886   : > { %v2833_v0 = vpop.f32.mrf.mxu0 }
 0x887   : > { %2856 = vrot.lane.b32.xlu0 %v2833_v0, %s5326_s24 }
 0x88d   : > { %v2802_v46 = vpop.f32.mrf.mxu3 }
 0x88e   : > { %2848 = vrot.lane.b32.xlu2 %v2802_v46, %s5391_s30 }
 0x88f   : > { %2854 = vrot.lane.b32.xlu0 %v2830_v55, %s5326_s24  ;;  %s5394_s24 = smov 32  }
 0x896   : > { %2846 = vrot.lane.b32.xlu2 %v2799_v37, %s5391_s30 }
 0x8e1   : > { %v2841_v13 = vpop.permute.xlu1 %2840 }
 0x8e2   : > { %v2862_v54 = vsel %vm2860_vm6, %v2740_v63, %v2841_v13 }
 0x8e8   : > { %v2849_v5 = vpop.permute.xlu2 %2848 }
 0x8e9   : > { %v2864_v31 = vsel %vm2274_vm11, %v2862_v54, %v2849_v5  ;;  %v2839_v4 = vpop.permute.xlu1 %2838  ;;  %v3037_v54 = vld [vmem:[%s5164_s5 + $0x78] sm:$0xff] }
 0x8ea   : > { %v2861_v56 = vsel %vm2860_vm6, %v2737_v27, %v2839_v4  ;;  %3055 = vmatpush.msra.mxu1 %v3037_v54  ;;  %v3034_v4 = vld [vmem:[%s5164_s5 + $0x60] sm:$0xff] }
 0x8f0   : > { %v2847_v43 = vpop.permute.xlu2 %2846 }
 0x8f1   : > { %v2863_v32 = vsel %vm2274_vm11, %v2861_v56, %v2847_v43  ;;  %v3033_v43 = vld [vmem:[%s5164_s5 + $0x58] sm:$0xff]  ;;  %v3032_v56 = vld [vmem:[%s5164_s5 + $0x50] sm:$0xff]  ;;  %vm5398_vm11 = vmmov %vm5392_vm0 }
 0x8f9   : > { %v2857_v29 = vpop.permute.xlu0 %2856 }
 0x8fa   : > { %v2866_v61 = vsel %vm1594_vm12, %v2864_v31, %v2857_v29  ;;  %v3036_v31 = vld [vmem:[%s5164_s5 + $0x70] sm:$0xff]  ;;  %v3053_v29 = vld [vmem:[%s5164_s5 + $0xf8] sm:$0xff] }
 0x8fb   : > { %2868 = vst.msk [vmem:[#allocation7 + $0x8] sm:$0xff] %vm5392_vm0, %v2866_v61  ;;  %3075 = vmatpush.msrb.mxu3 %v3053_v29  ;;  %v3052_v61 = vld [vmem:[%s5164_s5 + $0xf0] sm:$0xff]  ;;  %3056 = vmatpush.msra.mxu1 %v3036_v31 }
 0x8fd   : > { %3076 = vmatpush.msrb.mxu3 %v3052_v61  ;;  %3057 = vmatpush.msra.mxu1 %v3035_v12 }
 0x8ff   : > { %3077 = vmatpush.msrb.mxu3 %v3051_v34  ;;  %3058 = vmatpush.msra.mxu1 %v3034_v4 }
 0x901   : > { %v2855_v33 = vpop.permute.xlu0 %2854  ;;  %3059 = vmatpush.msra.mxu1 %v3033_v43 }
 0x902   : > { %v2865_v38 = vsel %vm1594_vm12, %v2863_v32, %v2855_v33  ;;  %v2870_v9 = vld [vmem:[#allocation7 + $0x8] sm:$0xff]  ;;  %v3048_v33 = vld [vmem:[%s5164_s5 + $0xd0] sm:$0xff]  ;;  %vm5397_vm12 = vmmov %vm5392_vm0 }
 0x903   : > { %2867 = vst.msk [vmem:[#allocation7] sm:$0xff] %vm5393_vm13, %v2865_v38  ;;  %v2915_v11 = vperm.slane %v2870_v9, %v2876_v51  ;;  %v2910_v18 = vrot.slane %v2870_v9, 4  ;;  %v3049_v32 = vld [vmem:[%s5164_s5 + $0xd8] sm:$0xff]  ;;  %3060 = vmatpush.msra.mxu1 %v3032_v56  ;;  %v3030_v38 = vld [vmem:[%s5164_s5 + $0x40] sm:$0xff] }
 0x904   : > { %v3029_v9 = vld [vmem:[%s5164_s5 + $0x38] sm:$0xff] }
 0x905   : > { %v2920_v41 = vrot.slane %v2915_v11, 4  ;;  %v4908_v3 = vperm.slane %v2915_v11, %v2886_v44  ;;  %v2911_v7 = vsel %vm2872_vm8, 0.0, %v2910_v18  ;;  %3061 = vmatpush.msra.mxu1 %v3031_v59  ;;  %v3046_v11 = vld [vmem:[%s5164_s5 + $0xc0] sm:$0xff]  ;;  %v3027_v18 = vld [vmem:[%s5164_s5 + $0x28] sm:$0xff] }
 0x906   : > { %v2919_v30 = vperm.slane %v2911_v7, %v2876_v51  ;;  %v3026_v7 = vld [vmem:[%s5164_s5 + $0x20] sm:$0xff] }
 0x907   : > { %v2921_v62 = vsel %vm2872_vm8, 0.0, %v2920_v41  ;;  %v2940_v49 = vrot.slane %v4908_v3, 4  ;;  %3062 = vmatpush.msra.mxu1 %v3030_v38  ;;  %v3045_v41 = vld [vmem:[%s5164_s5 + $0xb8] sm:$0xff]  ;;  %v3100_v59 = vld [vmem:[%s5166_s7 + $0x20] sm:$0xff]  ;;  %v3098_v38 = vld [vmem:[%s5166_s7 + $0x10] sm:$0xff] }
 0x908   : > { %v2929_v1 = vperm.slane %v2921_v62, %v2886_v44  ;;  %v2935_v39 = vperm.slane %v2919_v30, %v2886_v44  ;;  %v2930_v22 = vrot.slane %v2919_v30, 4  ;;  %v3044_v62 = vld [vmem:[%s5164_s5 + $0xb0] sm:$0xff]  ;;  %v3041_v30 = vld [vmem:[%s5164_s5 + $0x98] sm:$0xff] }
 0x909   : > { %v2941_v6 = vsel %vm2872_vm8, 0.0, %v2940_v49  ;;  %3063 = vmatpush.msra.mxu1 %v3029_v9  ;;  %v3023_v49 = vld [vmem:[%s5164_s5 + $0x8] sm:$0xff] }
 0x90a   : > { %v2869_v50 = vld [vmem:[#allocation7] sm:$0xff]  ;;  %v2942_v21 = vrot.slane %v2929_v1, 4  ;;  %v2944_v17 = vrot.slane %v2935_v39, 4  ;;  %v2931_v14 = vsel %vm2872_vm8, 0.0, %v2930_v22  ;;  %v3097_v9 = vld [vmem:[%s5166_s7 + $0x8] sm:$0xff] }
 0x90b   : > { %v2877_v52 = vperm.slane %v2869_v50, %v2876_v51  ;;  %v2871_v8 = vrot.slane %v2869_v50, 4  ;;  %v2939_v55 = vperm.slane %v2931_v14, %v2886_v44  ;;  %v3043_v50 = vld [vmem:[%s5164_s5 + $0xa8] sm:$0xff] }
 0x90c   : > { %v2943_v58 = vsel %vm2872_vm8, 0.0, %v2942_v21  ;;  %v2945_v20 = vsel %vm2872_vm8, 0.0, %v2944_v17  ;;  %v3108_v21 = vld [vmem:[%s5166_s7 + $0x60] sm:$0xff] }
 0x90d   : > { %v4912_v47 = vperm.slane %v2877_v52, %v2886_v44  ;;  %v2882_v57 = vrot.slane %v2877_v52, 4  ;;  %v2873_v16 = vsel %vm2872_vm8, 0.0, %v2871_v8  ;;  %v2946_v0 = vrot.slane %v2939_v55, 4  ;;  %v3025_v52 = vld [vmem:[%s5164_s5 + $0x18] sm:$0xff]  ;;  %v3042_v8 = vld [vmem:[%s5164_s5 + $0xa0] sm:$0xff] }
 0x90e   : > { %v2881_v40 = vperm.slane %v2873_v16, %v2876_v51  ;;  %v3050_v51 = vld [vmem:[%s5164_s5 + $0xe0] sm:$0xff] }
 0x90f   : > { %v2902_v48 = vrot.slane %v4912_v47, 4  ;;  %v2883_v25 = vsel %vm2872_vm8, 0.0, %v2882_v57  ;;  %v2947_v13 = vsel %vm2872_vm8, 0.0, %v2946_v0  ;;  %3078 = vmatpush.msrb.mxu3 %v3050_v51  ;;  %v3040_v57 = vld [vmem:[%s5164_s5 + $0x90] sm:$0xff]  ;;  %v3022_v16 = vld [vmem:[%s5164_s5] sm:$0xff] }
 0x910   : > { %v2891_v53 = vperm.slane %v2883_v25, %v2886_v44  ;;  %v2897_v15 = vperm.slane %v2881_v40, %v2886_v44  ;;  %v2892_v26 = vrot.slane %v2881_v40, 4  ;;  %v3039_v40 = vld [vmem:[%s5164_s5 + $0x88] sm:$0xff]  ;;  %v3110_v25 = vld [vmem:[%s5166_s7 + $0x70] sm:$0xff] }
 0x911   : > { %v2903_v10 = vsel %vm2872_vm8, 0.0, %v2902_v48  ;;  %3079 = vmatpush.msrb.mxu3 %v3049_v32  ;;  %v3038_v48 = vld [vmem:[%s5164_s5 + $0x80] sm:$0xff]  ;;  %3117 = vmatpush.msrb.mxu0 %v3110_v25  ;;  %v3102_v32 = vld [vmem:[%s5166_s7 + $0x30] sm:$0xff]  ;;  %v3138_v25 = vld [vmem:[%s5168_s9 + $0x8] sm:$0xff] }
 0x912   : > { %v3436_v28 = vpack.i.bf16 %v2903_v10, %v2941_v6  ;;  %v3441_v23 = vpack.i.bf16 %v2891_v53, %v2929_v1  ;;  %v2904_v19 = vrot.slane %v2891_v53, 4  ;;  %v2906_v42 = vrot.slane %v2897_v15, 4  ;;  %v3024_v1 = vld [vmem:[%s5164_s5 + $0x10] sm:$0xff]  ;;  %v3109_v53 = vld [vmem:[%s5166_s7 + $0x68] sm:$0xff] }
 0x913   : > { %v2893_v45 = vsel %vm2872_vm8, 0.0, %v2892_v26  ;;  %v3446_v2 = vpack.i.bf16 %v2897_v15, %v2935_v39  ;;  %3080 = vmatpush.msrb.mxu3 %v3048_v33  ;;  %3118 = vmatpush.msrb.mxu0 %v3109_v53  ;;  %v3107_v15 = vld [vmem:[%s5166_s7 + $0x58] sm:$0xff]  ;;  %v3106_v10 = vld [vmem:[%s5166_s7 + $0x50] sm:$0xff]  ;;  %v3105_v39 = vld [vmem:[%s5166_s7 + $0x48] sm:$0xff] }
 0x914   : > { %3437 = vrot.lane.b32.xlu1 %v3436_v28, %s5313_s22  ;;  %3442 = vrot.lane.b32.xlu2 %v3441_v23, %s5394_s24  ;;  %v2905_v36 = vsel %vm2872_vm8, 0.0, %v2904_v19  ;;  %v2907_v35 = vsel %vm2872_vm8, 0.0, %v2906_v42  ;;  %v2901_v27 = vperm.slane %v2893_v45, %v2886_v44  ;;  %s5396_s22 = smov 64   ;;  %v3028_v44 = vld [vmem:[%s5164_s5 + $0x30] sm:$0xff]  ;;  %v3104_v28 = vld [vmem:[%s5166_s7 + $0x40] sm:$0xff]  ;;  %s3487_s24 = scalar_lea.hbm %s5170_s11, 2 }
 0x915   : > { %v3451_v24 = vpack.i.bf16 %v2905_v36, %v2943_v58  ;;  %v3456_v63 = vpack.i.bf16 %v2907_v35, %v2945_v20  ;;  %3081 = vmatpush.msrb.mxu3 %v3047_v60  ;;  %3064 = vmatpush.msra.mxu1 %v3028_v44  ;;  %v3103_v23 = vld [vmem:[%s5166_s7 + $0x38] sm:$0xff]  ;;  %v3101_v33 = vld [vmem:[%s5166_s7 + $0x28] sm:$0xff]  ;;  %v3147_v44 = vld [vmem:[%s5168_s9 + $0x50] sm:$0xf] }
 0x916   : > { %v3461_v37 = vpack.i.bf16 %v2901_v27, %v2939_v55  ;;  %v2908_v46 = vrot.slane %v2901_v27, 4  ;;  %3119 = vmatpush.msrb.mxu0 %v3108_v21  ;;  %v3099_v60 = vld [vmem:[%s5166_s7 + $0x18] sm:$0xff]  ;;  %v3137_v53 = vld [vmem:[%s5168_s9] sm:$0xff] }
 0x917   : > { %3452 = vrot.lane.b32.xlu0 %v3451_v24, %s5395_s16  ;;  %3082 = vmatpush.msrb.mxu3 %v3046_v11  ;;  %v3096_v11 = vld [vmem:[%s5166_s7] sm:$0xff] }
 0x918   : > { %v2909_v5 = vsel %vm2872_vm8, 0.0, %v2908_v46  ;;  %3065 = vmatpush.msra.mxu1 %v3027_v18  ;;  %3120 = vmatpush.msrb.mxu0 %v3107_v15  ;;  %v3145_v18 = vld [vmem:[%s5168_s9 + $0x40] sm:$0xff] }
 0x919   : > { %3083 = vmatpush.msrb.mxu3 %v3045_v41  ;;  %v3146_v41 = vld [vmem:[%s5168_s9 + $0x48] sm:$0xff]  ;;  %v3111_v21 = vld [vmem:[%s5167_s8] sm:$0x1] }
 0x91a   : > { %3066 = vmatpush.msra.mxu1 %v3026_v7  ;;  %3121 = vmatpush.msrb.mxu0 %v3106_v10  ;;  %v3143_v7 = vld [vmem:[%s5168_s9 + $0x30] sm:$0xff] }
 0x91b   : > { %3084 = vmatpush.msrb.mxu3 %v3044_v62  ;;  %v3144_v62 = vld [vmem:[%s5168_s9 + $0x38] sm:$0xff] }
 0x91c   : > { %3447 = vrot.lane.b32.xlu1 %v3446_v2, %s5396_s22  ;;  %3457 = vrot.lane.b32.xlu2 %v3456_v63, %s5387_s12  ;;  %s3187_s12 = scalar_lea.hbm %s5170_s11, %s3672_s21 }
 0x91d   : > { %3085 = vmatpush.msrb.mxu3 %v3043_v50  ;;  %3067 = vmatpush.msra.mxu1 %v3025_v52  ;;  %v3142_v50 = vld [vmem:[%s5168_s9 + $0x28] sm:$0xff]  ;;  %v3141_v52 = vld [vmem:[%s5168_s9 + $0x20] sm:$0xff] }
 0x91e   : > { %3122 = vmatpush.msrb.mxu0 %v3105_v39  ;;  %v3148_v39 = vld [vmem:[%s5169_s10] sm:$0x1] }
 0x91f   : > { %3462 = vrot.lane.b32.xlu0 %v3461_v37, %s5337_s19  ;;  %3086 = vmatpush.msrb.mxu3 %v3042_v8  ;;  %v3140_v8 = vld [vmem:[%s5168_s9 + $0x18] sm:$0xff] }
 0x920   : > { %3068 = vmatpush.msra.mxu1 %v3024_v1  ;;  %3123 = vmatpush.msrb.mxu0 %v3104_v28  ;;  %v3054_v1 = vld [vmem:[%s5165_s6] sm:$0x1] }
 0x921   : > { %3087 = vmatpush.msrb.mxu3 %v3041_v30 }
 0x922   : > { %3069 = vmatpush.msra.mxu1 %v3023_v49  ;;  %3124 = vmatpush.msrb.mxu0 %v3103_v23 }
 0x923   : > { %3088 = vmatpush.msrb.mxu3 %v3040_v57 }
 0x924   : > { %3001 = vrot.lane.b32.xlu1 %v2947_v13, %s3583_s28  ;;  %2973 = vrot.lane.b32.xlu2 %v2909_v5, %s3583_s28  ;;  %s3191_s28 = sshll.u32 %s3187_s12, 4  ;;  %s3192_s28 = int_to_ptr.hbm [resolvable:$true] %s3191_s28 }
 0x925   : > { %3070 = vmatpush.msra.mxu1 %v3022_v16  ;;  %3089 = vmatpush.msrb.mxu3 %v3039_v40  ;;  %s3481_s13 = sshra.s32 %s3192_s28, 4  ;;  %s3482_s13 = int_to_ptr.hbm [resolvable:$true] %s3481_s13 }
 0x926   : > { %3125 = vmatpush.msrb.mxu0 %v3102_v32  ;;  %s3483_s15 = scalar_lea.hbm %s3482_s13, 1  ;;  %p3488_p0 = scmp.lt.s32.totalorder %s3482_s13, %s5170_s11 }
 0x927   : > { %3090 = vmatpush.msrb.mxu3 %v3038_v48  ;;  %v3139_v48 = vld [vmem:[%s5168_s9 + $0x10] sm:$0xff]  ;;  %p3484_p11 = scmp.ne.s32.totalorder %s3482_s13, %s3483_s15  ;;  %p3489_p1 = scmp.lt.s32.totalorder %s3487_s24, %s3483_s15 }
 0x928   : > { %3126 = vmatpush.msrb.mxu0 %v3101_v33 }
 0x929   : > { %p3485_p12 = pnand %p3484_p11, %p3689_p5  ;;  %p3490_p2 = por %p3489_p1, %p3488_p0 }
 0x92a   : > { %3127 = vmatpush.msrb.mxu0 %v3100_v59 }
 0x92b   : > { %p3486_p13 = pneg %p3485_p12 }
 0x92c   : > { %3128 = vmatpush.msrb.mxu0 %v3099_v60 }
 0x92d   : > { %p3491_p3 = pnand %p3490_p2, %p3486_p13 }
 0x92e   : > { %3129 = vmatpush.msrb.mxu0 %v3098_v38 }
 0x930   : > { %3130 = vmatpush.msrb.mxu0 %v3097_v9 }
 0x932   : > { %3131 = vmatpush.msrb.mxu0 %v3096_v11 }
 0x96e   : > { %v3443_v6 = vpop.permute.xlu2 %3442 }
 0x96f   : > { %v3445_v17 = vunpack.i.h.bf16 %v3443_v6  ;;  %v3444_v45 = vunpack.i.l.bf16 %v3443_v6 }
 0x976   : > { %v3458_v58 = vpop.permute.xlu2 %3457 }
 0x977   : > { %v3460_v37 = vunpack.i.h.bf16 %v3458_v58  ;;  %v3459_v13 = vunpack.i.l.bf16 %v3458_v58 }
 0x97e   : > { %v2974_v12 = vpop.permute.xlu2 %2973 }
 0x986   : > { %v3438_v19 = vpop.permute.xlu1 %3437 }
 0x987   : > { %v3440_v26 = vunpack.i.h.bf16 %v3438_v19  ;;  %v3439_v42 = vunpack.i.l.bf16 %v3438_v19 }
 0x989   : > { %v3453_v36 = vpop.permute.xlu0 %3452  ;;  %v3004_v22 = vsel %vm5397_vm12, %v4912_v47, %v3440_v26  ;;  %v3015_v24 = vsel %vm5398_vm11, %v4908_v3, %v3439_v42 }
 0x98a   : > { %v3455_v35 = vunpack.i.h.bf16 %v3453_v36  ;;  %v3454_v14 = vunpack.i.l.bf16 %v3453_v36  ;;  %v3006_v20 = vsel %vm3005_vm1, %v3004_v22, %v3445_v17  ;;  %v3016_v27 = vsel %vm3005_vm1, %v3015_v24, %v3444_v45 }
 0x98c   : > { %v3008_v0 = vsel %vm3007_vm4, %v3006_v20, %v3455_v35  ;;  %v3017_v46 = vsel %vm3007_vm4, %v3016_v27, %v3454_v14 }
 0x98e   : > { %v3448_v2 = vpop.permute.xlu1 %3447 }
 0x98f   : > { %v3450_v63 = vunpack.i.h.bf16 %v3448_v2  ;;  %v3449_v55 = vunpack.i.l.bf16 %v3448_v2 }
 0x991   : > { %v3010_v47 = vsel %vm3009_vm9, %v3008_v0, %v3450_v63  ;;  %v3018_v5 = vsel %vm3009_vm9, %v3017_v46, %v3449_v55  ;;  %v3463_v54 = vpop.permute.xlu0 %3462 }
 0x992   : > { %v3011_v3 = vsel %vm2545_vm3, %v3010_v47, %v3460_v37  ;;  %v3465_v31 = vunpack.i.h.bf16 %v3463_v54  ;;  %v3464_v29 = vunpack.i.l.bf16 %v3463_v54  ;;  %v3019_v61 = vsel %vm2545_vm3, %v3018_v5, %v3459_v13 }
 0x993   : > { %vm3153_vm3 = vcmask 1043456  }
 0x994   : > { %v3012_v34 = vsel %vm5399_vm10, %v3011_v3, %v3465_v31  ;;  %v3020_v51 = vsel %vm5400_vm7, %v3019_v61, %v3464_v29  ;;  %3330 = vmatpush.msk.msra.mxu2 %vm3153_vm3, %v3147_v44 }
 0x995   : > { %v3014_v4 = vsel %vm3013_vm5, %v3012_v34, %v2974_v12 }
 0x996   : > { %v3002_v43 = vpop.permute.xlu1 %3001  ;;  %3071 = vmatmul.f32.vlgmr.msra.gmra.mxu1 %v3014_v4  ;;  %3163 = vmatpush.msra.mxu2 %v3146_v41 }
 0x997   : > { %v3021_v56 = vsel %vm3013_vm5, %v3020_v51, %v3002_v43 }
 0x998   : > { %3091 = vmatmul.f32.vlgmr.msrb.gmra.mxu3 %v3021_v56  ;;  %3164 = vmatpush.msra.mxu2 %v3145_v18 }
 0x99a   : > { %3165 = vmatpush.msra.mxu2 %v3144_v62 }
 0x99c   : > { %3166 = vmatpush.msra.mxu2 %v3143_v7 }
 0x99e   : > { %3167 = vmatpush.msra.mxu2 %v3142_v50 }
 0x9a0   : > { %3168 = vmatpush.msra.mxu2 %v3141_v52 }
 0x9a2   : > { %3169 = vmatpush.msra.mxu2 %v3140_v8 }
 0x9a4   : > { %3170 = vmatpush.msra.mxu2 %v3139_v48 }
 0x9a6   : > { %3171 = vmatpush.msra.mxu2 %v3138_v25 }
 0x9a8   : > { %3172 = vmatpush.msra.mxu2 %v3137_v53 }
 0xa13   : > { %v3072_v30 = vpop.f32.mrf.mxu1 }
 0xa14   : > { %v3073_v49 = vadd.f32 %v3072_v30, %v3054_v1 }
 0xa1b   : > { %v3092_v57 = vpop.f32.mrf.mxu3 }
 0xa1c   : > { %v3093_v16 = vadd.f32 %v3092_v57, %v3073_v49 }
 0xa1e   : > { %v3095_v40 = vmax.f32 %v3093_v16, 0.0 }
 0xa20   : > { %3329 = vmatmul.msk.f32.vlgmr.msrb.gmra.mxu0 %vm3112_vm15, %v3095_v40 }
 0xa9d   : > { %v3133_v15 = vpop.f32.mrf.mxu0 }
 0xa9e   : > { %v3134_v10 = vadd.f32 %v3133_v15, %v3111_v21 }
 0xaa0   : > { %v3136_v6 = vmax.f32 %v3134_v10, 0.0 }
 0xaa2   : > { %3331 = vmatmul.msk.f32.vlgmr.msra.gmra.mxu2 %vm3149_vm2, %v3136_v6 }
 0xb25   : > { %v3174_v28 = vpop.f32.mrf.mxu2 }
 0xb26   : > { %v3175_v23 = vadd.f32 %v3174_v28, %v3148_v39 }
 0xb28   : > { %3177 = vst [vmem:[%s378_s0] sm:$0x1] %v3175_v23 }
 0xb29   : > { %3494 = shalt.err (!%p3491_p3)
}
 0xb2a   : > { %3335 = dma.vmem_to_hbm [thread:$0]  (%p3689_p5), %s3190_s25, 16, %s3192_s28, %s3179_s1  }
 0xb2b PF: > { %p3341_p4 = scmp.ge.s32.totalorder %s3529_s20, 2  ;;  %s3203_s2 = sand.u32 1, %s3517_s17  }
 0xb2c   : > { %s3204_s23 = scalar_lea.sflag [#allocation9], %s3203_s2 }
 0xb2d   : > { %p3338_p7 = pnand %p3341_p4, %p3693_p6 }
 0xb2f   : > { %p3339_p8 = pneg %p3338_p7 }
 0xb31   : > { %3512 = dma.done.wait (%p3339_p8), %s3204_s23, 16  }
 0xb32   : > { %3514 = vsyncadd (%p3339_p8), %s3204_s23, 4294967280  ;;  %s5402_s20 = sld [smem:[#allocation12_spill]]  ;;  %s5405_s17 = smov %s3521_s18 }
 0xb33   : > { %s5403_s14 = sld [smem:[#allocation11_spill]] }
 0xb34   : > { %s5404_s19 = sld [smem:[#allocation13_spill]] }
 0xb38   : > { %p21_p9 = scmp.ge.s32.totalorder %s5402_s20, 4  }
 0xb39   : > { %s5406_s18 = smov %s5403_s14 }
 0xb3a   :  { %23 = sbr.rel (!%p21_p9) target bundleno = 7 (0x7), region = 157 }
 0xb3f   :  { %3209 = vsyncpa [#allocation9], 1 }
 0xb40   :  { %3211 = vsyncpa [#allocation9 + $0x1], 1 }

</bundles_post_ra>
